<compile_context>
chip_gen: v7x
topology: tpu7x:2x2x1
jax: 0.10.0
libtpu: 0.0.40
codegen_flags: <defaults>
</compile_context>

<pallas_src>
import functools
import numpy as np
import jax
import jax.numpy as jnp
from jax import lax
from jax.experimental import pallas as pl
from jax.experimental.pallas import tpu as pltpu

# Module hyper-parameters (14x14 spatial is implied by fc1's 2048 = 128*4*4).
C_IN = 8
H = W = 14
POOL_K, POOL_S = 5, 3
OH = (H - POOL_K) // POOL_S + 1          # 4
OW = (W - POOL_K) // POOL_S + 1          # 4
S_OUT = OH * OW                          # 16 pooled spatial positions
CONV_OUT = 128
FLAT = CONV_OUT * S_OUT                  # 2048 (fc1 input)
HIDDEN = 1024
NUM_CLASSES = 10
NC_PAD = 128                             # lane-dense padded class dim
BATCH = 2

_NT_DIMS = (((1,), (1,)), ((), ()))      # A @ B^T contraction (both contract dim 1)


# ------------------------- fused Pallas kernel ------------------------- #

def _inception_aux_kernel(x_ref, pmt_ref, wct_ref, bc_ref,
                          w1_ref, b1_ref, w2_ref,
                          o_ref, flat_ref):
    # x_ref:   (B, C_IN, H*W)      input, spatial on lanes (lane-dense, no wrapper transpose)
    # pmt_ref: (S_OUT, H*W)        avg-pool expressed as a matmul (transposed)
    # wct_ref: (C_IN, CONV_OUT)    1x1 conv weight, transposed
    # bc_ref:  (1, CONV_OUT)       conv bias
    # w1_ref:  (FLAT, TN)          fc1 weight tile, bf16, rows permuted to s*128+c order
    # b1_ref:  (1, TN)             fc1 bias tile
    # w2_ref:  (TN, NC_PAD)        fc2 weight tile, bf16, zero-padded to 128 classes
    # o_ref:   (B, NC_PAD)         f32 partial output for this grid step (bias added in wrapper)
    # flat_ref:(B, FLAT)           bf16 scratch holding the flattened conv activation
    B = x_ref.shape[0]

    # Stage 1: avgpool + 1x1 conv + ReLU, computed transposed so every store into
    # the flat scratch is a 128-lane-aligned store.  Recomputed at every grid step
    # (it is two tiny matmuls per image) so steps are fully independent -> the
    # grid axis can be "parallel" (megacore split on v7x).
    for b in range(B):                                            # static unroll (B tiny)
        # pooled^T (S_OUT, C_IN) = pmat^T (S_OUT, H*W) @ x_b(C_IN, H*W)^T
        pooled_t = lax.dot_general(pmt_ref[...], x_ref[b], _NT_DIMS,
                                   preferred_element_type=jnp.float32)     # (16, C_IN)
        conv_t = jnp.dot(pooled_t, wct_ref[...],
                         preferred_element_type=jnp.float32)               # (16, 128)
        conv_t = jnp.maximum(conv_t + bc_ref[...], 0.0).astype(flat_ref.dtype)
        for s in range(S_OUT):                                    # 16 aligned 128-wide stores
            flat_ref[pl.ds(b, 1), pl.ds(s * CONV_OUT, CONV_OUT)] = conv_t[s:s + 1, :]

    # Stage 2: fc1 tile (+ ReLU).  Dropout(p=0.7) is the identity in eval mode.
    h = jnp.dot(flat_ref[...], w1_ref[...],
                preferred_element_type=jnp.float32) + b1_ref[...]          # (B, TN) f32
    h = jnp.maximum(h, 0.0)                                                # keep f32 for fc2
    # fc2 partial product for this hidden slice (fc2 bias is added in the wrapper).
    o_ref[...] = jnp.dot(h, w2_ref[...].astype(jnp.float32),
                         preferred_element_type=jnp.float32)


# ------------------------- wrapper ------------------------- #

def _default_num_splits():
    """2-way hidden split to use both TensorCores on v7x; 1 elsewhere."""
    try:
        kind = jax.devices()[0].device_kind.lower()
    except Exception:
        return 1
    return 2 if ("v7" in kind or "7x" in kind) else 1


@functools.partial(jax.jit, static_argnames=("num_splits",))
def inception_aux_forward(x, packed, *, num_splits=1):
    B = x.shape[0]
    x_r = x.reshape(B, C_IN, H * W)                 # free reshape (no transpose op)
    tn = HIDDEN // num_splits                       # 1024 (grid=1) or 512 (2-way split)

    flops = 2 * B * FLAT * HIDDEN + 2 * B * HIDDEN * NC_PAD
    bytes_accessed = (FLAT * HIDDEN * 2              # w1 (bf16, dominant term)
                      + HIDDEN * NC_PAD * 2          # w2 (bf16)
                      + x.size * 4
                      + HIDDEN * 4 + S_OUT * H * W * 4 + C_IN * CONV_OUT * 4
                      + num_splits * B * NC_PAD * 4)

    parts = pl.pallas_call(
        _inception_aux_kernel,
        out_shape=jax.ShapeDtypeStruct((num_splits, B, NC_PAD), jnp.float32),
        grid=(num_splits,),
        in_specs=[
            pl.BlockSpec((B, C_IN, H * W), lambda n: (0, 0, 0)),   # x        (resident)
            pl.BlockSpec((S_OUT, H * W), lambda n: (0, 0)),        # pool^T   (resident)
            pl.BlockSpec((C_IN, CONV_OUT), lambda n: (0, 0)),      # conv W^T (resident)
            pl.BlockSpec((1, CONV_OUT), lambda n: (0, 0)),         # conv b   (resident)
            pl.BlockSpec((FLAT, tn), lambda n: (0, n)),            # fc1 W    slice n
            pl.BlockSpec((1, tn), lambda n: (0, n)),               # fc1 b    slice n
            pl.BlockSpec((tn, NC_PAD), lambda n: (n, 0)),          # fc2 W    slice n
        ],
        out_specs=pl.BlockSpec((None, B, NC_PAD), lambda n: (n, 0, 0)),  # private partial
        scratch_shapes=[pltpu.VMEM((B, FLAT), jnp.bfloat16)],
        compiler_params=pltpu.CompilerParams(
            dimension_semantics=("parallel",),                     # steps fully independent
            vmem_limit_bytes=32 * 1024 * 1024),
        cost_estimate=pl.CostEstimate(flops=flops, transcendentals=0,
                                      bytes_accessed=bytes_accessed),
    )(x_r, packed["pmat_t"], packed["wc_t"], packed["bc"],
      packed["w1p"], packed["b1"], packed["w2p"])

    out = parts.sum(axis=0) + packed["b2p"]          # combine partials + fc2 bias
    return out[:, :NUM_CLASSES]


# ------------------------- parameters & reference ------------------------- #

def make_pool_matrix():
    """(H*W, S_OUT) matrix implementing AvgPool2d(kernel_size=5, stride=3)."""
    p = np.zeros((H * W, S_OUT), dtype=np.float32)
    for oh in range(OH):
        for ow in range(OW):
            for kh in range(POOL_K):
                for kw in range(POOL_K):
                    h = oh * POOL_S + kh
                    w = ow * POOL_S + kw
                    p[h * W + w, oh * OW + ow] = 1.0 / (POOL_K * POOL_K)
    return jnp.asarray(p)


def init_params(key):
    k1, k2, k3, k4, k5, k6 = jax.random.split(key, 6)
    scale = 0.05
    return {
        # math layout: conv weight (Cout, Cin); linear weights stored as (in, out).
        "wc": scale * jax.random.normal(k1, (CONV_OUT, C_IN), jnp.float32),
        "bc": scale * jax.random.normal(k2, (CONV_OUT,), jnp.float32),
        "w1": (scale * jax.random.normal(k3, (FLAT, HIDDEN), jnp.float32)).astype(jnp.bfloat16),
        "b1": scale * jax.random.normal(k4, (HIDDEN,), jnp.float32),
        "w2": (scale * jax.random.normal(k5, (HIDDEN, NUM_CLASSES), jnp.float32)).astype(jnp.bfloat16),
        "b2": scale * jax.random.normal(k6, (NUM_CLASSES,), jnp.float32),
    }


def pack_params(params):
    """One-time repack of the parameters into the kernel layout."""
    pmat = make_pool_matrix()                                          # (H*W, 16)
    # fc1 weight rows permuted from torch.flatten order (c*16+s) to the kernel's
    # lane-dense flatten order (s*128+c).
    w1p = (params["w1"].reshape(CONV_OUT, S_OUT, HIDDEN)
           .transpose(1, 0, 2).reshape(FLAT, HIDDEN))                  # bf16
    w2p = jnp.zeros((HIDDEN, NC_PAD), jnp.bfloat16).at[:, :NUM_CLASSES].set(params["w2"])
    b2p = jnp.zeros((1, NC_PAD), jnp.float32).at[0, :NUM_CLASSES].set(params["b2"])
    return {
        "pmat_t": pmat.T,                                              # (16, H*W)
        "wc_t": params["wc"].T,                                        # (C_IN, 128)
        "bc": params["bc"].reshape(1, CONV_OUT),                       # (1, 128)
        "w1p": w1p,                                                    # (2048, 1024) bf16
        "b1": params["b1"].reshape(1, HIDDEN),                         # (1, 1024)
        "w2p": w2p,                                                    # (1024, 128) bf16
        "b2p": b2p,                                                    # (1, 128)
    }


def reference(x, params):
    """Pure-JAX replica of the PyTorch forward (eval mode) for validation."""
    B = x.shape[0]
    pooled = jax.lax.reduce_window(
        x, 0.0, jax.lax.add,
        window_dimensions=(1, 1, POOL_K, POOL_K),
        window_strides=(1, 1, POOL_S, POOL_S),
        padding="VALID") / (POOL_K * POOL_K)
    conv = jnp.einsum("oc,bchw->bohw", params["wc"], pooled)
    conv = jnp.maximum(conv + params["bc"].reshape(1, CONV_OUT, 1, 1), 0.0)
    flat = conv.reshape(B, FLAT)
    h = jnp.maximum(flat @ params["w1"].astype(jnp.float32) + params["b1"], 0.0)
    # Dropout(p=0.7) is the identity in eval mode.
    return h @ params["w2"].astype(jnp.float32) + params["b2"]


if __name__ == "__main__":
    key = jax.random.PRNGKey(0)
    kx, kp = jax.random.split(key)
    x = jax.random.normal(kx, (BATCH, C_IN, H, W), jnp.float32)
    params = init_params(kp)
    packed = pack_params(params)

    num_splits = _default_num_splits()
    out = jax.block_until_ready(inception_aux_forward(x, packed, num_splits=num_splits))
    assert out.shape == (BATCH, NUM_CLASSES)

    ref = jax.block_until_ready(reference(x, params))
    np.testing.assert_allclose(np.asarray(out), np.asarray(ref), rtol=2e-2, atol=2e-2)

    print("KERNEL_OK")
</pallas_src>

<mosaic_0001>
module attributes {stable_mosaic.version = 11 : i64} {
  func.func @_inception_aux_kernel(%arg0: i32, %arg1: memref<2x8x196xf32, #tpu.memory_space<vmem>>, %arg2: memref<16x196xf32, #tpu.memory_space<vmem>>, %arg3: memref<8x128xf32, #tpu.memory_space<vmem>>, %arg4: memref<1x128xf32, #tpu.memory_space<vmem>>, %arg5: memref<2048x1024xbf16, #tpu.memory_space<vmem>>, %arg6: memref<1x1024xf32, #tpu.memory_space<vmem>>, %arg7: memref<1024x128xbf16, #tpu.memory_space<vmem>>, %arg8: memref<1x2x128xf32, #tpu.memory_space<vmem>>, %arg9: memref<2x2048xbf16, #tpu.memory_space<vmem>>) attributes {dimension_semantics = [#tpu.dimension_semantics<parallel>], iteration_bounds = array<i64: 1>, scalar_prefetch = 0 : i64, scratch_operands = 1 : i64, tpu.core_type = #tpu.core_type<tc>, window_params = [{pipeline_mode = #tpu.pipeline_mode<synchronous>, transform_indices = @transform_0, window_bounds = array<i64: 2, 8, 196>}, {pipeline_mode = #tpu.pipeline_mode<synchronous>, transform_indices = @transform_1, window_bounds = array<i64: 16, 196>}, {pipeline_mode = #tpu.pipeline_mode<synchronous>, transform_indices = @transform_2, window_bounds = array<i64: 8, 128>}, {pipeline_mode = #tpu.pipeline_mode<synchronous>, transform_indices = @transform_3, window_bounds = array<i64: 1, 128>}, {transform_indices = @transform_4, window_bounds = array<i64: 2048, 1024>}, {transform_indices = @transform_5, window_bounds = array<i64: 1, 1024>}, {transform_indices = @transform_6, window_bounds = array<i64: 1024, 128>}, {transform_indices = @transform_7, window_bounds = array<i64: 1, 2, 128>}]} {
    %c0 = arith.constant 0 : index
    %c0_0 = arith.constant 0 : index
    %0 = vector.load %arg2[%c0, %c0_0] : memref<16x196xf32, #tpu.memory_space<vmem>>, vector<16x196xf32>
    %c0_1 = arith.constant 0 : index
    %c0_2 = arith.constant 0 : index
    %c0_3 = arith.constant 0 : index
    %1 = vector.load %arg1[%c0_1, %c0_2, %c0_3] : memref<2x8x196xf32, #tpu.memory_space<vmem>>, vector<1x8x196xf32>
    %2 = vector.shape_cast %1 : vector<1x8x196xf32> to vector<8x196xf32>
    %cst = arith.constant dense<0.000000e+00> : vector<16x8xf32>
    %3 = tpu.matmul %0, %2, %cst {dimension_numbers = #tpu.dot_dimension_numbers<[1], [1], [0], [0], [0, 0, 1, 0], [], []>} : vector<16x196xf32>, vector<8x196xf32>, vector<16x8xf32> -> vector<16x8xf32>
    %c0_4 = arith.constant 0 : index
    %c0_5 = arith.constant 0 : index
    %4 = vector.load %arg3[%c0_4, %c0_5] : memref<8x128xf32, #tpu.memory_space<vmem>>, vector<8x128xf32>
    %cst_6 = arith.constant dense<0.000000e+00> : vector<16x128xf32>
    %5 = tpu.matmul %3, %4, %cst_6 {dimension_numbers = #tpu.dot_dimension_numbers<[1], [0], [0], [1], [0, 0, 1, 1], [], []>} : vector<16x8xf32>, vector<8x128xf32>, vector<16x128xf32> -> vector<16x128xf32>
    %c0_7 = arith.constant 0 : index
    %c0_8 = arith.constant 0 : index
    %6 = vector.load %arg4[%c0_7, %c0_8] : memref<1x128xf32, #tpu.memory_space<vmem>>, vector<1x128xf32>
    %7 = vector.broadcast %6 : vector<1x128xf32> to vector<16x128xf32>
    %8 = arith.addf %5, %7 : vector<16x128xf32>
    %cst_9 = arith.constant 0.000000e+00 : f32
    %9 = vector.broadcast %cst_9 : f32 to vector<16x128xf32>
    %10 = arith.maximumf %8, %9 : vector<16x128xf32>
    %11 = arith.truncf %10 : vector<16x128xf32> to vector<16x128xbf16>
    %12 = vector.extract_strided_slice %11 {offsets = [0, 0], sizes = [1, 128], strides = [1, 1]} : vector<16x128xbf16> to vector<1x128xbf16>
    %c0_10 = arith.constant 0 : index
    %c0_11 = arith.constant 0 : index
    %13 = vector.load %arg9[%c0_10, %c0_11] : memref<2x2048xbf16, #tpu.memory_space<vmem>>, vector<1x128xbf16>
    tpu.vector_store %arg9[%c0_10, %c0_11], %12 {strides = array<i32>} : memref<2x2048xbf16, #tpu.memory_space<vmem>>, vector<1x128xbf16>,
    %14 = vector.extract_strided_slice %11 {offsets = [1, 0], sizes = [1, 128], strides = [1, 1]} : vector<16x128xbf16> to vector<1x128xbf16>
    %c0_12 = arith.constant 0 : index
    %c128 = arith.constant 128 : index
    %15 = vector.load %arg9[%c0_12, %c128] : memref<2x2048xbf16, #tpu.memory_space<vmem>>, vector<1x128xbf16>
    tpu.vector_store %arg9[%c0_12, %c128], %14 {strides = array<i32>} : memref<2x2048xbf16, #tpu.memory_space<vmem>>, vector<1x128xbf16>,
    %16 = vector.extract_strided_slice %11 {offsets = [2, 0], sizes = [1, 128], strides = [1, 1]} : vector<16x128xbf16> to vector<1x128xbf16>
    %c0_13 = arith.constant 0 : index
    %c256 = arith.constant 256 : index
    %17 = vector.load %arg9[%c0_13, %c256] : memref<2x2048xbf16, #tpu.memory_space<vmem>>, vector<1x128xbf16>
    tpu.vector_store %arg9[%c0_13, %c256], %16 {strides = array<i32>} : memref<2x2048xbf16, #tpu.memory_space<vmem>>, vector<1x128xbf16>,
    %18 = vector.extract_strided_slice %11 {offsets = [3, 0], sizes = [1, 128], strides = [1, 1]} : vector<16x128xbf16> to vector<1x128xbf16>
    %c0_14 = arith.constant 0 : index
    %c384 = arith.constant 384 : index
    %19 = vector.load %arg9[%c0_14, %c384] : memref<2x2048xbf16, #tpu.memory_space<vmem>>, vector<1x128xbf16>
    tpu.vector_store %arg9[%c0_14, %c384], %18 {strides = array<i32>} : memref<2x2048xbf16, #tpu.memory_space<vmem>>, vector<1x128xbf16>,
    %20 = vector.extract_strided_slice %11 {offsets = [4, 0], sizes = [1, 128], strides = [1, 1]} : vector<16x128xbf16> to vector<1x128xbf16>
    %c0_15 = arith.constant 0 : index
    %c512 = arith.constant 512 : index
    %21 = vector.load %arg9[%c0_15, %c512] : memref<2x2048xbf16, #tpu.memory_space<vmem>>, vector<1x128xbf16>
    tpu.vector_store %arg9[%c0_15, %c512], %20 {strides = array<i32>} : memref<2x2048xbf16, #tpu.memory_space<vmem>>, vector<1x128xbf16>,
    %22 = vector.extract_strided_slice %11 {offsets = [5, 0], sizes = [1, 128], strides = [1, 1]} : vector<16x128xbf16> to vector<1x128xbf16>
    %c0_16 = arith.constant 0 : index
    %c640 = arith.constant 640 : index
    %23 = vector.load %arg9[%c0_16, %c640] : memref<2x2048xbf16, #tpu.memory_space<vmem>>, vector<1x128xbf16>
    tpu.vector_store %arg9[%c0_16, %c640], %22 {strides = array<i32>} : memref<2x2048xbf16, #tpu.memory_space<vmem>>, vector<1x128xbf16>,
    %24 = vector.extract_strided_slice %11 {offsets = [6, 0], sizes = [1, 128], strides = [1, 1]} : vector<16x128xbf16> to vector<1x128xbf16>
    %c0_17 = arith.constant 0 : index
    %c768 = arith.constant 768 : index
    %25 = vector.load %arg9[%c0_17, %c768] : memref<2x2048xbf16, #tpu.memory_space<vmem>>, vector<1x128xbf16>
    tpu.vector_store %arg9[%c0_17, %c768], %24 {strides = array<i32>} : memref<2x2048xbf16, #tpu.memory_space<vmem>>, vector<1x128xbf16>,
    %26 = vector.extract_strided_slice %11 {offsets = [7, 0], sizes = [1, 128], strides = [1, 1]} : vector<16x128xbf16> to vector<1x128xbf16>
    %c0_18 = arith.constant 0 : index
    %c896 = arith.constant 896 : index
    %27 = vector.load %arg9[%c0_18, %c896] : memref<2x2048xbf16, #tpu.memory_space<vmem>>, vector<1x128xbf16>
    tpu.vector_store %arg9[%c0_18, %c896], %26 {strides = array<i32>} : memref<2x2048xbf16, #tpu.memory_space<vmem>>, vector<1x128xbf16>,
    %28 = vector.extract_strided_slice %11 {offsets = [8, 0], sizes = [1, 128], strides = [1, 1]} : vector<16x128xbf16> to vector<1x128xbf16>
    %c0_19 = arith.constant 0 : index
    %c1024 = arith.constant 1024 : index
    %29 = vector.load %arg9[%c0_19, %c1024] : memref<2x2048xbf16, #tpu.memory_space<vmem>>, vector<1x128xbf16>
    tpu.vector_store %arg9[%c0_19, %c1024], %28 {strides = array<i32>} : memref<2x2048xbf16, #tpu.memory_space<vmem>>, vector<1x128xbf16>,
    %30 = vector.extract_strided_slice %11 {offsets = [9, 0], sizes = [1, 128], strides = [1, 1]} : vector<16x128xbf16> to vector<1x128xbf16>
    %c0_20 = arith.constant 0 : index
    %c1152 = arith.constant 1152 : index
    %31 = vector.load %arg9[%c0_20, %c1152] : memref<2x2048xbf16, #tpu.memory_space<vmem>>, vector<1x128xbf16>
    tpu.vector_store %arg9[%c0_20, %c1152], %30 {strides = array<i32>} : memref<2x2048xbf16, #tpu.memory_space<vmem>>, vector<1x128xbf16>,
    %32 = vector.extract_strided_slice %11 {offsets = [10, 0], sizes = [1, 128], strides = [1, 1]} : vector<16x128xbf16> to vector<1x128xbf16>
    %c0_21 = arith.constant 0 : index
    %c1280 = arith.constant 1280 : index
    %33 = vector.load %arg9[%c0_21, %c1280] : memref<2x2048xbf16, #tpu.memory_space<vmem>>, vector<1x128xbf16>
    tpu.vector_store %arg9[%c0_21, %c1280], %32 {strides = array<i32>} : memref<2x2048xbf16, #tpu.memory_space<vmem>>, vector<1x128xbf16>,
    %34 = vector.extract_strided_slice %11 {offsets = [11, 0], sizes = [1, 128], strides = [1, 1]} : vector<16x128xbf16> to vector<1x128xbf16>
    %c0_22 = arith.constant 0 : index
    %c1408 = arith.constant 1408 : index
    %35 = vector.load %arg9[%c0_22, %c1408] : memref<2x2048xbf16, #tpu.memory_space<vmem>>, vector<1x128xbf16>
    tpu.vector_store %arg9[%c0_22, %c1408], %34 {strides = array<i32>} : memref<2x2048xbf16, #tpu.memory_space<vmem>>, vector<1x128xbf16>,
    %36 = vector.extract_strided_slice %11 {offsets = [12, 0], sizes = [1, 128], strides = [1, 1]} : vector<16x128xbf16> to vector<1x128xbf16>
    %c0_23 = arith.constant 0 : index
    %c1536 = arith.constant 1536 : index
    %37 = vector.load %arg9[%c0_23, %c1536] : memref<2x2048xbf16, #tpu.memory_space<vmem>>, vector<1x128xbf16>
    tpu.vector_store %arg9[%c0_23, %c1536], %36 {strides = array<i32>} : memref<2x2048xbf16, #tpu.memory_space<vmem>>, vector<1x128xbf16>,
    %38 = vector.extract_strided_slice %11 {offsets = [13, 0], sizes = [1, 128], strides = [1, 1]} : vector<16x128xbf16> to vector<1x128xbf16>
    %c0_24 = arith.constant 0 : index
    %c1664 = arith.constant 1664 : index
    %39 = vector.load %arg9[%c0_24, %c1664] : memref<2x2048xbf16, #tpu.memory_space<vmem>>, vector<1x128xbf16>
    tpu.vector_store %arg9[%c0_24, %c1664], %38 {strides = array<i32>} : memref<2x2048xbf16, #tpu.memory_space<vmem>>, vector<1x128xbf16>,
    %40 = vector.extract_strided_slice %11 {offsets = [14, 0], sizes = [1, 128], strides = [1, 1]} : vector<16x128xbf16> to vector<1x128xbf16>
    %c0_25 = arith.constant 0 : index
    %c1792 = arith.constant 1792 : index
    %41 = vector.load %arg9[%c0_25, %c1792] : memref<2x2048xbf16, #tpu.memory_space<vmem>>, vector<1x128xbf16>
    tpu.vector_store %arg9[%c0_25, %c1792], %40 {strides = array<i32>} : memref<2x2048xbf16, #tpu.memory_space<vmem>>, vector<1x128xbf16>,
    %42 = vector.extract_strided_slice %11 {offsets = [15, 0], sizes = [1, 128], strides = [1, 1]} : vector<16x128xbf16> to vector<1x128xbf16>
    %c0_26 = arith.constant 0 : index
    %c1920 = arith.constant 1920 : index
    %43 = vector.load %arg9[%c0_26, %c1920] : memref<2x2048xbf16, #tpu.memory_space<vmem>>, vector<1x128xbf16>
    tpu.vector_store %arg9[%c0_26, %c1920], %42 {strides = array<i32>} : memref<2x2048xbf16, #tpu.memory_space<vmem>>, vector<1x128xbf16>,
    %c0_27 = arith.constant 0 : index
    %c0_28 = arith.constant 0 : index
    %44 = vector.load %arg2[%c0_27, %c0_28] : memref<16x196xf32, #tpu.memory_space<vmem>>, vector<16x196xf32>
    %c1 = arith.constant 1 : index
    %c0_29 = arith.constant 0 : index
    %c0_30 = arith.constant 0 : index
    %45 = vector.load %arg1[%c1, %c0_29, %c0_30] : memref<2x8x196xf32, #tpu.memory_space<vmem>>, vector<1x8x196xf32>
    %46 = vector.shape_cast %45 : vector<1x8x196xf32> to vector<8x196xf32>
    %cst_31 = arith.constant dense<0.000000e+00> : vector<16x8xf32>
    %47 = tpu.matmul %44, %46, %cst_31 {dimension_numbers = #tpu.dot_dimension_numbers<[1], [1], [0], [0], [0, 0, 1, 0], [], []>} : vector<16x196xf32>, vector<8x196xf32>, vector<16x8xf32> -> vector<16x8xf32>
    %c0_32 = arith.constant 0 : index
    %c0_33 = arith.constant 0 : index
    %48 = vector.load %arg3[%c0_32, %c0_33] : memref<8x128xf32, #tpu.memory_space<vmem>>, vector<8x128xf32>
    %cst_34 = arith.constant dense<0.000000e+00> : vector<16x128xf32>
    %49 = tpu.matmul %47, %48, %cst_34 {dimension_numbers = #tpu.dot_dimension_numbers<[1], [0], [0], [1], [0, 0, 1, 1], [], []>} : vector<16x8xf32>, vector<8x128xf32>, vector<16x128xf32> -> vector<16x128xf32>
    %c0_35 = arith.constant 0 : index
    %c0_36 = arith.constant 0 : index
    %50 = vector.load %arg4[%c0_35, %c0_36] : memref<1x128xf32, #tpu.memory_space<vmem>>, vector<1x128xf32>
    %51 = vector.broadcast %50 : vector<1x128xf32> to vector<16x128xf32>
    %52 = arith.addf %49, %51 : vector<16x128xf32>
    %cst_37 = arith.constant 0.000000e+00 : f32
    %53 = vector.broadcast %cst_37 : f32 to vector<16x128xf32>
    %54 = arith.maximumf %52, %53 : vector<16x128xf32>
    %55 = arith.truncf %54 : vector<16x128xf32> to vector<16x128xbf16>
    %56 = vector.extract_strided_slice %55 {offsets = [0, 0], sizes = [1, 128], strides = [1, 1]} : vector<16x128xbf16> to vector<1x128xbf16>
    %c1_38 = arith.constant 1 : index
    %c0_39 = arith.constant 0 : index
    %57 = vector.load %arg9[%c1_38, %c0_39] : memref<2x2048xbf16, #tpu.memory_space<vmem>>, vector<1x128xbf16>
    tpu.vector_store %arg9[%c1_38, %c0_39], %56 {strides = array<i32>} : memref<2x2048xbf16, #tpu.memory_space<vmem>>, vector<1x128xbf16>,
    %58 = vector.extract_strided_slice %55 {offsets = [1, 0], sizes = [1, 128], strides = [1, 1]} : vector<16x128xbf16> to vector<1x128xbf16>
    %c1_40 = arith.constant 1 : index
    %c128_41 = arith.constant 128 : index
    %59 = vector.load %arg9[%c1_40, %c128_41] : memref<2x2048xbf16, #tpu.memory_space<vmem>>, vector<1x128xbf16>
    tpu.vector_store %arg9[%c1_40, %c128_41], %58 {strides = array<i32>} : memref<2x2048xbf16, #tpu.memory_space<vmem>>, vector<1x128xbf16>,
    %60 = vector.extract_strided_slice %55 {offsets = [2, 0], sizes = [1, 128], strides = [1, 1]} : vector<16x128xbf16> to vector<1x128xbf16>
    %c1_42 = arith.constant 1 : index
    %c256_43 = arith.constant 256 : index
    %61 = vector.load %arg9[%c1_42, %c256_43] : memref<2x2048xbf16, #tpu.memory_space<vmem>>, vector<1x128xbf16>
    tpu.vector_store %arg9[%c1_42, %c256_43], %60 {strides = array<i32>} : memref<2x2048xbf16, #tpu.memory_space<vmem>>, vector<1x128xbf16>,
    %62 = vector.extract_strided_slice %55 {offsets = [3, 0], sizes = [1, 128], strides = [1, 1]} : vector<16x128xbf16> to vector<1x128xbf16>
    %c1_44 = arith.constant 1 : index
    %c384_45 = arith.constant 384 : index
    %63 = vector.load %arg9[%c1_44, %c384_45] : memref<2x2048xbf16, #tpu.memory_space<vmem>>, vector<1x128xbf16>
    tpu.vector_store %arg9[%c1_44, %c384_45], %62 {strides = array<i32>} : memref<2x2048xbf16, #tpu.memory_space<vmem>>, vector<1x128xbf16>,
    %64 = vector.extract_strided_slice %55 {offsets = [4, 0], sizes = [1, 128], strides = [1, 1]} : vector<16x128xbf16> to vector<1x128xbf16>
    %c1_46 = arith.constant 1 : index
    %c512_47 = arith.constant 512 : index
    %65 = vector.load %arg9[%c1_46, %c512_47] : memref<2x2048xbf16, #tpu.memory_space<vmem>>, vector<1x128xbf16>
    tpu.vector_store %arg9[%c1_46, %c512_47], %64 {strides = array<i32>} : memref<2x2048xbf16, #tpu.memory_space<vmem>>, vector<1x128xbf16>,
    %66 = vector.extract_strided_slice %55 {offsets = [5, 0], sizes = [1, 128], strides = [1, 1]} : vector<16x128xbf16> to vector<1x128xbf16>
    %c1_48 = arith.constant 1 : index
    %c640_49 = arith.constant 640 : index
    %67 = vector.load %arg9[%c1_48, %c640_49] : memref<2x2048xbf16, #tpu.memory_space<vmem>>, vector<1x128xbf16>
    tpu.vector_store %arg9[%c1_48, %c640_49], %66 {strides = array<i32>} : memref<2x2048xbf16, #tpu.memory_space<vmem>>, vector<1x128xbf16>,
    %68 = vector.extract_strided_slice %55 {offsets = [6, 0], sizes = [1, 128], strides = [1, 1]} : vector<16x128xbf16> to vector<1x128xbf16>
    %c1_50 = arith.constant 1 : index
    %c768_51 = arith.constant 768 : index
    %69 = vector.load %arg9[%c1_50, %c768_51] : memref<2x2048xbf16, #tpu.memory_space<vmem>>, vector<1x128xbf16>
    tpu.vector_store %arg9[%c1_50, %c768_51], %68 {strides = array<i32>} : memref<2x2048xbf16, #tpu.memory_space<vmem>>, vector<1x128xbf16>,
    %70 = vector.extract_strided_slice %55 {offsets = [7, 0], sizes = [1, 128], strides = [1, 1]} : vector<16x128xbf16> to vector<1x128xbf16>
    %c1_52 = arith.constant 1 : index
    %c896_53 = arith.constant 896 : index
    %71 = vector.load %arg9[%c1_52, %c896_53] : memref<2x2048xbf16, #tpu.memory_space<vmem>>, vector<1x128xbf16>
    tpu.vector_store %arg9[%c1_52, %c896_53], %70 {strides = array<i32>} : memref<2x2048xbf16, #tpu.memory_space<vmem>>, vector<1x128xbf16>,
    %72 = vector.extract_strided_slice %55 {offsets = [8, 0], sizes = [1, 128], strides = [1, 1]} : vector<16x128xbf16> to vector<1x128xbf16>
    %c1_54 = arith.constant 1 : index
    %c1024_55 = arith.constant 1024 : index
    %73 = vector.load %arg9[%c1_54, %c1024_55] : memref<2x2048xbf16, #tpu.memory_space<vmem>>, vector<1x128xbf16>
    tpu.vector_store %arg9[%c1_54, %c1024_55], %72 {strides = array<i32>} : memref<2x2048xbf16, #tpu.memory_space<vmem>>, vector<1x128xbf16>,
    %74 = vector.extract_strided_slice %55 {offsets = [9, 0], sizes = [1, 128], strides = [1, 1]} : vector<16x128xbf16> to vector<1x128xbf16>
    %c1_56 = arith.constant 1 : index
    %c1152_57 = arith.constant 1152 : index
    %75 = vector.load %arg9[%c1_56, %c1152_57] : memref<2x2048xbf16, #tpu.memory_space<vmem>>, vector<1x128xbf16>
    tpu.vector_store %arg9[%c1_56, %c1152_57], %74 {strides = array<i32>} : memref<2x2048xbf16, #tpu.memory_space<vmem>>, vector<1x128xbf16>,
    %76 = vector.extract_strided_slice %55 {offsets = [10, 0], sizes = [1, 128], strides = [1, 1]} : vector<16x128xbf16> to vector<1x128xbf16>
    %c1_58 = arith.constant 1 : index
    %c1280_59 = arith.constant 1280 : index
    %77 = vector.load %arg9[%c1_58, %c1280_59] : memref<2x2048xbf16, #tpu.memory_space<vmem>>, vector<1x128xbf16>
    tpu.vector_store %arg9[%c1_58, %c1280_59], %76 {strides = array<i32>} : memref<2x2048xbf16, #tpu.memory_space<vmem>>, vector<1x128xbf16>,
    %78 = vector.extract_strided_slice %55 {offsets = [11, 0], sizes = [1, 128], strides = [1, 1]} : vector<16x128xbf16> to vector<1x128xbf16>
    %c1_60 = arith.constant 1 : index
    %c1408_61 = arith.constant 1408 : index
    %79 = vector.load %arg9[%c1_60, %c1408_61] : memref<2x2048xbf16, #tpu.memory_space<vmem>>, vector<1x128xbf16>
    tpu.vector_store %arg9[%c1_60, %c1408_61], %78 {strides = array<i32>} : memref<2x2048xbf16, #tpu.memory_space<vmem>>, vector<1x128xbf16>,
    %80 = vector.extract_strided_slice %55 {offsets = [12, 0], sizes = [1, 128], strides = [1, 1]} : vector<16x128xbf16> to vector<1x128xbf16>
    %c1_62 = arith.constant 1 : index
    %c1536_63 = arith.constant 1536 : index
    %81 = vector.load %arg9[%c1_62, %c1536_63] : memref<2x2048xbf16, #tpu.memory_space<vmem>>, vector<1x128xbf16>
    tpu.vector_store %arg9[%c1_62, %c1536_63], %80 {strides = array<i32>} : memref<2x2048xbf16, #tpu.memory_space<vmem>>, vector<1x128xbf16>,
    %82 = vector.extract_strided_slice %55 {offsets = [13, 0], sizes = [1, 128], strides = [1, 1]} : vector<16x128xbf16> to vector<1x128xbf16>
    %c1_64 = arith.constant 1 : index
    %c1664_65 = arith.constant 1664 : index
    %83 = vector.load %arg9[%c1_64, %c1664_65] : memref<2x2048xbf16, #tpu.memory_space<vmem>>, vector<1x128xbf16>
    tpu.vector_store %arg9[%c1_64, %c1664_65], %82 {strides = array<i32>} : memref<2x2048xbf16, #tpu.memory_space<vmem>>, vector<1x128xbf16>,
    %84 = vector.extract_strided_slice %55 {offsets = [14, 0], sizes = [1, 128], strides = [1, 1]} : vector<16x128xbf16> to vector<1x128xbf16>
    %c1_66 = arith.constant 1 : index
    %c1792_67 = arith.constant 1792 : index
    %85 = vector.load %arg9[%c1_66, %c1792_67] : memref<2x2048xbf16, #tpu.memory_space<vmem>>, vector<1x128xbf16>
    tpu.vector_store %arg9[%c1_66, %c1792_67], %84 {strides = array<i32>} : memref<2x2048xbf16, #tpu.memory_space<vmem>>, vector<1x128xbf16>,
    %86 = vector.extract_strided_slice %55 {offsets = [15, 0], sizes = [1, 128], strides = [1, 1]} : vector<16x128xbf16> to vector<1x128xbf16>
    %c1_68 = arith.constant 1 : index
    %c1920_69 = arith.constant 1920 : index
    %87 = vector.load %arg9[%c1_68, %c1920_69] : memref<2x2048xbf16, #tpu.memory_space<vmem>>, vector<1x128xbf16>
    tpu.vector_store %arg9[%c1_68, %c1920_69], %86 {strides = array<i32>} : memref<2x2048xbf16, #tpu.memory_space<vmem>>, vector<1x128xbf16>,
    %c0_70 = arith.constant 0 : index
    %c0_71 = arith.constant 0 : index
    %88 = vector.load %arg9[%c0_70, %c0_71] : memref<2x2048xbf16, #tpu.memory_space<vmem>>, vector<2x2048xbf16>
    %c0_72 = arith.constant 0 : index
    %c0_73 = arith.constant 0 : index
    %89 = vector.load %arg5[%c0_72, %c0_73] : memref<2048x1024xbf16, #tpu.memory_space<vmem>>, vector<2048x1024xbf16>
    %cst_74 = arith.constant dense<0.000000e+00> : vector<2x1024xf32>
    %90 = tpu.matmul %88, %89, %cst_74 {dimension_numbers = #tpu.dot_dimension_numbers<[1], [0], [0], [1], [0, 0, 1, 1], [], []>} : vector<2x2048xbf16>, vector<2048x1024xbf16>, vector<2x1024xf32> -> vector<2x1024xf32>
    %c0_75 = arith.constant 0 : index
    %c0_76 = arith.constant 0 : index
    %91 = vector.load %arg6[%c0_75, %c0_76] : memref<1x1024xf32, #tpu.memory_space<vmem>>, vector<1x1024xf32>
    %92 = vector.broadcast %91 : vector<1x1024xf32> to vector<2x1024xf32>
    %93 = arith.addf %90, %92 : vector<2x1024xf32>
    %cst_77 = arith.constant 0.000000e+00 : f32
    %94 = vector.broadcast %cst_77 : f32 to vector<2x1024xf32>
    %95 = arith.maximumf %93, %94 : vector<2x1024xf32>
    %c0_78 = arith.constant 0 : index
    %c0_79 = arith.constant 0 : index
    %96 = vector.load %arg7[%c0_78, %c0_79] : memref<1024x128xbf16, #tpu.memory_space<vmem>>, vector<1024x128xbf16>
    %97 = arith.extf %96 : vector<1024x128xbf16> to vector<1024x128xf32>
    %cst_80 = arith.constant dense<0.000000e+00> : vector<2x128xf32>
    %98 = tpu.matmul %95, %97, %cst_80 {dimension_numbers = #tpu.dot_dimension_numbers<[1], [0], [0], [1], [0, 0, 1, 1], [], []>} : vector<2x1024xf32>, vector<1024x128xf32>, vector<2x128xf32> -> vector<2x128xf32>
    %c0_81 = arith.constant 0 : index
    %c0_82 = arith.constant 0 : index
    %c0_83 = arith.constant 0 : index
    %99 = vector.load %arg8[%c0_81, %c0_82, %c0_83] : memref<1x2x128xf32, #tpu.memory_space<vmem>>, vector<1x2x128xf32>
    %100 = vector.shape_cast %99 : vector<1x2x128xf32> to vector<2x128xf32>
    %101 = vector.shape_cast %98 : vector<2x128xf32> to vector<1x2x128xf32>
    tpu.vector_store %arg8[%c0_81, %c0_82, %c0_83], %101 {strides = array<i32>} : memref<1x2x128xf32, #tpu.memory_space<vmem>>, vector<1x2x128xf32>,
    return
  }
  func.func @transform_0(%arg0: i32) -> (i32, i32, i32) {
    %c0_i32 = arith.constant 0 : i32
    %c0_i32_0 = arith.constant 0 : i32
    %c0_i32_1 = arith.constant 0 : i32
    %c0_i32_2 = arith.constant 0 : i32
    return %c0_i32, %c0_i32_0, %c0_i32_1 : i32, i32, i32
  }
  func.func @transform_1(%arg0: i32) -> (i32, i32) {
    %c0_i32 = arith.constant 0 : i32
    %c0_i32_0 = arith.constant 0 : i32
    %c0_i32_1 = arith.constant 0 : i32
    return %c0_i32, %c0_i32_0 : i32, i32
  }
  func.func @transform_2(%arg0: i32) -> (i32, i32) {
    %c0_i32 = arith.constant 0 : i32
    %c0_i32_0 = arith.constant 0 : i32
    %c0_i32_1 = arith.constant 0 : i32
    return %c0_i32, %c0_i32_0 : i32, i32
  }
  func.func @transform_3(%arg0: i32) -> (i32, i32) {
    %c0_i32 = arith.constant 0 : i32
    %c0_i32_0 = arith.constant 0 : i32
    %c0_i32_1 = arith.constant 0 : i32
    return %c0_i32, %c0_i32_0 : i32, i32
  }
  func.func @transform_4(%arg0: i32) -> (i32, i32) {
    %c0_i32 = arith.constant 0 : i32
    %c0_i32_0 = arith.constant 0 : i32
    return %c0_i32, %arg0 : i32, i32
  }
  func.func @transform_5(%arg0: i32) -> (i32, i32) {
    %c0_i32 = arith.constant 0 : i32
    %c0_i32_0 = arith.constant 0 : i32
    return %c0_i32, %arg0 : i32, i32
  }
  func.func @transform_6(%arg0: i32) -> (i32, i32) {
    %c0_i32 = arith.constant 0 : i32
    %c0_i32_0 = arith.constant 0 : i32
    return %arg0, %c0_i32 : i32, i32
  }
  func.func @transform_7(%arg0: i32) -> (i32, i32, i32) {
    %c0_i32 = arith.constant 0 : i32
    %c0_i32_0 = arith.constant 0 : i32
    %c0_i32_1 = arith.constant 0 : i32
    return %arg0, %c0_i32, %c0_i32_0 : i32, i32, i32
  }
}

</mosaic_0001>

<bundles_post_ra>
// kernel: inception_aux_forward.1
= control target key start
LH: loop header
LB: loop body
LE: loop exit
PB: predicated region body
PF: predicated region fallthrough
CT: control target
= control target key end

     0   :  { %12 = vsyncpa [#allocation4], 0  ;;  %s11341_s0 = inlined_call_operand.vmem [shape: f32[2,8,196], index: 0, kind: input, shape index: {}]   ;;  %s11342_s1 = inlined_call_operand.hbm [shape: f32[16,196], index: 1, kind: input, shape index: {}]   ;;  %s11343_s2 = inlined_call_operand.hbm [shape: f32[8,128], index: 2, kind: input, shape index: {}]   ;;  %s11344_s3 = inlined_call_operand.hbm [shape: f32[1,128], index: 3, kind: input, shape index: {}]   ;;  %s11345_s4 = inlined_call_operand.hbm [shape: bf16[2048,1024], index: 4, kind: input, shape index: {}]   ;;  %s11346_s5 = inlined_call_operand.hbm [shape: f32[1,1024], index: 5, kind: input, shape index: {}]   ;;  %s11347_s6 = inlined_call_operand.hbm [shape: bf16[1024,128], index: 6, kind: input, shape index: {}]   ;;  %s11348_s7 = inlined_call_operand.vmem [shape: f32[1,2,128], index: 7, kind: output, shape index: {}]  }
   0x1   :  { %13 = vsyncpa [#allocation6], 0 }
   0x2   :  { %14 = vsyncpa [#allocation9], 0 }
   0x3   :  { %15 = vsyncpa [#allocation12], 0  ;;  %s10859_s24 = smov [#allocation5]   ;;  %s10860_s26 = smov [#allocation8]  }
   0x4   :  { %s36_s25 = sshll.u32 %s10859_s24, 4  ;;  %s55_s27 = sshll.u32 %s10860_s26, 4  ;;  %s37_s25 = int_to_ptr.vmem [resolvable:$true] %s36_s25  ;;  %s10912_s27 = int_to_ptr.vmem [resolvable:$true] %s55_s27 }
   0x5   :  { %s10719_s30 = scalar_lea.hbm %s11343_s2, 128 }
   0x6   :  { %p10720_p0 = scmp.ne.s32.totalorder %s11343_s2, %s10719_s30  ;;  %p10723_p1 = scmp.lt.u32.totalorder %s10719_s30, %s11343_s2 }
   0x8   :  { %p10725_p2 = pnand %p10723_p1, %p10720_p0 }
   0xa   :  { %10728 = shalt.err (!%p10725_p2)
}
   0xb   :  { %s10729_s12 = scalar_lea.vmem %s37_s25, 128  ;;  %p10734_p4 = scmp.lt.s32.totalorder %s37_s25, %s37_s25 }
   0xc   :  { %p10730_p3 = scmp.ne.s32.totalorder %s37_s25, %s10729_s12  ;;  %p10735_p5 = scmp.lt.s32.totalorder %s10729_s12, %s10729_s12 }
   0xe   :  { %p10736_p6 = por %p10735_p5, %p10734_p4 }
  0x10   :  { %p10737_p7 = pnand %p10736_p6, %p10730_p3 }
  0x12   :  { %10740 = shalt.err (!%p10737_p7)
}
  0x13   :  { %39 = dma.hbm_to_vmem [thread:$0]  %s11343_s2, 128, %s37_s25, [#allocation6]  }
  0x14   :  { %s10741_s17 = scalar_lea.hbm %s11345_s4, 131072 }
  0x15   :  { %p10742_p8 = scmp.ne.s32.totalorder %s11345_s4, %s10741_s17  ;;  %p10745_p9 = scmp.lt.u32.totalorder %s10741_s17, %s11345_s4 }
  0x17   :  { %p10747_p10 = pnand %p10745_p9, %p10742_p8 }
  0x19   :  { %10750 = shalt.err (!%p10747_p10)
}
  0x1a   :  { %s10751_s22 = scalar_lea.vmem %s10912_s27, 131072  ;;  %p10756_p12 = scmp.lt.s32.totalorder %s10912_s27, %s10912_s27 }
  0x1b   :  { %p10752_p11 = scmp.ne.s32.totalorder %s10912_s27, %s10751_s22  ;;  %p10757_p13 = scmp.lt.s32.totalorder %s10751_s22, %s10751_s22 }
  0x1d   :  { %p10758_p0 = por %p10757_p13, %p10756_p12 }
  0x1f   :  { %p10759_p1 = pnand %p10758_p0, %p10752_p11 }
  0x21   :  { %10762 = shalt.err (!%p10759_p1)
}
  0x22   :  { %s10861_s2 = smov 512   ;;  %s10862_s23 = smov 32  }
  0x23   :  { %61 = dma.hbm_to_vmem [thread:$0]  %s11345_s4, 131072, %s10912_s27, [#allocation9], %s10861_s2, %s10861_s2, %s10862_s23  }
  0x24   :  { %s10863_s26 = smov [#allocation3]   ;;  %s10763_s8 = scalar_lea.hbm %s11342_s1, 512 }
  0x25   :  { %s23_s28 = sshll.u32 %s10863_s26, 4  ;;  %p10764_p2 = scmp.ne.s32.totalorder %s11342_s1, %s10763_s8  ;;  %s24_s28 = int_to_ptr.vmem [resolvable:$true] %s23_s28 }
  0x26   :  { %p10767_p3 = scmp.lt.u32.totalorder %s10763_s8, %s11342_s1 }
  0x28   :  { %p10769_p4 = pnand %p10767_p3, %p10764_p2 }
  0x2a   :  { %10772 = shalt.err (!%p10769_p4)
}
  0x2b   :  { %s10773_s13 = scalar_lea.vmem %s24_s28, 512  ;;  %p10778_p6 = scmp.lt.s32.totalorder %s24_s28, %s24_s28 }
  0x2c   :  { %p10774_p5 = scmp.ne.s32.totalorder %s24_s28, %s10773_s13  ;;  %p10779_p7 = scmp.lt.s32.totalorder %s10773_s13, %s10773_s13 }
  0x2e   :  { %p10780_p8 = por %p10779_p7, %p10778_p6 }
  0x30   :  { %p10781_p9 = pnand %p10780_p8, %p10774_p5 }
  0x32   :  { %10784 = shalt.err (!%p10781_p9)
}
  0x33   :  { %s10864_s4 = smov 256   ;;  %s10865_s27 = smov 16  }
  0x34   :  { %29 = dma.hbm_to_vmem [thread:$0]  %s11342_s1, 512, %s24_s28, [#allocation4], %s10864_s4, %s10864_s4, %s10865_s27  }
  0x35   :  { %s10866_s16 = smov [#allocation7]   ;;  %s10867_s18 = smov [#allocation10]  }
  0x36   :  { %s46_s17 = sshll.u32 %s10866_s16, 4  ;;  %s68_s19 = sshll.u32 %s10867_s18, 4  ;;  %s47_s17 = int_to_ptr.vmem [resolvable:$true] %s46_s17  ;;  %s69_s19 = int_to_ptr.vmem [resolvable:$true] %s68_s19 }
  0x37   :  { %s10785_s22 = scalar_lea.hbm %s11344_s3, 16 }
  0x38   :  { %p10786_p10 = scmp.ne.s32.totalorder %s11344_s3, %s10785_s22  ;;  %p10789_p11 = scmp.lt.u32.totalorder %s10785_s22, %s11344_s3 }
  0x3a   :  { %p10791_p12 = pnand %p10789_p11, %p10786_p10 }
  0x3c   :  { %10794 = shalt.err (!%p10791_p12)
}
  0x3d   :  { %s10795_s1 = scalar_lea.vmem %s47_s17, 16  ;;  %s10799_s26 = scalar_lea.vmem %s47_s17, 32 }
  0x3e   :  { %p10796_p13 = scmp.ne.s32.totalorder %s47_s17, %s10795_s1  ;;  %p10800_p0 = scmp.lt.s32.totalorder %s47_s17, %s47_s17 }
  0x3f   :  { %p10801_p1 = scmp.lt.s32.totalorder %s10799_s26, %s10795_s1 }
  0x41   :  { %p10802_p2 = por %p10801_p1, %p10800_p0 }
  0x43   :  { %p10803_p3 = pnand %p10802_p2, %p10796_p13 }
  0x45   :  { %10806 = shalt.err (!%p10803_p3)
}
  0x46   :  { %49 = dma.hbm_to_vmem [thread:$0]  %s11344_s3, 16, %s47_s17, [#allocation6]  }
  0x47   :  { %s10807_s9 = scalar_lea.hbm %s11346_s5, 128 }
  0x48   :  { %p10808_p4 = scmp.ne.s32.totalorder %s11346_s5, %s10807_s9  ;;  %p10811_p5 = scmp.lt.u32.totalorder %s10807_s9, %s11346_s5 }
  0x4a   :  { %p10813_p6 = pnand %p10811_p5, %p10808_p4 }
  0x4c   :  { %10816 = shalt.err (!%p10813_p6)
}
  0x4d   :  { %s10817_s4 = scalar_lea.vmem %s69_s19, 128  ;;  %p10822_p8 = scmp.lt.s32.totalorder %s69_s19, %s69_s19 }
  0x4e   :  { %p10818_p7 = scmp.ne.s32.totalorder %s69_s19, %s10817_s4  ;;  %p10823_p9 = scmp.lt.s32.totalorder %s10817_s4, %s10817_s4 }
  0x50   :  { %p10824_p10 = por %p10823_p9, %p10822_p8 }
  0x52   :  { %p10825_p11 = pnand %p10824_p10, %p10818_p7 }
  0x54   :  { %10828 = shalt.err (!%p10825_p11)
}
  0x55   :  { %71 = dma.hbm_to_vmem [thread:$0]  %s11346_s5, 128, %s69_s19, [#allocation9]  }
  0x56   :  { %s10868_s14 = smov [#allocation11]   ;;  %s10829_s18 = scalar_lea.hbm %s11347_s6, 8192 }
  0x57   :  { %s77_s15 = sshll.u32 %s10868_s14, 4  ;;  %p10830_p12 = scmp.ne.s32.totalorder %s11347_s6, %s10829_s18  ;;  %s78_s15 = int_to_ptr.vmem [resolvable:$true] %s77_s15 }
  0x58   :  { %p10833_p13 = scmp.lt.u32.totalorder %s10829_s18, %s11347_s6 }
  0x5a   :  { %p10835_p0 = pnand %p10833_p13, %p10830_p12 }
  0x5c   :  { %10838 = shalt.err (!%p10835_p0)
}
  0x5d   :  { %s10839_s23 = scalar_lea.vmem %s78_s15, 8192  ;;  %p10844_p2 = scmp.lt.s32.totalorder %s78_s15, %s78_s15 }
  0x5e   :  { %p10840_p1 = scmp.ne.s32.totalorder %s78_s15, %s10839_s23  ;;  %p10845_p3 = scmp.lt.s32.totalorder %s10839_s23, %s10839_s23 }
  0x60   :  { %p10846_p4 = por %p10845_p3, %p10844_p2 }
  0x62   :  { %p10847_p5 = pnand %p10846_p4, %p10840_p1 }
  0x64   :  { %10850 = shalt.err (!%p10847_p5)
}
  0x65   :  { %s10869_s5 = smov 64   ;;  %s10870_s19 = smov 4  }
  0x66   :  { %83 = dma.hbm_to_vmem [thread:$0]  %s11347_s6, 8192, %s78_s15, [#allocation12], %s10869_s5, %s10869_s5, %s10870_s19  }
  0x67   :  { %10851 = dma.done.wait [#allocation4], 512  }
  0x68   :  { %10852 = vsyncadd [#allocation4], 4294966784 }
  0x69   :  { %10853 = dma.done.wait [#allocation6], 144  }
  0x6a   :  { %10854 = vsyncadd [#allocation6], 4294967152 }
  0x6b   :  { %10855 = dma.done.wait [#allocation9], 131200  }
  0x6c   :  { %10856 = vsyncadd [#allocation9], 4294836096 }
  0x6d   :  { %10857 = dma.done.wait [#allocation12], 8192  }
  0x6e   :  { %10858 = vsyncadd [#allocation12], 4294959104  ;;  %vm108_vm0 = vcmask 556032   ;;  %v107_v0 = vld [vmem:[%s11341_s0 + $0x8] sm:$0xff]  ;;  %v106_v1 = vld [vmem:[%s11341_s0] sm:$0xff]  ;;  %vm201_vm1 = vcmask 64512   ;;  %v296_v51 = vlaneseq }
  0x6f   :  { %v103_v2 = vld [vmem:[#allocation3 + $0x8] sm:$0xff]  ;;  %8933 = vmatprep.subr.msk.mxu0 %vm108_vm0, %v107_v0  ;;  %v102_v3 = vld [vmem:[#allocation3] sm:$0xff]  ;;  %v105_v5 = vld [vmem:[#allocation3 + $0x18] sm:$0xff]  ;;  %v10871_v49 = vmov 1966171168   ;;  %vm286_vm2 = vcmask 1040384  }
  0x70   :  { %8934 = vmatprep.mubr.msk.f32.mxu0 %vm108_vm0, %v103_v2  ;;  %119 = vmatpush1.xpose.msra.mxu0 %v106_v1  ;;  %v193_v4 = vld [vmem:[#allocation5] sm:$0xff]  ;;  %v104_v6 = vld [vmem:[#allocation3 + $0x10] sm:$0xff]  ;;  %v8949_v7 = vld [vmem:[%s11341_s0 + $0x18] sm:$0xff]  ;;  %v294_v50 = vunpack.c.l.s4 %v10871_v49  ;;  %v11021_v54 = vshrl.u32 %v296_v51, 7  ;;  %vm287_vm3 = vsmask.f32 256 }
  0x71   :  { %10446 = vmatprep.subr.mxu1 %v193_v4  ;;  %10451 = vmatprep.subr.mxu0 %v193_v4  ;;  %v8948_v10 = vld [vmem:[%s11341_s0 + $0x10] sm:$0xff]  ;;  %v766_v13 = vld [vmem:[#allocation8] sm:$0xff]  ;;  %v11011_v15 = vld [vmem:[#allocation8 + $0x8] sm:$0xff]  ;;  %vm644_vm5 = vsmask.f32 7938 }
  0x72   :  { %10447 = vmatpush3.msra.mxu1 %v193_v4  ;;  %v770_v14 = vld [vmem:[#allocation8 + $0x20] sm:$0xff]  ;;  %v11013_v18 = vld [vmem:[#allocation8 + $0x28] sm:$0xff]  ;;  %v11019_v52 = vld [vmem:[#allocation7] ss:$0 sm:$0xff]  ;;  %v295_v53 = vunpack.c.0.s8 %v294_v50 }
  0x73   :  { %183 = vmatmul.mubr.f32.vlgmr.msra.gmra.mrb[0].mxu0 %v102_v3  ;;  %8950 = vmatprep.subr.msk.mxu1 %vm108_vm0, %v8949_v7  ;;  %v8957_v16 = vcombine.low %v766_v13, %v770_v14  ;;  %v8958_v17 = vcombine.high %v766_v13, %v770_v14  ;;  %v774_v19 = vld [vmem:[#allocation8 + $0x40] sm:$0xff]  ;;  %v8959_v21 = vcombine.low %v11011_v15, %v11013_v18  ;;  %v775_v63 = vld [vmem:[#allocation8 + $0x48] sm:$0xff]  ;;  %vm11029_vm4 = vmand %vm286_vm2, %vm287_vm3 }
  0x74   :  { %8935 = vmatprep.mubr.msk.f32.mxu0 %vm108_vm0, %v105_v5  ;;  %10452 = vmatpush3.msra.mxu0 %v193_v4  ;;  %v778_v20 = vld [vmem:[#allocation8 + $0x60] sm:$0xff]  ;;  %v8960_v22 = vcombine.high %v11011_v15, %v11013_v18  ;;  %v11026_v60 = vsub.s32 %v295_v53, %v11021_v54  ;;  %v779_v0 = vld [vmem:[#allocation8 + $0x68] sm:$0xff]  ;;  %v439_v53 = vld [vmem:[#allocation2 + $0xf] sm:$0x1] }
  0x75   :  { %v8966_v23 = vcombine.high %v774_v19, %v778_v20  ;;  %v782_v24 = vld [vmem:[#allocation8 + $0x80] sm:$0xff]  ;;  %v8965_v26 = vcombine.low %v774_v19, %v778_v20  ;;  %v8968_v7 = vcombine.high %v775_v63, %v779_v0  ;;  %v8967_v19 = vcombine.low %v775_v63, %v779_v0  ;;  %v11044_v20 = vld [vmem:[#allocation8 + $0xc8] sm:$0xff]  ;;  %vm11111_vm6 = vmand %vm286_vm2, %vm644_vm5 }
  0x76   :  { %v786_v25 = vld [vmem:[#allocation8 + $0xa0] sm:$0xff]  ;;  %7396 = vmatprep.subr.bf16.mxu0 %v8960_v22  ;;  %v11046_v22 = vld [vmem:[#allocation8 + $0xe8] sm:$0xff] }
  0x77   :  { %188 = vmatmul.mubr.f32.gmra.mrb[2].mxu0 %v104_v6  ;;  %v8974_v27 = vcombine.high %v782_v24, %v786_v25  ;;  %v790_v28 = vld [vmem:[#allocation8 + $0xc0] sm:$0xff]  ;;  %v8973_v30 = vcombine.low %v782_v24, %v786_v25  ;;  %v402_v24 = vld [vmem:[#allocation2 + $0xa] sm:$0x1]  ;;  %v416_v25 = vld [vmem:[#allocation2 + $0xc] sm:$0x1] }
  0x78   :  { %v794_v29 = vld [vmem:[#allocation8 + $0xe0] sm:$0xff]  ;;  %v334_v49 = vld [vmem:[#allocation2 + $0x3] sm:$0x1]  ;;  %v348_v50 = vld [vmem:[#allocation2 + $0x5] sm:$0x1] }
  0x79   :  { %v8982_v31 = vcombine.high %v790_v28, %v794_v29  ;;  %v798_v32 = vld [vmem:[#allocation8 + $0x100] sm:$0xff]  ;;  %v8981_v34 = vcombine.low %v790_v28, %v794_v29  ;;  %v799_v0 = vld [vmem:[#allocation8 + $0x108] sm:$0xff] }
  0x7a   :  { %v802_v33 = vld [vmem:[#allocation8 + $0x120] sm:$0xff] }
  0x7b   :  { %v8990_v35 = vcombine.high %v798_v32, %v802_v33  ;;  %v806_v36 = vld [vmem:[#allocation8 + $0x140] sm:$0xff]  ;;  %v8989_v38 = vcombine.low %v798_v32, %v802_v33 }
  0x7c   :  { %v810_v37 = vld [vmem:[#allocation8 + $0x160] sm:$0xff] }
  0x7d   :  { %v8998_v39 = vcombine.high %v806_v36, %v810_v37  ;;  %v814_v40 = vld [vmem:[#allocation8 + $0x180] sm:$0xff]  ;;  %v8997_v42 = vcombine.low %v806_v36, %v810_v37  ;;  %v411_v36 = vld [vmem:[#allocation2 + $0xb] sm:$0x1]  ;;  %v339_v37 = vld [vmem:[#allocation2 + $0x4] sm:$0x1] }
  0x7e   :  { %v818_v41 = vld [vmem:[#allocation8 + $0x1a0] sm:$0xff] }
  0x7f   :  { %v9006_v43 = vcombine.high %v814_v40, %v818_v41  ;;  %v822_v44 = vld [vmem:[#allocation8 + $0x1c0] sm:$0xff]  ;;  %v9005_v46 = vcombine.low %v814_v40, %v818_v41 }
  0x80   :  { %v826_v45 = vld [vmem:[#allocation8 + $0x1e0] sm:$0xff] }
  0x81   :  { %v9014_v47 = vcombine.high %v822_v44, %v826_v45  ;;  %v9013_v48 = vcombine.low %v822_v44, %v826_v45  ;;  %v430_v44 = vld [vmem:[#allocation2 + $0xe] sm:$0x1] }
 0x146   :  { %v184_v8 = vpop.f32.mrb[0].mxu0 }
 0x147   :  { %v186_v9 = vpop.f32.mrb[1].mxu0  ;;  %10448 = vmatprep.mubr.msk.f32.mxu1 %vm201_vm1, %v184_v8  ;;  %v11035_v8 = vld [vmem:[#allocation8 + $0x88] sm:$0xff] }
 0x148   :  { %v11037_v9 = vld [vmem:[#allocation8 + $0xa8] sm:$0xff] }
 0x149   :  { %v8975_v28 = vcombine.low %v11035_v8, %v11037_v9  ;;  %v8976_v29 = vcombine.high %v11035_v8, %v11037_v9  ;;  %v8983_v9 = vcombine.low %v11044_v20, %v11046_v22 }
 0x14a   :  { %v189_v11 = vpop.f32.mrb[2].mxu0 }
 0x14b   :  { %v191_v12 = vpop.f32.mrb[3].mxu0  ;;  %10449 = vmatmul.mubr.msk.f32.vlgmr.msra.gmra.mrb[0].mxu1 %vm201_vm1, %v189_v11 }
 0x14c   :  { %459 = vmatpush1.xpose.msra.mxu1 %v8948_v10  ;;  %8951 = vmatprep.mubr.msk.f32.mxu1 %vm108_vm0, %v103_v2  ;;  %v381_v10 = vld [vmem:[#allocation2 + $0x8] sm:$0x1] }
 0x14d   :  { %7068 = vmatprep.subr.bf16.mxu1 %v8958_v17 }
 0x14f   :  { %523 = vmatmul.mubr.f32.vlgmr.msra.gmra.mrb[2].mxu1 %v102_v3  ;;  %v289_v3 = vld [vmem:[#allocation2] sm:$0x1] }
 0x150   :  { %8952 = vmatprep.mubr.msk.f32.mxu1 %vm108_vm0, %v105_v5  ;;  %7069 = vmatpush1.bf16.msra.mxu1 %v8957_v16 }
 0x151   :  { %7070 = vmatprep.subr.bf16.mxu1 %v8966_v23  ;;  %v390_v23 = vld [vmem:[#allocation2 + $0x9] sm:$0x1] }
 0x153   :  { %528 = vmatmul.mubr.f32.gmra.mrb[4].mxu1 %v104_v6 }
 0x154   :  { %7071 = vmatpush1.bf16.msra.mxu1 %v8965_v26 }
 0x155   :  { %7072 = vmatprep.subr.bf16.mxu1 %v8974_v27 }
 0x158   :  { %7073 = vmatpush1.bf16.msra.mxu1 %v8973_v30 }
 0x159   :  { %7074 = vmatprep.subr.bf16.mxu1 %v8982_v31 }
 0x15c   :  { %7075 = vmatpush1.bf16.msra.mxu1 %v8981_v34  ;;  %v313_v34 = vld [vmem:[#allocation2 + $0x1] sm:$0x1] }
 0x15d   :  { %7076 = vmatprep.subr.bf16.mxu1 %v8990_v35  ;;  %v325_v35 = vld [vmem:[#allocation2 + $0x2] sm:$0x1] }
 0x160   :  { %7077 = vmatpush1.bf16.msra.mxu1 %v8989_v38  ;;  %v8984_v38 = vcombine.high %v11044_v20, %v11046_v22  ;;  %v823_v22 = vld [vmem:[#allocation8 + $0x1c8] sm:$0xff] }
 0x161   :  { %7078 = vmatprep.subr.bf16.mxu1 %v8998_v39 }
 0x164   :  { %7079 = vmatpush1.bf16.msra.mxu1 %v8997_v42 }
 0x165   :  { %7080 = vmatprep.subr.bf16.mxu1 %v9006_v43  ;;  %v425_v43 = vld [vmem:[#allocation2 + $0xd] sm:$0x1] }
 0x168   :  { %7081 = vmatpush1.bf16.msra.mxu1 %v9005_v46 }
 0x169   :  { %7082 = vmatprep.subr.bf16.mxu1 %v9014_v47 }
 0x16c   :  { %7083 = vmatpush1.bf16.msra.mxu1 %v9013_v48 }
 0x21e   :  { %v10450_v55 = vpop.f32.mrb[0].mxu1 }
 0x21f   :  { %v280_v56 = vadd.f32 %v10450_v55, %v11019_v52  ;;  %v274_v57 = vpop.f32.mrb[1].mxu1 }
 0x220   :  { %v275_v58 = vadd.f32 %v11019_v52, %v274_v57 }
 0x221   :  { %v284_v59 = vmax.f32 %v280_v56, 0.0 }
 0x222   :  { %v283_v61 = vmax.f32 %v275_v58, 0.0  ;;  %v524_v62 = vpop.f32.mrb[2].mxu1  ;;  %v353_v58 = vld [vmem:[#allocation2 + $0x6] sm:$0x1] }
 0x223   :  { %v8943_v2 = vpack.c.bf16 %v284_v59, %v284_v59  ;;  %v526_v4 = vpop.f32.mrb[3].mxu1  ;;  %10453 = vmatprep.mubr.msk.f32.mxu0 %vm201_vm1, %v524_v62 }
 0x224   :  { %v285_v5 = vpack.c.bf16 %v284_v59, %v283_v61 }
 0x225   :  { %v372_v6 = vrot.slane %v8943_v2, %v11026_v60  ;;  %v803_v2 = vld [vmem:[#allocation8 + $0x128] sm:$0xff] }
 0x226   :  { %v290_v11 = vsel %vm11029_vm4, %v285_v5, %v289_v3  ;;  %v299_v12 = vrot.slane %v285_v5, %v11026_v60  ;;  %v529_v13 = vpop.f32.mrb[4].mxu1  ;;  %v362_v5 = vld [vmem:[#allocation2 + $0x7] sm:$0x1] }
 0x227   :  { %v379_v14 = vrot.slane %v372_v6, %v11026_v60  ;;  %v393_v16 = vcombine.high %v372_v6, %v372_v6  ;;  %291 = vst [vmem:[#allocation2] sm:$0x1] %v290_v11  ;;  %v531_v17 = vpop.f32.mrb[5].mxu1  ;;  %10454 = vmatmul.mubr.msk.f32.vlgmr.msra.gmra.mrb[4].mxu0 %vm201_vm1, %v529_v13  ;;  %v811_v13 = vld [vmem:[#allocation8 + $0x168] sm:$0xff] }
 0x228   :  { %v306_v26 = vrot.slane %v299_v12, %v11026_v60  ;;  %v316_v27 = vcombine.high %v299_v12, %v299_v12  ;;  %7397 = vmatpush1.bf16.msra.mxu0 %v8959_v21  ;;  %v807_v12 = vld [vmem:[#allocation8 + $0x148] sm:$0xff] }
 0x229   :  { %v382_v30 = vsel %vm11029_vm4, %v379_v14, %v381_v10  ;;  %v385_v31 = vshrl.u32 %v379_v14, 16  ;;  %v400_v32 = vrot.slane %v393_v16, %v11026_v60  ;;  %v414_v33 = vcombine.high %v379_v14, %v379_v14  ;;  %7398 = vmatprep.subr.bf16.mxu0 %v8968_v7  ;;  %v815_v17 = vld [vmem:[#allocation8 + $0x188] sm:$0xff] }
 0x22a   :  { %383 = vst [vmem:[#allocation2 + $0x8] sm:$0x1] %v382_v30  ;;  %v308_v15 = vshrl.u32 %v306_v26, 16  ;;  %v323_v18 = vrot.slane %v316_v27, %v11026_v60  ;;  %v337_v21 = vcombine.high %v306_v26, %v306_v26  ;;  %v8992_v10 = vcombine.high %v799_v0, %v803_v2  ;;  %v830_v27 = vld [vmem:[#allocation8 + $0x200] sm:$0xff] }
 0x22b   :  { %v391_v39 = vsel %vm11029_vm4, %v385_v31, %v390_v23  ;;  %v403_v40 = vsel %vm11029_vm4, %v400_v32, %v402_v24  ;;  %v406_v41 = vshrl.u32 %v400_v32, 16  ;;  %v417_v42 = vsel %vm11029_vm4, %v414_v33, %v416_v25  ;;  %v827_v24 = vld [vmem:[#allocation8 + $0x1e8] sm:$0xff] }
 0x22c   :  { %392 = vst [vmem:[#allocation2 + $0x9] sm:$0x1] %v391_v39  ;;  %404 = vst [vmem:[#allocation2 + $0xa] sm:$0x1] %v403_v40  ;;  %v420_v45 = vshrl.u32 %v414_v33, 16  ;;  %v428_v46 = vcombine.high %v400_v32, %v400_v32  ;;  %v314_v47 = vsel %vm11029_vm4, %v308_v15, %v313_v34  ;;  %v326_v48 = vsel %vm11029_vm4, %v323_v18, %v325_v35  ;;  %v835_v31 = vld [vmem:[#allocation8 + $0x228] sm:$0xff] }
 0x22d   :  { %418 = vst [vmem:[#allocation2 + $0xc] sm:$0x1] %v417_v42  ;;  %7399 = vmatpush1.bf16.msra.mxu0 %v8967_v19  ;;  %v412_v51 = vsel %vm11029_vm4, %v406_v41, %v411_v36  ;;  %315 = vst [vmem:[#allocation2 + $0x1] sm:$0x1] %v314_v47  ;;  %v329_v55 = vshrl.u32 %v323_v18, 16  ;;  %v340_v56 = vsel %vm11029_vm4, %v337_v21, %v339_v37  ;;  %v343_v57 = vshrl.u32 %v337_v21, 16 }
 0x22e   :  { %327 = vst [vmem:[#allocation2 + $0x2] sm:$0x1] %v326_v48  ;;  %7400 = vmatprep.subr.bf16.mxu0 %v8976_v29  ;;  %413 = vst [vmem:[#allocation2 + $0xb] sm:$0x1] %v412_v51  ;;  %v426_v59 = vsel %vm11029_vm4, %v420_v45, %v425_v43  ;;  %v431_v61 = vsel %vm11029_vm4, %v428_v46, %v430_v44  ;;  %v434_v62 = vshrl.u32 %v428_v46, 16  ;;  %v819_v19 = vld [vmem:[#allocation8 + $0x1a8] sm:$0xff] }
 0x22f   :  { %341 = vst [vmem:[#allocation2 + $0x4] sm:$0x1] %v340_v56  ;;  %v351_v63 = vcombine.high %v323_v18, %v323_v18  ;;  %427 = vst [vmem:[#allocation2 + $0xd] sm:$0x1] %v426_v59  ;;  %v335_v3 = vsel %vm11029_vm4, %v329_v55, %v334_v49  ;;  %v349_v4 = vsel %vm11029_vm4, %v343_v57, %v348_v50  ;;  %v831_v29 = vld [vmem:[#allocation8 + $0x208] sm:$0xff]  ;;  %v838_v35 = vld [vmem:[#allocation8 + $0x240] sm:$0xff] }
 0x230   :  { %432 = vst [vmem:[#allocation2 + $0xe] sm:$0x1] %v431_v61  ;;  %v440_v6 = vsel %vm11029_vm4, %v434_v62, %v439_v53  ;;  %336 = vst [vmem:[#allocation2 + $0x3] sm:$0x1] %v335_v3  ;;  %v8991_v14 = vcombine.low %v799_v0, %v803_v2  ;;  %v9000_v16 = vcombine.high %v807_v12, %v811_v13  ;;  %v842_v36 = vld [vmem:[#allocation8 + $0x260] sm:$0xff]  ;;  %v839_v15 = vld [vmem:[#allocation8 + $0x248] sm:$0xff] }
 0x231   :  { %350 = vst [vmem:[#allocation2 + $0x5] sm:$0x1] %v349_v4  ;;  %v354_v7 = vsel %vm11029_vm4, %v351_v63, %v353_v58  ;;  %v357_v8 = vshrl.u32 %v351_v63, 16  ;;  %7401 = vmatpush1.bf16.msra.mxu0 %v8975_v28  ;;  %441 = vst [vmem:[#allocation2 + $0xf] sm:$0x1] %v440_v6  ;;  %v8999_v23 = vcombine.low %v807_v12, %v811_v13  ;;  %v834_v28 = vld [vmem:[#allocation8 + $0x220] sm:$0xff] }
 0x232   :  { %355 = vst [vmem:[#allocation2 + $0x6] sm:$0x1] %v354_v7  ;;  %7402 = vmatprep.subr.bf16.mxu0 %v8984_v38  ;;  %v9008_v20 = vcombine.high %v815_v17, %v819_v19  ;;  %v9007_v25 = vcombine.low %v815_v17, %v819_v19  ;;  %v9016_v1 = vcombine.high %v823_v22, %v827_v24  ;;  %v843_v21 = vld [vmem:[#allocation8 + $0x268] sm:$0xff]  ;;  %v846_v40 = vld [vmem:[#allocation8 + $0x280] sm:$0xff] }
 0x233   :  { %v363_v11 = vsel %vm11029_vm4, %v357_v8, %v362_v5  ;;  %v9015_v26 = vcombine.low %v823_v22, %v827_v24  ;;  %v9022_v30 = vcombine.high %v830_v27, %v834_v28  ;;  %v9021_v32 = vcombine.low %v830_v27, %v834_v28  ;;  %v850_v41 = vld [vmem:[#allocation8 + $0x2a0] sm:$0xff]  ;;  %v847_v42 = vld [vmem:[#allocation8 + $0x288] sm:$0xff] }
 0x234   :  { %364 = vst [vmem:[#allocation2 + $0x7] sm:$0x1] %v363_v11  ;;  %v9023_v33 = vcombine.low %v831_v29, %v835_v31  ;;  %v9024_v34 = vcombine.high %v831_v29, %v835_v31  ;;  %v9030_v18 = vcombine.high %v838_v35, %v842_v36  ;;  %v9029_v37 = vcombine.low %v838_v35, %v842_v36  ;;  %v851_v44 = vld [vmem:[#allocation8 + $0x2a8] sm:$0xff]  ;;  %v854_v48 = vld [vmem:[#allocation8 + $0x2c0] sm:$0xff] }
 0x235   :  { %7403 = vmatpush1.bf16.msra.mxu0 %v8983_v9  ;;  %7084 = vmatprep.subr.bf16.mxu1 %v9022_v30  ;;  %v9031_v38 = vcombine.low %v839_v15, %v843_v21  ;;  %v9032_v39 = vcombine.high %v839_v15, %v843_v21  ;;  %v9038_v43 = vcombine.high %v846_v40, %v850_v41  ;;  %v858_v49 = vld [vmem:[#allocation8 + $0x2e0] sm:$0xff]  ;;  %v855_v50 = vld [vmem:[#allocation8 + $0x2c8] sm:$0xff] }
 0x236   :  { %7404 = vmatprep.subr.bf16.mxu0 %v8992_v10  ;;  %7085 = vmatpush1.bf16.msra.mxu1 %v9021_v32  ;;  %v9037_v45 = vcombine.low %v846_v40, %v850_v41  ;;  %v9039_v46 = vcombine.low %v847_v42, %v851_v44  ;;  %v9040_v47 = vcombine.high %v847_v42, %v851_v44  ;;  %v859_v53 = vld [vmem:[#allocation8 + $0x2e8] sm:$0xff]  ;;  %v862_v58 = vld [vmem:[#allocation8 + $0x300] sm:$0xff] }
 0x237   :  { %7086 = vmatprep.subr.bf16.mxu1 %v9030_v18  ;;  %v9046_v51 = vcombine.high %v854_v48, %v858_v49  ;;  %v9045_v55 = vcombine.low %v854_v48, %v858_v49  ;;  %v9047_v56 = vcombine.low %v855_v50, %v859_v53  ;;  %v9048_v57 = vcombine.high %v855_v50, %v859_v53  ;;  %v866_v59 = vld [vmem:[#allocation8 + $0x320] sm:$0xff]  ;;  %v863_v61 = vld [vmem:[#allocation8 + $0x308] sm:$0xff] }
 0x238   :  { %v9054_v62 = vcombine.high %v862_v58, %v866_v59  ;;  %v867_v63 = vld [vmem:[#allocation8 + $0x328] sm:$0xff]  ;;  %v9053_v0 = vcombine.low %v862_v58, %v866_v59  ;;  %v870_v4 = vld [vmem:[#allocation8 + $0x340] sm:$0xff] }
 0x239   :  { %7405 = vmatpush1.bf16.msra.mxu0 %v8991_v14  ;;  %v9055_v2 = vcombine.low %v863_v61, %v867_v63  ;;  %v9056_v3 = vcombine.high %v863_v61, %v867_v63  ;;  %v874_v5 = vld [vmem:[#allocation8 + $0x360] sm:$0xff]  ;;  %v871_v6 = vld [vmem:[#allocation8 + $0x348] sm:$0xff]  ;;  %v733_v61 = vld [vmem:[#allocation2 + $0xa] sm:$0x1] }
 0x23a   :  { %7406 = vmatprep.subr.bf16.mxu0 %v9000_v16  ;;  %7087 = vmatpush1.bf16.msra.mxu1 %v9029_v37  ;;  %v9061_v7 = vcombine.low %v870_v4, %v874_v5  ;;  %v9062_v8 = vcombine.high %v870_v4, %v874_v5  ;;  %v875_v9 = vld [vmem:[#allocation8 + $0x368] sm:$0xff]  ;;  %v878_v10 = vld [vmem:[#allocation8 + $0x380] sm:$0xff] }
 0x23b   :  { %7088 = vmatprep.subr.bf16.mxu1 %v9038_v43  ;;  %v882_v11 = vld [vmem:[#allocation8 + $0x3a0] sm:$0xff]  ;;  %v9063_v12 = vcombine.low %v871_v6, %v875_v9  ;;  %v9064_v13 = vcombine.high %v871_v6, %v875_v9  ;;  %v879_v16 = vld [vmem:[#allocation8 + $0x388] sm:$0xff] }
 0x23c   :  { %v9070_v14 = vcombine.high %v878_v10, %v882_v11  ;;  %v883_v17 = vld [vmem:[#allocation8 + $0x3a8] sm:$0xff]  ;;  %v886_v19 = vld [vmem:[#allocation8 + $0x3c0] sm:$0xff] }
 0x23d   :  { %7407 = vmatpush1.bf16.msra.mxu0 %v8999_v23  ;;  %v9072_v23 = vcombine.high %v879_v16, %v883_v17  ;;  %v887_v22 = vld [vmem:[#allocation8 + $0x3c8] sm:$0xff]  ;;  %v11092_v30 = vld [vmem:[#allocation8 + $0x400] sm:$0xff] }
 0x23e   :  { %7408 = vmatprep.subr.bf16.mxu0 %v9008_v20  ;;  %7089 = vmatpush1.bf16.msra.mxu1 %v9037_v45  ;;  %v890_v20 = vld [vmem:[#allocation8 + $0x3e0] sm:$0xff]  ;;  %v891_v24 = vld [vmem:[#allocation8 + $0x3e8] sm:$0xff] }
 0x23f   :  { %7090 = vmatprep.subr.bf16.mxu1 %v9046_v51  ;;  %v9080_v27 = vcombine.high %v887_v22, %v891_v24  ;;  %v9077_v28 = vcombine.low %v886_v19, %v890_v20  ;;  %v9079_v29 = vcombine.low %v887_v22, %v891_v24  ;;  %v11094_v31 = vld [vmem:[#allocation8 + $0x420] sm:$0xff]  ;;  %v11096_v32 = vld [vmem:[#allocation8 + $0x408] sm:$0xff] }
 0x240   :  { %v9085_v35 = vcombine.low %v11092_v30, %v11094_v31  ;;  %v649_v45 = vld [vmem:[#allocation2 + $0x1] sm:$0x1]  ;;  %v718_v49 = vld [vmem:[#allocation2 + $0x9] sm:$0x1]  ;;  %v646_v59 = vld [vmem:[#allocation2] sm:$0x1] }
 0x241   :  { %7409 = vmatpush1.bf16.msra.mxu0 %v9007_v25  ;;  %v9069_v25 = vcombine.low %v878_v10, %v882_v11  ;;  %v680_v22 = vld [vmem:[#allocation2 + $0x5] sm:$0x1] }
 0x242   :  { %7410 = vmatprep.subr.bf16.mxu0 %v9016_v1  ;;  %7091 = vmatpush1.bf16.msra.mxu1 %v9045_v55  ;;  %v9071_v1 = vcombine.low %v879_v16, %v883_v17  ;;  %v714_v55 = vld [vmem:[#allocation2 + $0x8] sm:$0x1] }
 0x243   :  { %7092 = vmatprep.subr.bf16.mxu1 %v9054_v62  ;;  %v737_v62 = vld [vmem:[#allocation2 + $0xb] sm:$0x1] }
 0x245   :  { %7411 = vmatpush1.bf16.msra.mxu0 %v9015_v26  ;;  %v9078_v26 = vcombine.high %v886_v19, %v890_v20  ;;  %v761_v19 = vld [vmem:[#allocation2 + $0xf] sm:$0x1] }
 0x246   :  { %7412 = vmatprep.subr.bf16.mxu0 %v9024_v34  ;;  %7093 = vmatpush1.bf16.msra.mxu1 %v9053_v0  ;;  %v11100_v34 = vld [vmem:[#allocation8 + $0x428] sm:$0xff] }
 0x247   :  { %7094 = vmatprep.subr.bf16.mxu1 %v9062_v8  ;;  %v9087_v36 = vcombine.low %v11096_v32, %v11100_v34  ;;  %v9088_v15 = vcombine.high %v11096_v32, %v11100_v34  ;;  %v749_v8 = vld [vmem:[#allocation2 + $0xd] sm:$0x1] }
 0x249   :  { %7413 = vmatpush1.bf16.msra.mxu0 %v9023_v33  ;;  %v9086_v33 = vcombine.high %v11092_v30, %v11094_v31 }
 0x24a   :  { %7414 = vmatprep.subr.bf16.mxu0 %v9032_v39  ;;  %7095 = vmatpush1.bf16.msra.mxu1 %v9061_v7  ;;  %v745_v7 = vld [vmem:[#allocation2 + $0xc] sm:$0x1] }
 0x24b   :  { %7096 = vmatprep.subr.bf16.mxu1 %v9070_v14  ;;  %v668_v14 = vld [vmem:[#allocation2 + $0x3] sm:$0x1] }
 0x24d   :  { %7415 = vmatpush1.bf16.msra.mxu0 %v9031_v38 }
 0x24e   :  { %7416 = vmatprep.subr.bf16.mxu0 %v9040_v47  ;;  %7097 = vmatpush1.bf16.msra.mxu1 %v9069_v25 }
 0x24f   :  { %7098 = vmatprep.subr.bf16.mxu1 %v9078_v26  ;;  %v676_v26 = vld [vmem:[#allocation2 + $0x4] sm:$0x1] }
 0x251   :  { %7417 = vmatpush1.bf16.msra.mxu0 %v9039_v46 }
 0x252   :  { %7418 = vmatprep.subr.bf16.mxu0 %v9048_v57  ;;  %7099 = vmatpush1.bf16.msra.mxu1 %v9077_v28  ;;  %v757_v28 = vld [vmem:[#allocation2 + $0xe] sm:$0x1] }
 0x253   :  { %7109 = vmatprep.subr.bf16.mxu1 %v9086_v33 }
 0x255   :  { %7419 = vmatpush1.bf16.msra.mxu0 %v9047_v56 }
 0x256   :  { %7420 = vmatprep.subr.bf16.mxu0 %v9056_v3 }
 0x259   :  { %7421 = vmatpush1.bf16.msra.mxu0 %v9055_v2 }
 0x25a   :  { %7422 = vmatprep.subr.bf16.mxu0 %v9064_v13  ;;  %v664_v13 = vld [vmem:[#allocation2 + $0x2] sm:$0x1] }
 0x25d   :  { %7423 = vmatpush1.bf16.msra.mxu0 %v9063_v12 }
 0x25e   :  { %7424 = vmatprep.subr.bf16.mxu0 %v9072_v23 }
 0x261   :  { %7425 = vmatpush1.bf16.msra.mxu0 %v9071_v1 }
 0x262   :  { %7426 = vmatprep.subr.bf16.mxu0 %v9080_v27 }
 0x265   :  { %7427 = vmatpush1.bf16.msra.mxu0 %v9079_v29 }
 0x266   :  { %7437 = vmatprep.subr.bf16.mxu0 %v9088_v15 }
 0x2fa   :  { %v10455_v18 = vpop.f32.mrb[4].mxu0 }
 0x2fb   :  { %v619_v21 = vadd.f32 %v10455_v18, %v11019_v52  ;;  %v613_v37 = vpop.f32.mrb[5].mxu0  ;;  %v692_v18 = vld [vmem:[#allocation2 + $0x7] sm:$0x1] }
 0x2fc   :  { %v614_v38 = vadd.f32 %v11019_v52, %v613_v37 }
 0x2fd   :  { %v623_v39 = vmax.f32 %v619_v21, 0.0 }
 0x2fe   :  { %v622_v40 = vmax.f32 %v614_v38, 0.0  ;;  %v688_v38 = vld [vmem:[#allocation2 + $0x6] sm:$0x1] }
 0x2ff   :  { %v8956_v42 = vpack.c.bf16 %v623_v39, %v623_v39 }
 0x300   :  { %v624_v43 = vpack.c.bf16 %v623_v39, %v622_v40 }
 0x301   :  { %v702_v44 = vrot.slane %v8956_v42, %v11026_v60 }
 0x302   :  { %v632_v46 = vrot.slane %v624_v43, %v11026_v60  ;;  %v650_v47 = vsel %vm11111_vm6, %v624_v43, %v649_v45  ;;  %v906_v45 = vld [vmem:[#allocation8 + $0x460] sm:$0xff] }
 0x303   :  { %v709_v48 = vrot.slane %v702_v44, %v11026_v60  ;;  %v721_v52 = vcombine.high %v702_v44, %v702_v44  ;;  %651 = vst [vmem:[#allocation2 + $0x1] sm:$0x1] %v650_v47  ;;  %v902_v44 = vld [vmem:[#allocation8 + $0x440] sm:$0xff]  ;;  %v907_v47 = vld [vmem:[#allocation8 + $0x468] sm:$0xff] }
 0x304   :  { %v639_v50 = vrot.slane %v632_v46, %v11026_v60  ;;  %v652_v51 = vcombine.high %v632_v46, %v632_v46  ;;  %v903_v46 = vld [vmem:[#allocation8 + $0x448] sm:$0xff] }
 0x305   :  { %v711_v53 = vshll.u32 %v709_v48, 16  ;;  %v719_v56 = vsel %vm11111_vm6, %v709_v48, %v718_v49  ;;  %v728_v57 = vrot.slane %v721_v52, %v11026_v60  ;;  %v740_v58 = vcombine.high %v709_v48, %v709_v48  ;;  %v910_v49 = vld [vmem:[#allocation8 + $0x480] sm:$0xff] }
 0x306   :  { %720 = vst [vmem:[#allocation2 + $0x9] sm:$0x1] %v719_v56  ;;  %v641_v63 = vshll.u32 %v639_v50, 16  ;;  %v659_v0 = vrot.slane %v652_v51, %v11026_v60  ;;  %v671_v2 = vcombine.high %v639_v50, %v639_v50  ;;  %v9094_v50 = vcombine.high %v902_v44, %v906_v45  ;;  %v915_v56 = vld [vmem:[#allocation8 + $0x4a8] sm:$0xff] }
 0x307   :  { %v715_v3 = vsel %vm11111_vm6, %v711_v53, %v714_v55  ;;  %v730_v4 = vshll.u32 %v728_v57, 16  ;;  %v738_v5 = vsel %vm11111_vm6, %v728_v57, %v737_v62  ;;  %v742_v6 = vshll.u32 %v740_v58, 16  ;;  %v914_v53 = vld [vmem:[#allocation8 + $0x4a0] sm:$0xff]  ;;  %v911_v55 = vld [vmem:[#allocation8 + $0x488] sm:$0xff] }
 0x308   :  { %716 = vst [vmem:[#allocation2 + $0x8] sm:$0x1] %v715_v3  ;;  %739 = vst [vmem:[#allocation2 + $0xb] sm:$0x1] %v738_v5  ;;  %v750_v9 = vsel %vm11111_vm6, %v740_v58, %v749_v8  ;;  %v752_v10 = vcombine.high %v728_v57, %v728_v57  ;;  %v647_v11 = vsel %vm11111_vm6, %v641_v63, %v646_v59  ;;  %v661_v12 = vshll.u32 %v659_v0, 16  ;;  %v918_v62 = vld [vmem:[#allocation8 + $0x4c0] sm:$0xff] }
 0x309   :  { %v734_v16 = vsel %vm11111_vm6, %v730_v4, %v733_v61  ;;  %v746_v17 = vsel %vm11111_vm6, %v742_v6, %v745_v7  ;;  %751 = vst [vmem:[#allocation2 + $0xd] sm:$0x1] %v750_v9  ;;  %648 = vst [vmem:[#allocation2] sm:$0x1] %v647_v11  ;;  %v669_v23 = vsel %vm11111_vm6, %v659_v0, %v668_v14  ;;  %v673_v20 = vshll.u32 %v671_v2, 16  ;;  %v922_v63 = vld [vmem:[#allocation8 + $0x4e0] sm:$0xff] }
 0x30a   :  { %735 = vst [vmem:[#allocation2 + $0xa] sm:$0x1] %v734_v16  ;;  %747 = vst [vmem:[#allocation2 + $0xc] sm:$0x1] %v746_v17  ;;  %v754_v24 = vshll.u32 %v752_v10, 16  ;;  %v762_v25 = vsel %vm11111_vm6, %v752_v10, %v761_v19  ;;  %v665_v1 = vsel %vm11111_vm6, %v661_v12, %v664_v13  ;;  %v681_v27 = vsel %vm11111_vm6, %v671_v2, %v680_v22  ;;  %v923_v2 = vld [vmem:[#allocation8 + $0x4e8] sm:$0xff] }
 0x30b   :  { %670 = vst [vmem:[#allocation2 + $0x3] sm:$0x1] %v669_v23  ;;  %763 = vst [vmem:[#allocation2 + $0xf] sm:$0x1] %v762_v25  ;;  %v677_v29 = vsel %vm11111_vm6, %v673_v20, %v676_v26  ;;  %v683_v33 = vcombine.high %v659_v0, %v659_v0  ;;  %v9096_v51 = vcombine.high %v903_v46, %v907_v47  ;;  %v919_v0 = vld [vmem:[#allocation8 + $0x4c8] sm:$0xff]  ;;  %v934_v9 = vld [vmem:[#allocation8 + $0x540] sm:$0xff] }
 0x30c   :  { %666 = vst [vmem:[#allocation2 + $0x2] sm:$0x1] %v665_v1  ;;  %682 = vst [vmem:[#allocation2 + $0x5] sm:$0x1] %v681_v27  ;;  %v758_v15 = vsel %vm11111_vm6, %v754_v24, %v757_v28  ;;  %v9093_v57 = vcombine.low %v902_v44, %v906_v45  ;;  %v9095_v58 = vcombine.low %v903_v46, %v907_v47  ;;  %v927_v3 = vld [vmem:[#allocation8 + $0x508] sm:$0xff]  ;;  %v938_v10 = vld [vmem:[#allocation8 + $0x560] sm:$0xff] }
 0x30d   :  { %678 = vst [vmem:[#allocation2 + $0x4] sm:$0x1] %v677_v29  ;;  %759 = vst [vmem:[#allocation2 + $0xe] sm:$0x1] %v758_v15  ;;  %v685_v21 = vshll.u32 %v683_v33, 16  ;;  %v693_v37 = vsel %vm11111_vm6, %v683_v33, %v692_v18  ;;  %v9102_v59 = vcombine.high %v910_v49, %v914_v53  ;;  %v9104_v61 = vcombine.high %v911_v55, %v915_v56  ;;  %v931_v4 = vld [vmem:[#allocation8 + $0x528] sm:$0xff] }
 0x30e   :  { %694 = vst [vmem:[#allocation2 + $0x7] sm:$0x1] %v693_v37  ;;  %v9101_v30 = vcombine.low %v910_v49, %v914_v53  ;;  %v9103_v31 = vcombine.low %v911_v55, %v915_v56  ;;  %v9110_v32 = vcombine.high %v918_v62, %v922_v63  ;;  %v9112_v34 = vcombine.high %v919_v0, %v923_v2  ;;  %v935_v11 = vld [vmem:[#allocation8 + $0x548] sm:$0xff]  ;;  %v942_v19 = vld [vmem:[#allocation8 + $0x580] sm:$0xff] }
 0x30f   :  { %v689_v39 = vsel %vm11111_vm6, %v685_v21, %v688_v38  ;;  %v9109_v5 = vcombine.low %v918_v62, %v922_v63  ;;  %v9111_v6 = vcombine.low %v919_v0, %v923_v2  ;;  %v9120_v8 = vcombine.high %v927_v3, %v931_v4  ;;  %v939_v12 = vld [vmem:[#allocation8 + $0x568] sm:$0xff]  ;;  %v946_v23 = vld [vmem:[#allocation8 + $0x5a0] sm:$0xff] }
 0x310   :  { %690 = vst [vmem:[#allocation2 + $0x6] sm:$0x1] %v689_v39  ;;  %v9119_v14 = vcombine.low %v927_v3, %v931_v4  ;;  %v9126_v16 = vcombine.high %v934_v9, %v938_v10  ;;  %v9128_v17 = vcombine.high %v935_v11, %v939_v12  ;;  %v943_v20 = vld [vmem:[#allocation8 + $0x588] sm:$0xff]  ;;  %v9125_v24 = vcombine.low %v934_v9, %v938_v10  ;;  %v950_v27 = vld [vmem:[#allocation8 + $0x5c0] sm:$0xff] }
 0x311   :  { %v947_v22 = vld [vmem:[#allocation8 + $0x5a8] sm:$0xff]  ;;  %v9127_v25 = vcombine.low %v935_v11, %v939_v12  ;;  %v9134_v1 = vcombine.high %v942_v19, %v946_v23  ;;  %v954_v28 = vld [vmem:[#allocation8 + $0x5e0] sm:$0xff]  ;;  %v9133_v15 = vcombine.low %v942_v19, %v946_v23 }
 0x312   :  { %v9136_v26 = vcombine.high %v943_v20, %v947_v22  ;;  %v951_v29 = vld [vmem:[#allocation8 + $0x5c8] sm:$0xff]  ;;  %v9135_v18 = vcombine.low %v943_v20, %v947_v22  ;;  %v9142_v21 = vcombine.high %v950_v27, %v954_v28  ;;  %v958_v38 = vld [vmem:[#allocation8 + $0x600] sm:$0xff]  ;;  %v9141_v44 = vcombine.low %v950_v27, %v954_v28 }
 0x313   :  { %v955_v33 = vld [vmem:[#allocation8 + $0x5e8] sm:$0xff]  ;;  %v962_v39 = vld [vmem:[#allocation8 + $0x620] sm:$0xff] }
 0x314   :  { %v9144_v37 = vcombine.high %v951_v29, %v955_v33  ;;  %v9143_v45 = vcombine.low %v951_v29, %v955_v33  ;;  %v9150_v46 = vcombine.high %v958_v38, %v962_v39  ;;  %v966_v49 = vld [vmem:[#allocation8 + $0x640] sm:$0xff]  ;;  %v971_v53 = vld [vmem:[#allocation8 + $0x668] sm:$0xff]  ;;  %v9149_v55 = vcombine.low %v958_v38, %v962_v39 }
 0x315   :  { %v975_v62 = vld [vmem:[#allocation8 + $0x688] sm:$0xff] }
 0x316   :  { %v979_v63 = vld [vmem:[#allocation8 + $0x6a8] sm:$0xff] }
 0x317   :  { %v11153_v40 = vld [vmem:[#allocation2] sm:$0xff]  ;;  %v9167_v4 = vcombine.low %v975_v62, %v979_v63 }
 0x318   :  { %v1841_v42 = vrot.slane %v11153_v40, %v11026_v60  ;;  %v991_v9 = vld [vmem:[#allocation8 + $0x708] sm:$0xff] }
 0x319   :  { %v995_v10 = vld [vmem:[#allocation8 + $0x728] sm:$0xff] }
 0x31a   :  { %v1849_v43 = vcombine.high %v1841_v42, %v1841_v42  ;;  %v11161_v52 = vrot.slane %v1841_v42, %v11026_v60  ;;  %v959_v42 = vld [vmem:[#allocation8 + $0x608] sm:$0xff]  ;;  %v9183_v22 = vcombine.low %v991_v9, %v995_v10 }
 0x31b   :  { %v999_v19 = vld [vmem:[#allocation8 + $0x748] sm:$0xff] }
 0x31c   :  { %v11158_v48 = vrot.slane %v1849_v43, %v11026_v60  ;;  %v963_v43 = vld [vmem:[#allocation8 + $0x628] sm:$0xff] }
 0x31d   :  { %v9152_v47 = vcombine.high %v959_v42, %v963_v43  ;;  %v9151_v56 = vcombine.low %v959_v42, %v963_v43  ;;  %v1003_v23 = vld [vmem:[#allocation8 + $0x768] sm:$0xff]  ;;  %v1834_v42 = vcombine.high %v11153_v40, %v11153_v40 }
 0x31e   :  { %7100 = vmatprep.mubr.bf16.mxu1 %v11158_v48  ;;  %7428 = vmatprep.mubr.bf16.mxu0 %v11158_v48  ;;  %v11167_v41 = vcombine.high %v11158_v48, %v11158_v48  ;;  %v1007_v27 = vld [vmem:[#allocation8 + $0x788] sm:$0xff]  ;;  %v9191_v33 = vcombine.low %v999_v19, %v1003_v23 }
 0x31f   :  { %7101 = vmatmul.mubr.bf16.vlgmr.msra.gmra.mrb[8].mxu1 %v11161_v52  ;;  %7429 = vmatmul.mubr.bf16.vlgmr.msra.gmra.mrb[8].mxu0 %v11161_v52  ;;  %v1011_v28 = vld [vmem:[#allocation8 + $0x7a8] sm:$0xff] }
 0x320   :  { %7110 = vmatpush1.bf16.msra.mxu1 %v9085_v35  ;;  %7438 = vmatpush1.bf16.msra.mxu0 %v9087_v36  ;;  %v926_v35 = vld [vmem:[#allocation8 + $0x500] sm:$0xff]  ;;  %v1015_v38 = vld [vmem:[#allocation8 + $0x7c8] sm:$0xff] }
 0x321   :  { %7141 = vmatprep.mubr.bf16.mxu1 %v11167_v41  ;;  %7469 = vmatprep.mubr.bf16.mxu0 %v11167_v41  ;;  %v930_v36 = vld [vmem:[#allocation8 + $0x520] sm:$0xff]  ;;  %v1019_v39 = vld [vmem:[#allocation8 + $0x7e8] sm:$0xff] }
 0x322   :  { %7111 = vmatprep.subr.bf16.mxu1 %v9094_v50  ;;  %7439 = vmatprep.subr.bf16.mxu0 %v9096_v51  ;;  %v9118_v7 = vcombine.high %v926_v35, %v930_v36  ;;  %v9117_v13 = vcombine.low %v926_v35, %v930_v36  ;;  %v970_v50 = vld [vmem:[#allocation8 + $0x660] sm:$0xff]  ;;  %v967_v51 = vld [vmem:[#allocation8 + $0x648] sm:$0xff] }
 0x323   :  { %v9157_v0 = vcombine.low %v966_v49, %v970_v50  ;;  %v9159_v2 = vcombine.low %v967_v51, %v971_v53  ;;  %v983_v35 = vld [vmem:[#allocation8 + $0x6c8] sm:$0xff] }
 0x324   :  { %7112 = vmatpush1.bf16.msra.mxu1 %v9093_v57  ;;  %7440 = vmatpush1.bf16.msra.mxu0 %v9095_v58  ;;  %v9158_v57 = vcombine.high %v966_v49, %v970_v50  ;;  %v9160_v58 = vcombine.high %v967_v51, %v971_v53  ;;  %v987_v36 = vld [vmem:[#allocation8 + $0x6e8] sm:$0xff]  ;;  %v1026_v49 = vld [vmem:[#allocation8 + $0x820] sm:$0xff]  ;;  %v11182_v53 = vrot.slane %v1834_v42, %v11026_v60 }
 0x325   :  { %7113 = vmatprep.subr.bf16.mxu1 %v9102_v59  ;;  %7441 = vmatprep.subr.bf16.mxu0 %v9104_v61  ;;  %v974_v59 = vld [vmem:[#allocation8 + $0x680] sm:$0xff]  ;;  %v9175_v12 = vcombine.low %v983_v35, %v987_v36  ;;  %v1023_v50 = vld [vmem:[#allocation8 + $0x808] sm:$0xff] }
 0x326   :  { %v978_v61 = vld [vmem:[#allocation8 + $0x6a0] sm:$0xff]  ;;  %v1027_v51 = vld [vmem:[#allocation8 + $0x828] sm:$0xff] }
 0x327   :  { %v9165_v3 = vcombine.low %v974_v59, %v978_v61  ;;  %v1071_v42 = vld [vmem:[#allocation8 + $0x988] sm:$0xff] }
 0x328   :  { %7114 = vmatpush1.bf16.msra.mxu1 %v9101_v30  ;;  %7442 = vmatpush1.bf16.msra.mxu0 %v9103_v31  ;;  %v9166_v30 = vcombine.high %v974_v59, %v978_v61  ;;  %v9168_v31 = vcombine.high %v975_v62, %v979_v63  ;;  %v1030_v59 = vld [vmem:[#allocation8 + $0x840] sm:$0xff]  ;;  %v1031_v62 = vld [vmem:[#allocation8 + $0x848] sm:$0xff] }
 0x329   :  { %7115 = vmatprep.subr.bf16.mxu1 %v9110_v32  ;;  %7443 = vmatprep.subr.bf16.mxu0 %v9112_v34  ;;  %v982_v32 = vld [vmem:[#allocation8 + $0x6c0] sm:$0xff]  ;;  %v1035_v63 = vld [vmem:[#allocation8 + $0x868] sm:$0xff] }
 0x32a   :  { %v986_v34 = vld [vmem:[#allocation8 + $0x6e0] sm:$0xff] }
 0x32b   :  { %v9173_v11 = vcombine.low %v982_v32, %v986_v34  ;;  %v1034_v61 = vld [vmem:[#allocation8 + $0x860] sm:$0xff] }
 0x32c   :  { %7116 = vmatpush1.bf16.msra.mxu1 %v9109_v5  ;;  %7444 = vmatpush1.bf16.msra.mxu0 %v9111_v6  ;;  %v9174_v5 = vcombine.high %v982_v32, %v986_v34  ;;  %v9176_v6 = vcombine.high %v983_v35, %v987_v36  ;;  %v9222_v32 = vcombine.high %v1030_v59, %v1034_v61  ;;  %v1038_v35 = vld [vmem:[#allocation8 + $0x880] sm:$0xff] }
 0x32d   :  { %7117 = vmatprep.subr.bf16.mxu1 %v9118_v7  ;;  %7445 = vmatprep.subr.bf16.mxu0 %v9120_v8  ;;  %v990_v7 = vld [vmem:[#allocation8 + $0x700] sm:$0xff]  ;;  %v9224_v34 = vcombine.high %v1031_v62, %v1035_v63 }
 0x32e   :  { %v994_v8 = vld [vmem:[#allocation8 + $0x720] sm:$0xff] }
 0x32f   :  { %v9181_v20 = vcombine.low %v990_v7, %v994_v8  ;;  %v1042_v36 = vld [vmem:[#allocation8 + $0x8a0] sm:$0xff] }
 0x330   :  { %7118 = vmatpush1.bf16.msra.mxu1 %v9117_v13  ;;  %7446 = vmatpush1.bf16.msra.mxu0 %v9119_v14  ;;  %v9182_v13 = vcombine.high %v990_v7, %v994_v8  ;;  %v9184_v14 = vcombine.high %v991_v9, %v995_v10  ;;  %v9230_v7 = vcombine.high %v1038_v35, %v1042_v36  ;;  %v1046_v9 = vld [vmem:[#allocation8 + $0x8c0] sm:$0xff] }
 0x331   :  { %7119 = vmatprep.subr.bf16.mxu1 %v9126_v16  ;;  %7447 = vmatprep.subr.bf16.mxu0 %v9128_v17  ;;  %v998_v16 = vld [vmem:[#allocation8 + $0x740] sm:$0xff] }
 0x332   :  { %v1002_v17 = vld [vmem:[#allocation8 + $0x760] sm:$0xff] }
 0x333   :  { %v9189_v29 = vcombine.low %v998_v16, %v1002_v17  ;;  %v1050_v10 = vld [vmem:[#allocation8 + $0x8e0] sm:$0xff] }
 0x334   :  { %7120 = vmatpush1.bf16.msra.mxu1 %v9125_v24  ;;  %7448 = vmatpush1.bf16.msra.mxu0 %v9127_v25  ;;  %v9190_v24 = vcombine.high %v998_v16, %v1002_v17  ;;  %v9192_v25 = vcombine.high %v999_v19, %v1003_v23  ;;  %v9238_v16 = vcombine.high %v1046_v9, %v1050_v10  ;;  %v1054_v19 = vld [vmem:[#allocation8 + $0x900] sm:$0xff] }
 0x335   :  { %7121 = vmatprep.subr.bf16.mxu1 %v9134_v1  ;;  %7449 = vmatprep.subr.bf16.mxu0 %v9136_v26  ;;  %v1006_v1 = vld [vmem:[#allocation8 + $0x780] sm:$0xff] }
 0x336   :  { %v1010_v26 = vld [vmem:[#allocation8 + $0x7a0] sm:$0xff] }
 0x337   :  { %v9197_v43 = vcombine.low %v1006_v1, %v1010_v26  ;;  %v1058_v23 = vld [vmem:[#allocation8 + $0x920] sm:$0xff] }
 0x338   :  { %7122 = vmatpush1.bf16.msra.mxu1 %v9133_v15  ;;  %7450 = vmatpush1.bf16.msra.mxu0 %v9135_v18  ;;  %v9198_v15 = vcombine.high %v1006_v1, %v1010_v26  ;;  %v9200_v18 = vcombine.high %v1007_v27, %v1011_v28  ;;  %v9246_v1 = vcombine.high %v1054_v19, %v1058_v23 }
 0x339   :  { %7123 = vmatprep.subr.bf16.mxu1 %v9142_v21  ;;  %7451 = vmatprep.subr.bf16.mxu0 %v9144_v37  ;;  %v1014_v21 = vld [vmem:[#allocation8 + $0x7c0] sm:$0xff] }
 0x33a   :  { %v1018_v37 = vld [vmem:[#allocation8 + $0x7e0] sm:$0xff] }
 0x33c   :  { %7124 = vmatpush1.bf16.msra.mxu1 %v9141_v44  ;;  %7452 = vmatpush1.bf16.msra.mxu0 %v9143_v45  ;;  %v9199_v44 = vcombine.low %v1007_v27, %v1011_v28  ;;  %v9206_v45 = vcombine.high %v1014_v21, %v1018_v37  ;;  %v1062_v27 = vld [vmem:[#allocation8 + $0x940] sm:$0xff] }
 0x33d   :  { %7125 = vmatprep.subr.bf16.mxu1 %v9150_v46  ;;  %7453 = vmatprep.subr.bf16.mxu0 %v9152_v47  ;;  %v9208_v46 = vcombine.high %v1015_v38, %v1019_v39  ;;  %v1022_v47 = vld [vmem:[#allocation8 + $0x800] sm:$0xff] }
 0x33e   :  { %v9214_v40 = vcombine.high %v1022_v47, %v1026_v49  ;;  %v1066_v28 = vld [vmem:[#allocation8 + $0x960] sm:$0xff] }
 0x340   :  { %7126 = vmatpush1.bf16.msra.mxu1 %v9149_v55  ;;  %7454 = vmatpush1.bf16.msra.mxu0 %v9151_v56  ;;  %v9205_v55 = vcombine.low %v1014_v21, %v1018_v37  ;;  %v9207_v56 = vcombine.low %v1015_v38, %v1019_v39  ;;  %v9254_v21 = vcombine.high %v1062_v27, %v1066_v28  ;;  %v1070_v38 = vld [vmem:[#allocation8 + $0x980] sm:$0xff] }
 0x341   :  { %7127 = vmatprep.subr.bf16.mxu1 %v9158_v57  ;;  %7455 = vmatprep.subr.bf16.mxu0 %v9160_v58  ;;  %v9216_v57 = vcombine.high %v1023_v50, %v1027_v51  ;;  %v1850_v58 = vcombine.high %v11182_v53, %v11182_v53  ;;  %v1074_v39 = vld [vmem:[#allocation8 + $0x9a0] sm:$0xff] }
 0x344   :  { %7128 = vmatpush1.bf16.msra.mxu1 %v9157_v0  ;;  %7456 = vmatpush1.bf16.msra.mxu0 %v9159_v2  ;;  %v9213_v0 = vcombine.low %v1022_v47, %v1026_v49  ;;  %v11188_v2 = vcombine.high %v11161_v52, %v11161_v52  ;;  %v1078_v49 = vld [vmem:[#allocation8 + $0x9c0] sm:$0xff] }
 0x345   :  { %7129 = vmatprep.subr.bf16.mxu1 %v9166_v30  ;;  %7457 = vmatprep.subr.bf16.mxu0 %v9168_v31  ;;  %v9215_v30 = vcombine.low %v1023_v50, %v1027_v51  ;;  %v11191_v31 = vrot.slane %v1850_v58, %v11026_v60  ;;  %v1082_v50 = vld [vmem:[#allocation8 + $0x9e0] sm:$0xff]  ;;  %v1079_v51 = vld [vmem:[#allocation8 + $0x9c8] sm:$0xff] }
 0x348   :  { %7130 = vmatpush1.bf16.msra.mxu1 %v9165_v3  ;;  %7458 = vmatpush1.bf16.msra.mxu0 %v9167_v4  ;;  %v1039_v3 = vld [vmem:[#allocation8 + $0x888] sm:$0xff] }
 0x349   :  { %7131 = vmatprep.subr.bf16.mxu1 %v9174_v5  ;;  %7459 = vmatprep.subr.bf16.mxu0 %v9176_v6  ;;  %v1043_v4 = vld [vmem:[#allocation8 + $0x8a8] sm:$0xff]  ;;  %v9221_v5 = vcombine.low %v1030_v59, %v1034_v61  ;;  %v9223_v6 = vcombine.low %v1031_v62, %v1035_v63  ;;  %v1086_v59 = vld [vmem:[#allocation8 + $0xa00] sm:$0xff] }
 0x34a   :  { %v9232_v8 = vcombine.high %v1039_v3, %v1043_v4  ;;  %v1090_v61 = vld [vmem:[#allocation8 + $0xa20] sm:$0xff]  ;;  %v1087_v62 = vld [vmem:[#allocation8 + $0xa08] sm:$0xff] }
 0x34b   :  { %v1091_v63 = vld [vmem:[#allocation8 + $0xa28] sm:$0xff] }
 0x34c   :  { %7132 = vmatpush1.bf16.msra.mxu1 %v9173_v11  ;;  %7460 = vmatpush1.bf16.msra.mxu0 %v9175_v12  ;;  %v1047_v11 = vld [vmem:[#allocation8 + $0x8c8] sm:$0xff] }
 0x34d   :  { %7133 = vmatprep.subr.bf16.mxu1 %v9182_v13  ;;  %7461 = vmatprep.subr.bf16.mxu0 %v9184_v14  ;;  %v1051_v12 = vld [vmem:[#allocation8 + $0x8e8] sm:$0xff]  ;;  %v9229_v13 = vcombine.low %v1038_v35, %v1042_v36  ;;  %v9231_v14 = vcombine.low %v1039_v3, %v1043_v4  ;;  %v1094_v35 = vld [vmem:[#allocation8 + $0xa40] sm:$0xff] }
 0x34e   :  { %v9240_v17 = vcombine.high %v1047_v11, %v1051_v12  ;;  %v1098_v36 = vld [vmem:[#allocation8 + $0xa60] sm:$0xff]  ;;  %v1095_v3 = vld [vmem:[#allocation8 + $0xa48] sm:$0xff] }
 0x34f   :  { %v1099_v4 = vld [vmem:[#allocation8 + $0xa68] sm:$0xff] }
 0x350   :  { %7134 = vmatpush1.bf16.msra.mxu1 %v9181_v20  ;;  %7462 = vmatpush1.bf16.msra.mxu0 %v9183_v22  ;;  %v1055_v20 = vld [vmem:[#allocation8 + $0x908] sm:$0xff] }
 0x351   :  { %7135 = vmatprep.subr.bf16.mxu1 %v9190_v24  ;;  %7463 = vmatprep.subr.bf16.mxu0 %v9192_v25  ;;  %v1059_v22 = vld [vmem:[#allocation8 + $0x928] sm:$0xff]  ;;  %v9237_v24 = vcombine.low %v1046_v9, %v1050_v10  ;;  %v9239_v25 = vcombine.low %v1047_v11, %v1051_v12  ;;  %v1102_v9 = vld [vmem:[#allocation8 + $0xa80] sm:$0xff] }
 0x352   :  { %v9248_v26 = vcombine.high %v1055_v20, %v1059_v22  ;;  %v1106_v10 = vld [vmem:[#allocation8 + $0xaa0] sm:$0xff]  ;;  %v1103_v11 = vld [vmem:[#allocation8 + $0xa88] sm:$0xff] }
 0x353   :  { %v1107_v12 = vld [vmem:[#allocation8 + $0xaa8] sm:$0xff] }
 0x354   :  { %7136 = vmatpush1.bf16.msra.mxu1 %v9189_v29  ;;  %7464 = vmatpush1.bf16.msra.mxu0 %v9191_v33  ;;  %v1063_v29 = vld [vmem:[#allocation8 + $0x948] sm:$0xff] }
 0x355   :  { %7137 = vmatprep.subr.bf16.mxu1 %v9198_v15  ;;  %7465 = vmatprep.subr.bf16.mxu0 %v9200_v18  ;;  %v1067_v33 = vld [vmem:[#allocation8 + $0x968] sm:$0xff]  ;;  %v9245_v15 = vcombine.low %v1054_v19, %v1058_v23  ;;  %v9247_v18 = vcombine.low %v1055_v20, %v1059_v22  ;;  %v1110_v19 = vld [vmem:[#allocation8 + $0xac0] sm:$0xff] }
 0x356   :  { %v9256_v37 = vcombine.high %v1063_v29, %v1067_v33  ;;  %v1114_v23 = vld [vmem:[#allocation8 + $0xae0] sm:$0xff]  ;;  %v1111_v20 = vld [vmem:[#allocation8 + $0xac8] sm:$0xff] }
 0x357   :  { %v1115_v22 = vld [vmem:[#allocation8 + $0xae8] sm:$0xff] }
 0x358   :  { %7138 = vmatpush1.bf16.msra.mxu1 %v9197_v43  ;;  %7466 = vmatpush1.bf16.msra.mxu0 %v9199_v44  ;;  %v1075_v43 = vld [vmem:[#allocation8 + $0x9a8] sm:$0xff]  ;;  %v9253_v44 = vcombine.low %v1062_v27, %v1066_v28  ;;  %v1118_v27 = vld [vmem:[#allocation8 + $0xb00] sm:$0xff] }
 0x359   :  { %7139 = vmatprep.subr.bf16.mxu1 %v9206_v45  ;;  %7467 = vmatprep.subr.bf16.mxu0 %v9208_v46  ;;  %v9255_v45 = vcombine.low %v1063_v29, %v1067_v33  ;;  %v9262_v46 = vcombine.high %v1070_v38, %v1074_v39  ;;  %v9264_v47 = vcombine.high %v1071_v42, %v1075_v43  ;;  %v1122_v28 = vld [vmem:[#allocation8 + $0xb20] sm:$0xff]  ;;  %v1119_v29 = vld [vmem:[#allocation8 + $0xb08] sm:$0xff] }
 0x35a   :  { %v1123_v33 = vld [vmem:[#allocation8 + $0xb28] sm:$0xff] }
 0x35c   :  { %7140 = vmatpush1.bf16.msra.mxu1 %v9205_v55  ;;  %7468 = vmatpush1.bf16.msra.mxu0 %v9207_v56  ;;  %v1083_v55 = vld [vmem:[#allocation8 + $0x9e8] sm:$0xff]  ;;  %v9261_v56 = vcombine.low %v1070_v38, %v1074_v39  ;;  %v1126_v38 = vld [vmem:[#allocation8 + $0xb40] sm:$0xff] }
 0x35d   :  { %7150 = vmatprep.subr.bf16.mxu1 %v9214_v40  ;;  %7478 = vmatprep.subr.bf16.mxu0 %v9216_v57  ;;  %v9263_v40 = vcombine.low %v1071_v42, %v1075_v43  ;;  %v9270_v57 = vcombine.high %v1078_v49, %v1082_v50  ;;  %v9272_v58 = vcombine.high %v1079_v51, %v1083_v55  ;;  %v1130_v39 = vld [vmem:[#allocation8 + $0xb60] sm:$0xff]  ;;  %v1127_v42 = vld [vmem:[#allocation8 + $0xb48] sm:$0xff] }
 0x35e   :  { %v1131_v43 = vld [vmem:[#allocation8 + $0xb68] sm:$0xff] }
 0x35f   :  { %7142 = vmatmul.mubr.bf16.vlgmr.msra.gmra.mrb[8].mxu1 %v11188_v2  ;;  %7470 = vmatmul.mubr.bf16.vlgmr.msra.gmra.mrb[8].mxu0 %v11188_v2 }
 0x360   :  { %7151 = vmatpush1.bf16.msra.mxu1 %v9213_v0  ;;  %7182 = vmatprep.mubr.bf16.mxu1 %v11191_v31  ;;  %v9269_v0 = vcombine.low %v1078_v49, %v1082_v50  ;;  %v1134_v49 = vld [vmem:[#allocation8 + $0xb80] sm:$0xff] }
 0x361   :  { %7479 = vmatpush1.bf16.msra.mxu0 %v9215_v30  ;;  %7510 = vmatprep.mubr.bf16.mxu0 %v11191_v31  ;;  %v9271_v30 = vcombine.low %v1079_v51, %v1083_v55  ;;  %v1138_v50 = vld [vmem:[#allocation8 + $0xba0] sm:$0xff]  ;;  %v1135_v51 = vld [vmem:[#allocation8 + $0xb88] sm:$0xff] }
 0x362   :  { %7152 = vmatprep.subr.bf16.mxu1 %v9222_v32  ;;  %7480 = vmatprep.subr.bf16.mxu0 %v9224_v34  ;;  %v9278_v32 = vcombine.high %v1086_v59, %v1090_v61  ;;  %v9280_v34 = vcombine.high %v1087_v62, %v1091_v63  ;;  %v1139_v55 = vld [vmem:[#allocation8 + $0xba8] sm:$0xff] }
 0x364   :  { %7153 = vmatpush1.bf16.msra.mxu1 %v9221_v5  ;;  %v9277_v5 = vcombine.low %v1086_v59, %v1090_v61  ;;  %v1142_v59 = vld [vmem:[#allocation8 + $0xbc0] sm:$0xff] }
 0x365   :  { %7481 = vmatpush1.bf16.msra.mxu0 %v9223_v6  ;;  %7154 = vmatprep.subr.bf16.mxu1 %v9230_v7  ;;  %v9279_v6 = vcombine.low %v1087_v62, %v1091_v63  ;;  %v9286_v7 = vcombine.high %v1094_v35, %v1098_v36  ;;  %v1146_v61 = vld [vmem:[#allocation8 + $0xbe0] sm:$0xff]  ;;  %v1143_v62 = vld [vmem:[#allocation8 + $0xbc8] sm:$0xff] }
 0x366   :  { %7482 = vmatprep.subr.bf16.mxu0 %v9232_v8  ;;  %v9288_v8 = vcombine.high %v1095_v3, %v1099_v4  ;;  %v1147_v63 = vld [vmem:[#allocation8 + $0xbe8] sm:$0xff] }
 0x368   :  { %7155 = vmatpush1.bf16.msra.mxu1 %v9229_v13  ;;  %v9285_v13 = vcombine.low %v1094_v35, %v1098_v36  ;;  %v1150_v35 = vld [vmem:[#allocation8 + $0xc00] sm:$0xff] }
 0x369   :  { %7483 = vmatpush1.bf16.msra.mxu0 %v9231_v14  ;;  %7156 = vmatprep.subr.bf16.mxu1 %v9238_v16  ;;  %v9287_v14 = vcombine.low %v1095_v3, %v1099_v4  ;;  %v9294_v16 = vcombine.high %v1102_v9, %v1106_v10  ;;  %v1154_v36 = vld [vmem:[#allocation8 + $0xc20] sm:$0xff]  ;;  %v1151_v3 = vld [vmem:[#allocation8 + $0xc08] sm:$0xff] }
 0x36a   :  { %7484 = vmatprep.subr.bf16.mxu0 %v9240_v17  ;;  %v9296_v17 = vcombine.high %v1103_v11, %v1107_v12  ;;  %v1155_v4 = vld [vmem:[#allocation8 + $0xc28] sm:$0xff] }
 0x36c   :  { %7157 = vmatpush1.bf16.msra.mxu1 %v9237_v24  ;;  %v9293_v24 = vcombine.low %v1102_v9, %v1106_v10  ;;  %v1158_v9 = vld [vmem:[#allocation8 + $0xc40] sm:$0xff] }
 0x36d   :  { %7485 = vmatpush1.bf16.msra.mxu0 %v9239_v25  ;;  %7158 = vmatprep.subr.bf16.mxu1 %v9246_v1  ;;  %v9295_v25 = vcombine.low %v1103_v11, %v1107_v12  ;;  %v9302_v1 = vcombine.high %v1110_v19, %v1114_v23  ;;  %v1162_v10 = vld [vmem:[#allocation8 + $0xc60] sm:$0xff]  ;;  %v9341_v11 = vcombine.low %v1150_v35, %v1154_v36  ;;  %v1159_v12 = vld [vmem:[#allocation8 + $0xc48] sm:$0xff] }
 0x36e   :  { %7486 = vmatprep.subr.bf16.mxu0 %v9248_v26  ;;  %v9304_v26 = vcombine.high %v1111_v20, %v1115_v22 }
 0x370   :  { %7159 = vmatpush1.bf16.msra.mxu1 %v9245_v15  ;;  %v9301_v15 = vcombine.low %v1110_v19, %v1114_v23  ;;  %v1166_v19 = vld [vmem:[#allocation8 + $0xc80] sm:$0xff] }
 0x371   :  { %7487 = vmatpush1.bf16.msra.mxu0 %v9247_v18  ;;  %7160 = vmatprep.subr.bf16.mxu1 %v9254_v21  ;;  %v9303_v18 = vcombine.low %v1111_v20, %v1115_v22  ;;  %v9310_v21 = vcombine.high %v1118_v27, %v1122_v28  ;;  %v1170_v23 = vld [vmem:[#allocation8 + $0xca0] sm:$0xff]  ;;  %v11204_v20 = vcombine.high %v11191_v31, %v11191_v31 }
 0x372   :  { %7488 = vmatprep.subr.bf16.mxu0 %v9256_v37  ;;  %v9312_v37 = vcombine.high %v1119_v29, %v1123_v33 }
 0x374   :  { %7161 = vmatpush1.bf16.msra.mxu1 %v9253_v44  ;;  %v9309_v44 = vcombine.low %v1118_v27, %v1122_v28  ;;  %v1174_v28 = vld [vmem:[#allocation8 + $0xcc0] sm:$0xff] }
 0x375   :  { %7489 = vmatpush1.bf16.msra.mxu0 %v9255_v45  ;;  %7162 = vmatprep.subr.bf16.mxu1 %v9262_v46  ;;  %v9311_v45 = vcombine.low %v1119_v29, %v1123_v33  ;;  %v9318_v46 = vcombine.high %v1126_v38, %v1130_v39  ;;  %v1178_v29 = vld [vmem:[#allocation8 + $0xce0] sm:$0xff]  ;;  %v1175_v33 = vld [vmem:[#allocation8 + $0xcc8] sm:$0xff] }
 0x376   :  { %7490 = vmatprep.subr.bf16.mxu0 %v9264_v47  ;;  %v9320_v47 = vcombine.high %v1127_v42, %v1131_v43 }
 0x378   :  { %7163 = vmatpush1.bf16.msra.mxu1 %v9261_v56  ;;  %v9317_v56 = vcombine.low %v1126_v38, %v1130_v39  ;;  %v1182_v39 = vld [vmem:[#allocation8 + $0xd00] sm:$0xff] }
 0x379   :  { %7491 = vmatpush1.bf16.msra.mxu0 %v9263_v40  ;;  %7164 = vmatprep.subr.bf16.mxu1 %v9270_v57  ;;  %v9319_v40 = vcombine.low %v1127_v42, %v1131_v43  ;;  %v9326_v57 = vcombine.high %v1134_v49, %v1138_v50  ;;  %v1186_v42 = vld [vmem:[#allocation8 + $0xd20] sm:$0xff]  ;;  %v1183_v43 = vld [vmem:[#allocation8 + $0xd08] sm:$0xff] }
 0x37a   :  { %7492 = vmatprep.subr.bf16.mxu0 %v9272_v58  ;;  %v9328_v58 = vcombine.high %v1135_v51, %v1139_v55 }
 0x37c   :  { %7165 = vmatpush1.bf16.msra.mxu1 %v9269_v0  ;;  %v9325_v0 = vcombine.low %v1134_v49, %v1138_v50  ;;  %v1190_v50 = vld [vmem:[#allocation8 + $0xd40] sm:$0xff] }
 0x37d   :  { %7493 = vmatpush1.bf16.msra.mxu0 %v9271_v30  ;;  %7166 = vmatprep.subr.bf16.mxu1 %v9278_v32  ;;  %v9327_v30 = vcombine.low %v1135_v51, %v1139_v55  ;;  %v9334_v32 = vcombine.high %v1142_v59, %v1146_v61  ;;  %v1194_v51 = vld [vmem:[#allocation8 + $0xd60] sm:$0xff]  ;;  %v1191_v55 = vld [vmem:[#allocation8 + $0xd48] sm:$0xff] }
 0x37e   :  { %7494 = vmatprep.subr.bf16.mxu0 %v9280_v34  ;;  %v9336_v34 = vcombine.high %v1143_v62, %v1147_v63 }
 0x380   :  { %7167 = vmatpush1.bf16.msra.mxu1 %v9277_v5  ;;  %v9333_v5 = vcombine.low %v1142_v59, %v1146_v61  ;;  %v1198_v61 = vld [vmem:[#allocation8 + $0xd80] sm:$0xff] }
 0x381   :  { %7495 = vmatpush1.bf16.msra.mxu0 %v9279_v6  ;;  %7168 = vmatprep.subr.bf16.mxu1 %v9286_v7  ;;  %v9335_v6 = vcombine.low %v1143_v62, %v1147_v63  ;;  %v9342_v7 = vcombine.high %v1150_v35, %v1154_v36  ;;  %v1202_v62 = vld [vmem:[#allocation8 + $0xda0] sm:$0xff]  ;;  %v1199_v63 = vld [vmem:[#allocation8 + $0xd88] sm:$0xff] }
 0x382   :  { %7496 = vmatprep.subr.bf16.mxu0 %v9288_v8  ;;  %v9344_v8 = vcombine.high %v1151_v3, %v1155_v4  ;;  %v1206_v36 = vld [vmem:[#allocation8 + $0xdc0] sm:$0xff] }
 0x384   :  { %7169 = vmatpush1.bf16.msra.mxu1 %v9285_v13  ;;  %v1163_v13 = vld [vmem:[#allocation8 + $0xc68] sm:$0xff] }
 0x385   :  { %7497 = vmatpush1.bf16.msra.mxu0 %v9287_v14  ;;  %7170 = vmatprep.subr.bf16.mxu1 %v9294_v16  ;;  %v11199_v14 = vrot.slane %v11182_v53, %v11026_v60  ;;  %v9343_v16 = vcombine.low %v1151_v3, %v1155_v4  ;;  %v9352_v22 = vcombine.high %v1159_v12, %v1163_v13  ;;  %v1210_v3 = vld [vmem:[#allocation8 + $0xde0] sm:$0xff]  ;;  %v1207_v4 = vld [vmem:[#allocation8 + $0xdc8] sm:$0xff] }
 0x386   :  { %7498 = vmatprep.subr.bf16.mxu0 %v9296_v17  ;;  %v9350_v17 = vcombine.high %v1158_v9, %v1162_v10  ;;  %v9349_v53 = vcombine.low %v1158_v9, %v1162_v10  ;;  %v1214_v10 = vld [vmem:[#allocation8 + $0xe00] sm:$0xff] }
 0x388   :  { %7171 = vmatpush1.bf16.msra.mxu1 %v9293_v24  ;;  %v1167_v24 = vld [vmem:[#allocation8 + $0xc88] sm:$0xff] }
 0x389   :  { %7499 = vmatpush1.bf16.msra.mxu0 %v9295_v25  ;;  %7172 = vmatprep.subr.bf16.mxu1 %v9302_v1  ;;  %v1171_v25 = vld [vmem:[#allocation8 + $0xca8] sm:$0xff]  ;;  %v9351_v1 = vcombine.low %v1159_v12, %v1163_v13 }
 0x38a   :  { %7500 = vmatprep.subr.bf16.mxu0 %v9304_v26  ;;  %v9358_v26 = vcombine.high %v1166_v19, %v1170_v23  ;;  %v9360_v27 = vcombine.high %v1167_v24, %v1171_v25  ;;  %v1215_v12 = vld [vmem:[#allocation8 + $0xe08] sm:$0xff] }
 0x38b   :  { %v1219_v13 = vld [vmem:[#allocation8 + $0xe28] sm:$0xff] }
 0x38c   :  { %7173 = vmatpush1.bf16.msra.mxu1 %v9301_v15  ;;  %v1179_v15 = vld [vmem:[#allocation8 + $0xce8] sm:$0xff] }
 0x38d   :  { %7501 = vmatpush1.bf16.msra.mxu0 %v9303_v18  ;;  %7174 = vmatprep.subr.bf16.mxu1 %v9310_v21  ;;  %v9357_v18 = vcombine.low %v1166_v19, %v1170_v23  ;;  %v9359_v21 = vcombine.low %v1167_v24, %v1171_v25  ;;  %v9368_v38 = vcombine.high %v1175_v33, %v1179_v15  ;;  %v1226_v24 = vld [vmem:[#allocation8 + $0xe60] sm:$0xff]  ;;  %v1223_v25 = vld [vmem:[#allocation8 + $0xe48] sm:$0xff] }
 0x38e   :  { %7502 = vmatprep.subr.bf16.mxu0 %v9312_v37  ;;  %v9366_v37 = vcombine.high %v1174_v28, %v1178_v29  ;;  %v9408_v23 = vcombine.high %v1215_v12, %v1219_v13 }
 0x390   :  { %7175 = vmatpush1.bf16.msra.mxu1 %v9309_v44  ;;  %v1187_v44 = vld [vmem:[#allocation8 + $0xd28] sm:$0xff] }
 0x391   :  { %7503 = vmatpush1.bf16.msra.mxu0 %v9311_v45  ;;  %7176 = vmatprep.subr.bf16.mxu1 %v9318_v46  ;;  %v9365_v45 = vcombine.low %v1174_v28, %v1178_v29  ;;  %v9367_v46 = vcombine.low %v1175_v33, %v1179_v15  ;;  %v9376_v49 = vcombine.high %v1183_v43, %v1187_v44  ;;  %v1230_v29 = vld [vmem:[#allocation8 + $0xe80] sm:$0xff]  ;;  %v1231_v15 = vld [vmem:[#allocation8 + $0xe88] sm:$0xff] }
 0x392   :  { %7504 = vmatprep.subr.bf16.mxu0 %v9320_v47  ;;  %v9374_v47 = vcombine.high %v1182_v39, %v1186_v42  ;;  %v1234_v33 = vld [vmem:[#allocation8 + $0xea0] sm:$0xff] }
 0x394   :  { %7177 = vmatpush1.bf16.msra.mxu1 %v9317_v56  ;;  %v1195_v56 = vld [vmem:[#allocation8 + $0xd68] sm:$0xff] }
 0x395   :  { %7505 = vmatpush1.bf16.msra.mxu0 %v9319_v40  ;;  %7178 = vmatprep.subr.bf16.mxu1 %v9326_v57  ;;  %v9373_v40 = vcombine.low %v1182_v39, %v1186_v42  ;;  %v9375_v57 = vcombine.low %v1183_v43, %v1187_v44  ;;  %v9384_v59 = vcombine.high %v1191_v55, %v1195_v56  ;;  %v1238_v42 = vld [vmem:[#allocation8 + $0xec0] sm:$0xff]  ;;  %v1239_v44 = vld [vmem:[#allocation8 + $0xec8] sm:$0xff] }
 0x396   :  { %7506 = vmatprep.subr.bf16.mxu0 %v9328_v58  ;;  %v9382_v58 = vcombine.high %v1190_v50, %v1194_v51  ;;  %v1242_v43 = vld [vmem:[#allocation8 + $0xee0] sm:$0xff] }
 0x398   :  { %7179 = vmatpush1.bf16.msra.mxu1 %v9325_v0  ;;  %v1203_v0 = vld [vmem:[#allocation8 + $0xda8] sm:$0xff] }
 0x399   :  { %7507 = vmatpush1.bf16.msra.mxu0 %v9327_v30  ;;  %7180 = vmatprep.subr.bf16.mxu1 %v9334_v32  ;;  %v9381_v30 = vcombine.low %v1190_v50, %v1194_v51  ;;  %v9383_v32 = vcombine.low %v1191_v55, %v1195_v56  ;;  %v9392_v35 = vcombine.high %v1199_v63, %v1203_v0  ;;  %v1246_v51 = vld [vmem:[#allocation8 + $0xf00] sm:$0xff]  ;;  %v1247_v56 = vld [vmem:[#allocation8 + $0xf08] sm:$0xff] }
 0x39a   :  { %7508 = vmatprep.subr.bf16.mxu0 %v9336_v34  ;;  %v9390_v34 = vcombine.high %v1198_v61, %v1202_v62  ;;  %v1250_v55 = vld [vmem:[#allocation8 + $0xf20] sm:$0xff] }
 0x39c   :  { %7181 = vmatpush1.bf16.msra.mxu1 %v9333_v5  ;;  %v1211_v5 = vld [vmem:[#allocation8 + $0xde8] sm:$0xff] }
 0x39d   :  { %7509 = vmatpush1.bf16.msra.mxu0 %v9335_v6  ;;  %7191 = vmatprep.subr.bf16.mxu1 %v9342_v7  ;;  %v9389_v6 = vcombine.low %v1198_v61, %v1202_v62  ;;  %v9391_v7 = vcombine.low %v1199_v63, %v1203_v0  ;;  %v9400_v9 = vcombine.high %v1207_v4, %v1211_v5  ;;  %v1254_v62 = vld [vmem:[#allocation8 + $0xf40] sm:$0xff]  ;;  %v1255_v0 = vld [vmem:[#allocation8 + $0xf48] sm:$0xff] }
 0x39e   :  { %7519 = vmatprep.subr.bf16.mxu0 %v9344_v8  ;;  %v9398_v8 = vcombine.high %v1206_v36, %v1210_v3  ;;  %v1258_v63 = vld [vmem:[#allocation8 + $0xf60] sm:$0xff] }
 0x39f   :  { %7183 = vmatmul.mubr.bf16.vlgmr.msra.gmra.mrb[8].mxu1 %v11199_v14 }
 0x3a0   :  { %7511 = vmatmul.mubr.bf16.vlgmr.msra.gmra.mrb[8].mxu0 %v11199_v14  ;;  %7192 = vmatpush1.bf16.msra.mxu1 %v9341_v11  ;;  %v1218_v11 = vld [vmem:[#allocation8 + $0xe20] sm:$0xff] }
 0x3a1   :  { %7223 = vmatprep.mubr.bf16.mxu1 %v11204_v20  ;;  %7520 = vmatpush1.bf16.msra.mxu0 %v9343_v16  ;;  %v9397_v16 = vcombine.low %v1206_v36, %v1210_v3  ;;  %v9406_v19 = vcombine.high %v1214_v10, %v1218_v11  ;;  %v1262_v3 = vld [vmem:[#allocation8 + $0xf80] sm:$0xff] }
 0x3a2   :  { %7551 = vmatprep.mubr.bf16.mxu0 %v11204_v20  ;;  %7193 = vmatprep.subr.bf16.mxu1 %v9350_v17  ;;  %v9399_v17 = vcombine.low %v1207_v4, %v1211_v5  ;;  %v1266_v4 = vld [vmem:[#allocation8 + $0xfa0] sm:$0xff]  ;;  %v1263_v5 = vld [vmem:[#allocation8 + $0xf88] sm:$0xff] }
 0x3a3   :  { %7521 = vmatprep.subr.bf16.mxu0 %v9352_v22  ;;  %v1222_v22 = vld [vmem:[#allocation8 + $0xe40] sm:$0xff] }
 0x3a4   :  { %7194 = vmatpush1.bf16.msra.mxu1 %v9349_v53  ;;  %v1227_v53 = vld [vmem:[#allocation8 + $0xe68] sm:$0xff] }
 0x3a5   :  { %7522 = vmatpush1.bf16.msra.mxu0 %v9351_v1  ;;  %7195 = vmatprep.subr.bf16.mxu1 %v9358_v26  ;;  %v9405_v1 = vcombine.low %v1214_v10, %v1218_v11  ;;  %v9407_v26 = vcombine.low %v1215_v12, %v1219_v13  ;;  %v9416_v28 = vcombine.high %v1223_v25, %v1227_v53  ;;  %v1270_v11 = vld [vmem:[#allocation8 + $0xfc0] sm:$0xff]  ;;  %v1271_v13 = vld [vmem:[#allocation8 + $0xfc8] sm:$0xff] }
 0x3a6   :  { %7523 = vmatprep.subr.bf16.mxu0 %v9360_v27  ;;  %v9414_v27 = vcombine.high %v1222_v22, %v1226_v24  ;;  %v1274_v12 = vld [vmem:[#allocation8 + $0xfe0] sm:$0xff] }
 0x3a8   :  { %7196 = vmatpush1.bf16.msra.mxu1 %v9357_v18  ;;  %v1235_v18 = vld [vmem:[#allocation8 + $0xea8] sm:$0xff] }
 0x3a9   :  { %7524 = vmatpush1.bf16.msra.mxu0 %v9359_v21  ;;  %7197 = vmatprep.subr.bf16.mxu1 %v9366_v37  ;;  %v9413_v21 = vcombine.low %v1222_v22, %v1226_v24  ;;  %v9415_v37 = vcombine.low %v1223_v25, %v1227_v53  ;;  %v9424_v39 = vcombine.high %v1231_v15, %v1235_v18  ;;  %v1278_v25 = vld [vmem:[#allocation8 + $0x1000] sm:$0xff] }
 0x3aa   :  { %7525 = vmatprep.subr.bf16.mxu0 %v9368_v38  ;;  %v9422_v38 = vcombine.high %v1230_v29, %v1234_v33  ;;  %v9462_v22 = vcombine.high %v1270_v11, %v1274_v12  ;;  %v1282_v53 = vld [vmem:[#allocation8 + $0x1020] sm:$0xff] }
 0x3ac   :  { %7198 = vmatpush1.bf16.msra.mxu1 %v9365_v45  ;;  %v1243_v45 = vld [vmem:[#allocation8 + $0xee8] sm:$0xff] }
 0x3ad   :  { %7526 = vmatpush1.bf16.msra.mxu0 %v9367_v46  ;;  %7199 = vmatprep.subr.bf16.mxu1 %v9374_v47  ;;  %v9421_v46 = vcombine.low %v1230_v29, %v1234_v33  ;;  %v9423_v47 = vcombine.low %v1231_v15, %v1235_v18  ;;  %v9432_v50 = vcombine.high %v1239_v44, %v1243_v45 }
 0x3ae   :  { %7527 = vmatprep.subr.bf16.mxu0 %v9376_v49  ;;  %v9430_v49 = vcombine.high %v1238_v42, %v1242_v43  ;;  %v9470_v33 = vcombine.high %v1278_v25, %v1282_v53 }
 0x3b0   :  { %7200 = vmatpush1.bf16.msra.mxu1 %v9373_v40  ;;  %v1251_v40 = vld [vmem:[#allocation8 + $0xf28] sm:$0xff] }
 0x3b1   :  { %7528 = vmatpush1.bf16.msra.mxu0 %v9375_v57  ;;  %7201 = vmatprep.subr.bf16.mxu1 %v9382_v58  ;;  %v9429_v57 = vcombine.low %v1238_v42, %v1242_v43  ;;  %v9431_v58 = vcombine.low %v1239_v44, %v1243_v45  ;;  %v9440_v61 = vcombine.high %v1247_v56, %v1251_v40  ;;  %v1291_v42 = vld [vmem:[#allocation8 + $0x1068] sm:$0xff] }
 0x3b2   :  { %7529 = vmatprep.subr.bf16.mxu0 %v9384_v59  ;;  %v9438_v59 = vcombine.high %v1246_v51, %v1250_v55  ;;  %v11219_v43 = vcombine.high %v11199_v14, %v11199_v14 }
 0x3b4   :  { %7202 = vmatpush1.bf16.msra.mxu1 %v9381_v30  ;;  %v1259_v30 = vld [vmem:[#allocation8 + $0xf68] sm:$0xff] }
 0x3b5   :  { %7530 = vmatpush1.bf16.msra.mxu0 %v9383_v32  ;;  %7203 = vmatprep.subr.bf16.mxu1 %v9390_v34  ;;  %v9437_v32 = vcombine.low %v1246_v51, %v1250_v55  ;;  %v9439_v34 = vcombine.low %v1247_v56, %v1251_v40  ;;  %v9448_v36 = vcombine.high %v1255_v0, %v1259_v30  ;;  %v1295_v51 = vld [vmem:[#allocation8 + $0x1088] sm:$0xff] }
 0x3b6   :  { %7531 = vmatprep.subr.bf16.mxu0 %v9392_v35  ;;  %v9446_v35 = vcombine.high %v1254_v62, %v1258_v63  ;;  %v1299_v55 = vld [vmem:[#allocation8 + $0x10a8] sm:$0xff] }
 0x3b8   :  { %7204 = vmatpush1.bf16.msra.mxu1 %v9389_v6  ;;  %v1267_v6 = vld [vmem:[#allocation8 + $0xfa8] sm:$0xff] }
 0x3b9   :  { %7532 = vmatpush1.bf16.msra.mxu0 %v9391_v7  ;;  %7205 = vmatprep.subr.bf16.mxu1 %v9398_v8  ;;  %v9445_v7 = vcombine.low %v1254_v62, %v1258_v63  ;;  %v9447_v8 = vcombine.low %v1255_v0, %v1259_v30  ;;  %v9456_v10 = vcombine.high %v1263_v5, %v1267_v6  ;;  %v1303_v62 = vld [vmem:[#allocation8 + $0x10c8] sm:$0xff] }
 0x3ba   :  { %7533 = vmatprep.subr.bf16.mxu0 %v9400_v9  ;;  %v9454_v9 = vcombine.high %v1262_v3, %v1266_v4  ;;  %v1307_v63 = vld [vmem:[#allocation8 + $0x10e8] sm:$0xff]  ;;  %v9487_v30 = vcombine.low %v1295_v51, %v1299_v55 }
 0x3bc   :  { %7206 = vmatpush1.bf16.msra.mxu1 %v9397_v16  ;;  %v1275_v16 = vld [vmem:[#allocation8 + $0xfe8] sm:$0xff] }
 0x3bd   :  { %7534 = vmatpush1.bf16.msra.mxu0 %v9399_v17  ;;  %7207 = vmatprep.subr.bf16.mxu1 %v9406_v19  ;;  %v9453_v17 = vcombine.low %v1262_v3, %v1266_v4  ;;  %v11209_v19 = vld [vmem:[#allocation2 + $0x8] sm:$0xff]  ;;  %v9464_v24 = vcombine.high %v1271_v13, %v1275_v16  ;;  %v9463_v29 = vcombine.low %v1271_v13, %v1275_v16 }
 0x3be   :  { %7535 = vmatprep.subr.bf16.mxu0 %v9408_v23  ;;  %v9455_v23 = vcombine.low %v1263_v5, %v1267_v6  ;;  %v1311_v3 = vld [vmem:[#allocation8 + $0x1108] sm:$0xff]  ;;  %v9495_v6 = vcombine.low %v1303_v62, %v1307_v63 }
 0x3bf   :  { %v1315_v4 = vld [vmem:[#allocation8 + $0x1128] sm:$0xff] }
 0x3c0   :  { %7208 = vmatpush1.bf16.msra.mxu1 %v9405_v1  ;;  %v1279_v1 = vld [vmem:[#allocation8 + $0x1008] sm:$0xff]  ;;  %v9503_v16 = vcombine.low %v1311_v3, %v1315_v4 }
 0x3c1   :  { %7536 = vmatpush1.bf16.msra.mxu0 %v9407_v26  ;;  %7209 = vmatprep.subr.bf16.mxu1 %v9414_v27  ;;  %v1283_v26 = vld [vmem:[#allocation8 + $0x1028] sm:$0xff]  ;;  %v11213_v27 = vrot.slane %v11209_v19, %v11026_v60 }
 0x3c2   :  { %7537 = vmatprep.subr.bf16.mxu0 %v9416_v28  ;;  %v9461_v28 = vcombine.low %v1270_v11, %v1274_v12  ;;  %v9472_v15 = vcombine.high %v1279_v1, %v1283_v26  ;;  %v9471_v44 = vcombine.low %v1279_v1, %v1283_v26  ;;  %v1319_v11 = vld [vmem:[#allocation8 + $0x1148] sm:$0xff] }
 0x3c3   :  { %v1898_v18 = vcombine.high %v11213_v27, %v11213_v27  ;;  %v1323_v12 = vld [vmem:[#allocation8 + $0x1168] sm:$0xff] }
 0x3c4   :  { %7210 = vmatpush1.bf16.msra.mxu1 %v9413_v21  ;;  %v1286_v21 = vld [vmem:[#allocation8 + $0x1040] sm:$0xff]  ;;  %v9511_v26 = vcombine.low %v1319_v11, %v1323_v12 }
 0x3c5   :  { %7538 = vmatpush1.bf16.msra.mxu0 %v9415_v37  ;;  %7211 = vmatprep.subr.bf16.mxu1 %v9422_v38  ;;  %v1290_v37 = vld [vmem:[#allocation8 + $0x1060] sm:$0xff]  ;;  %v9469_v38 = vcombine.low %v1278_v25, %v1282_v53  ;;  %v1327_v25 = vld [vmem:[#allocation8 + $0x1188] sm:$0xff] }
 0x3c6   :  { %7539 = vmatprep.subr.bf16.mxu0 %v9424_v39  ;;  %v1287_v39 = vld [vmem:[#allocation8 + $0x1048] sm:$0xff]  ;;  %v9478_v45 = vcombine.high %v1286_v21, %v1290_v37  ;;  %v9477_v56 = vcombine.low %v1286_v21, %v1290_v37 }
 0x3c7   :  { %v9479_v40 = vcombine.low %v1287_v39, %v1291_v42  ;;  %v1331_v53 = vld [vmem:[#allocation8 + $0x11a8] sm:$0xff] }
 0x3c8   :  { %7212 = vmatpush1.bf16.msra.mxu1 %v9421_v46  ;;  %v1294_v46 = vld [vmem:[#allocation8 + $0x1080] sm:$0xff]  ;;  %v1339_v21 = vld [vmem:[#allocation8 + $0x11e8] sm:$0xff] }
 0x3c9   :  { %7540 = vmatpush1.bf16.msra.mxu0 %v9423_v47  ;;  %7213 = vmatprep.subr.bf16.mxu1 %v9430_v49  ;;  %v1298_v47 = vld [vmem:[#allocation8 + $0x10a0] sm:$0xff]  ;;  %v11223_v49 = vrot.slane %v1898_v18, %v11026_v60  ;;  %v1335_v18 = vld [vmem:[#allocation8 + $0x11c8] sm:$0xff] }
 0x3ca   :  { %7541 = vmatprep.subr.bf16.mxu0 %v9432_v50  ;;  %v9480_v50 = vcombine.high %v1287_v39, %v1291_v42  ;;  %v9485_v0 = vcombine.low %v1294_v46, %v1298_v47  ;;  %v9528_v42 = vcombine.high %v1335_v18, %v1339_v21 }
 0x3cc   :  { %7214 = vmatpush1.bf16.msra.mxu1 %v9429_v57  ;;  %v9486_v57 = vcombine.high %v1294_v46, %v1298_v47  ;;  %v1343_v46 = vld [vmem:[#allocation8 + $0x1208] sm:$0xff] }
 0x3cd   :  { %7542 = vmatpush1.bf16.msra.mxu0 %v9431_v58  ;;  %7215 = vmatprep.subr.bf16.mxu1 %v9438_v59  ;;  %v9488_v58 = vcombine.high %v1295_v51, %v1299_v55  ;;  %v1302_v59 = vld [vmem:[#allocation8 + $0x10c0] sm:$0xff]  ;;  %v1347_v47 = vld [vmem:[#allocation8 + $0x1228] sm:$0xff]  ;;  %v9527_v51 = vcombine.low %v1335_v18, %v1339_v21 }
 0x3ce   :  { %7543 = vmatprep.subr.bf16.mxu0 %v9440_v61  ;;  %v1306_v61 = vld [vmem:[#allocation8 + $0x10e0] sm:$0xff] }
 0x3cf   :  { %v9493_v5 = vcombine.low %v1302_v59, %v1306_v61 }
 0x3d0   :  { %7216 = vmatpush1.bf16.msra.mxu1 %v9437_v32  ;;  %v9494_v32 = vcombine.high %v1302_v59, %v1306_v61  ;;  %v1355_v59 = vld [vmem:[#allocation8 + $0x1268] sm:$0xff] }
 0x3d1   :  { %7544 = vmatpush1.bf16.msra.mxu0 %v9439_v34  ;;  %7217 = vmatprep.subr.bf16.mxu1 %v9446_v35  ;;  %v9496_v34 = vcombine.high %v1303_v62, %v1307_v63  ;;  %v1310_v35 = vld [vmem:[#allocation8 + $0x1100] sm:$0xff]  ;;  %v9535_v62 = vcombine.low %v1343_v46, %v1347_v47 }
 0x3d2   :  { %7545 = vmatprep.subr.bf16.mxu0 %v9448_v36  ;;  %v1314_v36 = vld [vmem:[#allocation8 + $0x1120] sm:$0xff] }
 0x3d3   :  { %v9501_v13 = vcombine.low %v1310_v35, %v1314_v36 }
 0x3d4   :  { %7218 = vmatpush1.bf16.msra.mxu1 %v9445_v7  ;;  %v9502_v7 = vcombine.high %v1310_v35, %v1314_v36  ;;  %v1363_v35 = vld [vmem:[#allocation8 + $0x12a8] sm:$0xff] }
 0x3d5   :  { %7546 = vmatpush1.bf16.msra.mxu0 %v9447_v8  ;;  %7219 = vmatprep.subr.bf16.mxu1 %v9454_v9  ;;  %v9504_v8 = vcombine.high %v1311_v3, %v1315_v4  ;;  %v1318_v9 = vld [vmem:[#allocation8 + $0x1140] sm:$0xff] }
 0x3d6   :  { %7547 = vmatprep.subr.bf16.mxu0 %v9456_v10  ;;  %v1322_v10 = vld [vmem:[#allocation8 + $0x1160] sm:$0xff] }
 0x3d7   :  { %v9509_v1 = vcombine.low %v1318_v9, %v1322_v10 }
 0x3d8   :  { %7220 = vmatpush1.bf16.msra.mxu1 %v9453_v17  ;;  %v9510_v17 = vcombine.high %v1318_v9, %v1322_v10  ;;  %v1371_v9 = vld [vmem:[#allocation8 + $0x12e8] sm:$0xff] }
 0x3d9   :  { %7548 = vmatpush1.bf16.msra.mxu0 %v9455_v23  ;;  %7221 = vmatprep.subr.bf16.mxu1 %v9462_v22  ;;  %v9512_v23 = vcombine.high %v1319_v11, %v1323_v12  ;;  %v1326_v22 = vld [vmem:[#allocation8 + $0x1180] sm:$0xff] }
 0x3da   :  { %7549 = vmatprep.subr.bf16.mxu0 %v9464_v24  ;;  %v1330_v24 = vld [vmem:[#allocation8 + $0x11a0] sm:$0xff] }
 0x3db   :  { %v9517_v37 = vcombine.low %v1326_v22, %v1330_v24 }
 0x3dc   :  { %7222 = vmatpush1.bf16.msra.mxu1 %v9461_v28  ;;  %v9518_v28 = vcombine.high %v1326_v22, %v1330_v24  ;;  %v1379_v22 = vld [vmem:[#allocation8 + $0x1328] sm:$0xff] }
 0x3dd   :  { %7550 = vmatpush1.bf16.msra.mxu0 %v9463_v29  ;;  %7232 = vmatprep.subr.bf16.mxu1 %v9470_v33  ;;  %v9520_v29 = vcombine.high %v1327_v25, %v1331_v53  ;;  %v1334_v33 = vld [vmem:[#allocation8 + $0x11c0] sm:$0xff] }
 0x3de   :  { %7560 = vmatprep.subr.bf16.mxu0 %v9472_v15  ;;  %v1338_v15 = vld [vmem:[#allocation8 + $0x11e0] sm:$0xff] }
 0x3df   :  { %7224 = vmatmul.mubr.bf16.vlgmr.msra.gmra.mrb[8].mxu1 %v11219_v43  ;;  %v9526_v39 = vcombine.high %v1334_v33, %v1338_v15 }
 0x3e0   :  { %7552 = vmatmul.mubr.bf16.vlgmr.msra.gmra.mrb[8].mxu0 %v11219_v43  ;;  %7233 = vmatpush1.bf16.msra.mxu1 %v9469_v38  ;;  %v9519_v38 = vcombine.low %v1327_v25, %v1331_v53 }
 0x3e1   :  { %7264 = vmatprep.mubr.bf16.mxu1 %v11223_v49  ;;  %7561 = vmatpush1.bf16.msra.mxu0 %v9471_v44  ;;  %v1342_v44 = vld [vmem:[#allocation8 + $0x1200] sm:$0xff] }
 0x3e2   :  { %7592 = vmatprep.mubr.bf16.mxu0 %v11223_v49  ;;  %7234 = vmatprep.subr.bf16.mxu1 %v9478_v45  ;;  %v1346_v45 = vld [vmem:[#allocation8 + $0x1220] sm:$0xff] }
 0x3e3   :  { %7562 = vmatprep.subr.bf16.mxu0 %v9480_v50  ;;  %v9525_v50 = vcombine.low %v1334_v33, %v1338_v15  ;;  %v9534_v55 = vcombine.high %v1342_v44, %v1346_v45  ;;  %v9533_v61 = vcombine.low %v1342_v44, %v1346_v45  ;;  %v1387_v33 = vld [vmem:[#allocation8 + $0x1368] sm:$0xff] }
 0x3e4   :  { %7235 = vmatpush1.bf16.msra.mxu1 %v9477_v56  ;;  %v9536_v56 = vcombine.high %v1343_v46, %v1347_v47  ;;  %v1395_v44 = vld [vmem:[#allocation8 + $0x13a8] sm:$0xff] }
 0x3e5   :  { %7563 = vmatpush1.bf16.msra.mxu0 %v9479_v40  ;;  %7236 = vmatprep.subr.bf16.mxu1 %v9486_v57  ;;  %v1350_v40 = vld [vmem:[#allocation8 + $0x1240] sm:$0xff] }
 0x3e6   :  { %7564 = vmatprep.subr.bf16.mxu0 %v9488_v58  ;;  %v1354_v57 = vld [vmem:[#allocation8 + $0x1260] sm:$0xff]  ;;  %v1351_v58 = vld [vmem:[#allocation8 + $0x1248] sm:$0xff] }
 0x3e7   :  { %v9542_v63 = vcombine.high %v1350_v40, %v1354_v57  ;;  %v9541_v36 = vcombine.low %v1350_v40, %v1354_v57  ;;  %v9543_v3 = vcombine.low %v1351_v58, %v1355_v59  ;;  %v1403_v40 = vld [vmem:[#allocation8 + $0x13e8] sm:$0xff] }
 0x3e8   :  { %7237 = vmatpush1.bf16.msra.mxu1 %v9485_v0  ;;  %v9544_v0 = vcombine.high %v1351_v58, %v1355_v59 }
 0x3e9   :  { %7565 = vmatpush1.bf16.msra.mxu0 %v9487_v30  ;;  %7238 = vmatprep.subr.bf16.mxu1 %v9494_v32  ;;  %v1358_v30 = vld [vmem:[#allocation8 + $0x1280] sm:$0xff] }
 0x3ea   :  { %7566 = vmatprep.subr.bf16.mxu0 %v9496_v34  ;;  %v1362_v32 = vld [vmem:[#allocation8 + $0x12a0] sm:$0xff]  ;;  %v1359_v34 = vld [vmem:[#allocation8 + $0x1288] sm:$0xff] }
 0x3eb   :  { %v9550_v4 = vcombine.high %v1358_v30, %v1362_v32  ;;  %v9549_v10 = vcombine.low %v1358_v30, %v1362_v32  ;;  %v9551_v11 = vcombine.low %v1359_v34, %v1363_v35  ;;  %v1411_v30 = vld [vmem:[#allocation8 + $0x1428] sm:$0xff] }
 0x3ec   :  { %7239 = vmatpush1.bf16.msra.mxu1 %v9493_v5  ;;  %v9552_v5 = vcombine.high %v1359_v34, %v1363_v35 }
 0x3ed   :  { %7567 = vmatpush1.bf16.msra.mxu0 %v9495_v6  ;;  %7240 = vmatprep.subr.bf16.mxu1 %v9502_v7  ;;  %v1366_v6 = vld [vmem:[#allocation8 + $0x12c0] sm:$0xff] }
 0x3ee   :  { %7568 = vmatprep.subr.bf16.mxu0 %v9504_v8  ;;  %v1370_v7 = vld [vmem:[#allocation8 + $0x12e0] sm:$0xff]  ;;  %v1367_v8 = vld [vmem:[#allocation8 + $0x12c8] sm:$0xff] }
 0x3ef   :  { %v9558_v12 = vcombine.high %v1366_v6, %v1370_v7  ;;  %v9557_v24 = vcombine.low %v1366_v6, %v1370_v7  ;;  %v9559_v25 = vcombine.low %v1367_v8, %v1371_v9  ;;  %v1415_v6 = vld [vmem:[#allocation8 + $0x1448] sm:$0xff] }
 0x3f0   :  { %7241 = vmatpush1.bf16.msra.mxu1 %v9501_v13  ;;  %v9560_v13 = vcombine.high %v1367_v8, %v1371_v9  ;;  %v1419_v7 = vld [vmem:[#allocation8 + $0x1468] sm:$0xff]  ;;  %v11230_v8 = vrot.slane %v11213_v27, %v11026_v60 }
 0x3f1   :  { %7569 = vmatpush1.bf16.msra.mxu0 %v9503_v16  ;;  %7242 = vmatprep.subr.bf16.mxu1 %v9510_v17  ;;  %v1374_v16 = vld [vmem:[#allocation8 + $0x1300] sm:$0xff] }
 0x3f2   :  { %7570 = vmatprep.subr.bf16.mxu0 %v9512_v23  ;;  %v1378_v17 = vld [vmem:[#allocation8 + $0x1320] sm:$0xff]  ;;  %v1375_v23 = vld [vmem:[#allocation8 + $0x1308] sm:$0xff] }
 0x3f3   :  { %v9566_v53 = vcombine.high %v1374_v16, %v1378_v17  ;;  %v9565_v15 = vcombine.low %v1374_v16, %v1378_v17  ;;  %v9567_v18 = vcombine.low %v1375_v23, %v1379_v22  ;;  %v9608_v16 = vcombine.high %v1415_v6, %v1419_v7  ;;  %v1423_v17 = vld [vmem:[#allocation8 + $0x1488] sm:$0xff] }
 0x3f4   :  { %7243 = vmatpush1.bf16.msra.mxu1 %v9509_v1  ;;  %v9568_v1 = vcombine.high %v1375_v23, %v1379_v22  ;;  %v1427_v23 = vld [vmem:[#allocation8 + $0x14a8] sm:$0xff]  ;;  %v9607_v22 = vcombine.low %v1415_v6, %v1419_v7 }
 0x3f5   :  { %7571 = vmatpush1.bf16.msra.mxu0 %v9511_v26  ;;  %7244 = vmatprep.subr.bf16.mxu1 %v9518_v28  ;;  %v1382_v26 = vld [vmem:[#allocation8 + $0x1340] sm:$0xff] }
 0x3f6   :  { %7572 = vmatprep.subr.bf16.mxu0 %v9520_v29  ;;  %v1386_v28 = vld [vmem:[#allocation8 + $0x1360] sm:$0xff]  ;;  %v1383_v29 = vld [vmem:[#allocation8 + $0x1348] sm:$0xff] }
 0x3f7   :  { %v9574_v21 = vcombine.high %v1382_v26, %v1386_v28  ;;  %v9573_v45 = vcombine.low %v1382_v26, %v1386_v28  ;;  %v9575_v46 = vcombine.low %v1383_v29, %v1387_v33  ;;  %v1431_v26 = vld [vmem:[#allocation8 + $0x14c8] sm:$0xff] }
 0x3f8   :  { %7245 = vmatpush1.bf16.msra.mxu1 %v9517_v37  ;;  %v9576_v37 = vcombine.high %v1383_v29, %v1387_v33  ;;  %v1435_v28 = vld [vmem:[#allocation8 + $0x14e8] sm:$0xff]  ;;  %v9615_v33 = vcombine.low %v1423_v17, %v1427_v23 }
 0x3f9   :  { %7573 = vmatpush1.bf16.msra.mxu0 %v9519_v38  ;;  %7246 = vmatprep.subr.bf16.mxu1 %v9526_v39  ;;  %v1390_v38 = vld [vmem:[#allocation8 + $0x1380] sm:$0xff] }
 0x3fa   :  { %7574 = vmatprep.subr.bf16.mxu0 %v9528_v42  ;;  %v1394_v39 = vld [vmem:[#allocation8 + $0x13a0] sm:$0xff]  ;;  %v1391_v42 = vld [vmem:[#allocation8 + $0x1388] sm:$0xff] }
 0x3fb   :  { %v9582_v47 = vcombine.high %v1390_v38, %v1394_v39  ;;  %v9581_v57 = vcombine.low %v1390_v38, %v1394_v39  ;;  %v9583_v58 = vcombine.low %v1391_v42, %v1395_v44  ;;  %v1439_v38 = vld [vmem:[#allocation8 + $0x1508] sm:$0xff] }
 0x3fc   :  { %7247 = vmatpush1.bf16.msra.mxu1 %v9525_v50  ;;  %v9584_v50 = vcombine.high %v1391_v42, %v1395_v44  ;;  %v1443_v39 = vld [vmem:[#allocation8 + $0x1528] sm:$0xff]  ;;  %v9623_v44 = vcombine.low %v1431_v26, %v1435_v28 }
 0x3fd   :  { %7575 = vmatpush1.bf16.msra.mxu0 %v9527_v51  ;;  %7248 = vmatprep.subr.bf16.mxu1 %v9534_v55  ;;  %v1398_v51 = vld [vmem:[#allocation8 + $0x13c0] sm:$0xff] }
 0x3fe   :  { %7576 = vmatprep.subr.bf16.mxu0 %v9536_v56  ;;  %v1402_v55 = vld [vmem:[#allocation8 + $0x13e0] sm:$0xff]  ;;  %v1399_v56 = vld [vmem:[#allocation8 + $0x13c8] sm:$0xff] }
 0x3ff   :  { %v9590_v59 = vcombine.high %v1398_v51, %v1402_v55  ;;  %v9589_v32 = vcombine.low %v1398_v51, %v1402_v55  ;;  %v9591_v34 = vcombine.low %v1399_v56, %v1403_v40  ;;  %v1447_v51 = vld [vmem:[#allocation8 + $0x1548] sm:$0xff] }
 0x400   :  { %7249 = vmatpush1.bf16.msra.mxu1 %v9533_v61  ;;  %v9592_v61 = vcombine.high %v1399_v56, %v1403_v40  ;;  %v1451_v55 = vld [vmem:[#allocation8 + $0x1568] sm:$0xff]  ;;  %v9631_v40 = vcombine.low %v1439_v38, %v1443_v39 }
 0x401   :  { %7577 = vmatpush1.bf16.msra.mxu0 %v9535_v62  ;;  %7250 = vmatprep.subr.bf16.mxu1 %v9542_v63  ;;  %v1406_v62 = vld [vmem:[#allocation8 + $0x1400] sm:$0xff] }
 0x402   :  { %7578 = vmatprep.subr.bf16.mxu0 %v9544_v0  ;;  %v1410_v63 = vld [vmem:[#allocation8 + $0x1420] sm:$0xff]  ;;  %v1407_v0 = vld [vmem:[#allocation8 + $0x1408] sm:$0xff] }
 0x403   :  { %v9598_v35 = vcombine.high %v1406_v62, %v1410_v63  ;;  %v9599_v9 = vcombine.low %v1407_v0, %v1411_v30 }
 0x404   :  { %7251 = vmatpush1.bf16.msra.mxu1 %v9541_v36  ;;  %v9600_v36 = vcombine.high %v1407_v0, %v1411_v30  ;;  %v9639_v30 = vcombine.low %v1447_v51, %v1451_v55 }
 0x405   :  { %7579 = vmatpush1.bf16.msra.mxu0 %v9543_v3  ;;  %7252 = vmatprep.subr.bf16.mxu1 %v9550_v4  ;;  %v1414_v3 = vld [vmem:[#allocation8 + $0x1440] sm:$0xff] }
 0x406   :  { %7580 = vmatprep.subr.bf16.mxu0 %v9552_v5  ;;  %v1418_v4 = vld [vmem:[#allocation8 + $0x1460] sm:$0xff]  ;;  %v9597_v5 = vcombine.low %v1406_v62, %v1410_v63  ;;  %v1455_v62 = vld [vmem:[#allocation8 + $0x1588] sm:$0xff] }
 0x407   :  { %v9605_v27 = vcombine.low %v1414_v3, %v1418_v4  ;;  %v1459_v63 = vld [vmem:[#allocation8 + $0x15a8] sm:$0xff] }
 0x408   :  { %7253 = vmatpush1.bf16.msra.mxu1 %v9549_v10  ;;  %v9606_v10 = vcombine.high %v1414_v3, %v1418_v4  ;;  %v1463_v3 = vld [vmem:[#allocation8 + $0x15c8] sm:$0xff]  ;;  %v9647_v6 = vcombine.low %v1455_v62, %v1459_v63 }
 0x409   :  { %7581 = vmatpush1.bf16.msra.mxu0 %v9551_v11  ;;  %7254 = vmatprep.subr.bf16.mxu1 %v9558_v12  ;;  %v1422_v11 = vld [vmem:[#allocation8 + $0x1480] sm:$0xff]  ;;  %v1467_v4 = vld [vmem:[#allocation8 + $0x15e8] sm:$0xff] }
 0x40a   :  { %7582 = vmatprep.subr.bf16.mxu0 %v9560_v13  ;;  %v1426_v12 = vld [vmem:[#allocation8 + $0x14a0] sm:$0xff]  ;;  %v11235_v13 = vcombine.high %v11223_v49, %v11223_v49 }
 0x40b   :  { %v9613_v29 = vcombine.low %v1422_v11, %v1426_v12 }
 0x40c   :  { %7255 = vmatpush1.bf16.msra.mxu1 %v9557_v24  ;;  %v9614_v24 = vcombine.high %v1422_v11, %v1426_v12  ;;  %v1474_v11 = vld [vmem:[#allocation8 + $0x1620] sm:$0xff]  ;;  %v1471_v12 = vld [vmem:[#allocation8 + $0x1608] sm:$0xff] }
 0x40d   :  { %7583 = vmatpush1.bf16.msra.mxu0 %v9559_v25  ;;  %7256 = vmatprep.subr.bf16.mxu1 %v9566_v53  ;;  %v9616_v25 = vcombine.high %v1423_v17, %v1427_v23  ;;  %v1430_v53 = vld [vmem:[#allocation8 + $0x14c0] sm:$0xff]  ;;  %v9655_v23 = vcombine.low %v1463_v3, %v1467_v4 }
 0x40e   :  { %7584 = vmatprep.subr.bf16.mxu0 %v9568_v1  ;;  %v1434_v1 = vld [vmem:[#allocation8 + $0x14e0] sm:$0xff] }
 0x40f   :  { %v9621_v42 = vcombine.low %v1430_v53, %v1434_v1 }
 0x410   :  { %7257 = vmatpush1.bf16.msra.mxu1 %v9565_v15  ;;  %v9622_v15 = vcombine.high %v1430_v53, %v1434_v1  ;;  %v1479_v53 = vld [vmem:[#allocation8 + $0x1648] sm:$0xff] }
 0x411   :  { %7585 = vmatpush1.bf16.msra.mxu0 %v9567_v18  ;;  %7258 = vmatprep.subr.bf16.mxu1 %v9574_v21  ;;  %v9624_v18 = vcombine.high %v1431_v26, %v1435_v28  ;;  %v1438_v21 = vld [vmem:[#allocation8 + $0x1500] sm:$0xff]  ;;  %v1483_v1 = vld [vmem:[#allocation8 + $0x1668] sm:$0xff] }
 0x412   :  { %7586 = vmatprep.subr.bf16.mxu0 %v9576_v37  ;;  %v1442_v37 = vld [vmem:[#allocation8 + $0x1520] sm:$0xff] }
 0x413   :  { %v9629_v56 = vcombine.low %v1438_v21, %v1442_v37 }
 0x414   :  { %7259 = vmatpush1.bf16.msra.mxu1 %v9573_v45  ;;  %v9630_v45 = vcombine.high %v1438_v21, %v1442_v37  ;;  %v1487_v21 = vld [vmem:[#allocation8 + $0x1688] sm:$0xff] }
 0x415   :  { %7587 = vmatpush1.bf16.msra.mxu0 %v9575_v46  ;;  %7260 = vmatprep.subr.bf16.mxu1 %v9582_v47  ;;  %v9632_v46 = vcombine.high %v1439_v38, %v1443_v39  ;;  %v1446_v47 = vld [vmem:[#allocation8 + $0x1540] sm:$0xff]  ;;  %v1491_v37 = vld [vmem:[#allocation8 + $0x16a8] sm:$0xff]  ;;  %v9671_v39 = vcombine.low %v1479_v53, %v1483_v1 }
 0x416   :  { %7588 = vmatprep.subr.bf16.mxu0 %v9584_v50  ;;  %v1450_v50 = vld [vmem:[#allocation8 + $0x1560] sm:$0xff] }
 0x417   :  { %v9637_v0 = vcombine.low %v1446_v47, %v1450_v50 }
 0x418   :  { %7261 = vmatpush1.bf16.msra.mxu1 %v9581_v57  ;;  %v9638_v57 = vcombine.high %v1446_v47, %v1450_v50  ;;  %v1495_v47 = vld [vmem:[#allocation8 + $0x16c8] sm:$0xff] }
 0x419   :  { %7589 = vmatpush1.bf16.msra.mxu0 %v9583_v58  ;;  %7262 = vmatprep.subr.bf16.mxu1 %v9590_v59  ;;  %v9640_v58 = vcombine.high %v1447_v51, %v1451_v55  ;;  %v1454_v59 = vld [vmem:[#allocation8 + $0x1580] sm:$0xff]  ;;  %v1499_v50 = vld [vmem:[#allocation8 + $0x16e8] sm:$0xff]  ;;  %v9679_v55 = vcombine.low %v1487_v21, %v1491_v37 }
 0x41a   :  { %7590 = vmatprep.subr.bf16.mxu0 %v9592_v61  ;;  %v1458_v61 = vld [vmem:[#allocation8 + $0x15a0] sm:$0xff] }
 0x41c   :  { %7263 = vmatpush1.bf16.msra.mxu1 %v9589_v32  ;;  %v9646_v32 = vcombine.high %v1454_v59, %v1458_v61 }
 0x41d   :  { %7591 = vmatpush1.bf16.msra.mxu0 %v9591_v34  ;;  %7273 = vmatprep.subr.bf16.mxu1 %v9598_v35  ;;  %v9648_v34 = vcombine.high %v1455_v62, %v1459_v63  ;;  %v1462_v35 = vld [vmem:[#allocation8 + $0x15c0] sm:$0xff]  ;;  %v9687_v63 = vcombine.low %v1495_v47, %v1499_v50 }
 0x41e   :  { %7601 = vmatprep.subr.bf16.mxu0 %v9600_v36  ;;  %v1466_v36 = vld [vmem:[#allocation8 + $0x15e0] sm:$0xff] }
 0x41f   :  { %7265 = vmatmul.mubr.bf16.vlgmr.msra.gmra.mrb[8].mxu1 %v11230_v8  ;;  %v9654_v7 = vcombine.high %v1462_v35, %v1466_v36  ;;  %v9653_v17 = vcombine.low %v1462_v35, %v1466_v36  ;;  %v1511_v35 = vld [vmem:[#allocation8 + $0x1748] sm:$0xff] }
 0x420   :  { %7593 = vmatmul.mubr.bf16.vlgmr.msra.gmra.mrb[8].mxu0 %v11230_v8  ;;  %7274 = vmatpush1.bf16.msra.mxu1 %v9597_v5  ;;  %v9645_v5 = vcombine.low %v1454_v59, %v1458_v61  ;;  %v1503_v59 = vld [vmem:[#allocation8 + $0x1708] sm:$0xff] }
 0x421   :  { %7305 = vmatprep.mubr.bf16.mxu1 %v11235_v13  ;;  %7602 = vmatpush1.bf16.msra.mxu0 %v9599_v9  ;;  %v9656_v9 = vcombine.high %v1463_v3, %v1467_v4  ;;  %v1507_v61 = vld [vmem:[#allocation8 + $0x1728] sm:$0xff] }
 0x422   :  { %7633 = vmatprep.mubr.bf16.mxu0 %v11235_v13  ;;  %7275 = vmatprep.subr.bf16.mxu1 %v9606_v10  ;;  %v1470_v10 = vld [vmem:[#allocation8 + $0x1600] sm:$0xff]  ;;  %v1515_v36 = vld [vmem:[#allocation8 + $0x1768] sm:$0xff]  ;;  %v9695_v4 = vcombine.low %v1503_v59, %v1507_v61 }
 0x423   :  { %7603 = vmatprep.subr.bf16.mxu0 %v9608_v16  ;;  %v1475_v16 = vld [vmem:[#allocation8 + $0x1628] sm:$0xff]  ;;  %v9661_v26 = vcombine.low %v1470_v10, %v1474_v11 }
 0x424   :  { %7276 = vmatpush1.bf16.msra.mxu1 %v9605_v27  ;;  %v9662_v27 = vcombine.high %v1470_v10, %v1474_v11  ;;  %v9663_v28 = vcombine.low %v1471_v12, %v1475_v16  ;;  %v1519_v10 = vld [vmem:[#allocation8 + $0x1788] sm:$0xff] }
 0x425   :  { %7604 = vmatpush1.bf16.msra.mxu0 %v9607_v22  ;;  %7277 = vmatprep.subr.bf16.mxu1 %v9614_v24  ;;  %v9664_v22 = vcombine.high %v1471_v12, %v1475_v16  ;;  %v1478_v24 = vld [vmem:[#allocation8 + $0x1640] sm:$0xff]  ;;  %v1523_v11 = vld [vmem:[#allocation8 + $0x17a8] sm:$0xff]  ;;  %v9703_v16 = vcombine.low %v1511_v35, %v1515_v36 }
 0x426   :  { %7605 = vmatprep.subr.bf16.mxu0 %v9616_v25  ;;  %v1482_v25 = vld [vmem:[#allocation8 + $0x1660] sm:$0xff] }
 0x427   :  { %v9669_v38 = vcombine.low %v1478_v24, %v1482_v25 }
 0x428   :  { %7278 = vmatpush1.bf16.msra.mxu1 %v9613_v29  ;;  %v9670_v29 = vcombine.high %v1478_v24, %v1482_v25  ;;  %v1527_v24 = vld [vmem:[#allocation8 + $0x17c8] sm:$0xff] }
 0x429   :  { %7606 = vmatpush1.bf16.msra.mxu0 %v9615_v33  ;;  %7279 = vmatprep.subr.bf16.mxu1 %v9622_v15  ;;  %v9672_v33 = vcombine.high %v1479_v53, %v1483_v1  ;;  %v1486_v15 = vld [vmem:[#allocation8 + $0x1680] sm:$0xff]  ;;  %v1531_v25 = vld [vmem:[#allocation8 + $0x17e8] sm:$0xff]  ;;  %v1883_v53 = vcombine.high %v11209_v19, %v11209_v19 }
 0x42a   :  { %7607 = vmatprep.subr.bf16.mxu0 %v9624_v18  ;;  %v1490_v18 = vld [vmem:[#allocation8 + $0x16a0] sm:$0xff]  ;;  %v9719_v19 = vcombine.low %v1527_v24, %v1531_v25 }
 0x42b   :  { %v9677_v51 = vcombine.low %v1486_v15, %v1490_v18 }
 0x42c   :  { %7280 = vmatpush1.bf16.msra.mxu1 %v9621_v42  ;;  %v9678_v42 = vcombine.high %v1486_v15, %v1490_v18  ;;  %v1538_v15 = vld [vmem:[#allocation8 + $0x1820] sm:$0xff]  ;;  %v1535_v18 = vld [vmem:[#allocation8 + $0x1808] sm:$0xff] }
 0x42d   :  { %7608 = vmatpush1.bf16.msra.mxu0 %v9623_v44  ;;  %7281 = vmatprep.subr.bf16.mxu1 %v9630_v45  ;;  %v9680_v44 = vcombine.high %v1487_v21, %v1491_v37  ;;  %v1494_v45 = vld [vmem:[#allocation8 + $0x16c0] sm:$0xff]  ;;  %v1539_v21 = vld [vmem:[#allocation8 + $0x1828] sm:$0xff]  ;;  %v11243_v37 = vrot.slane %v1883_v53, %v11026_v60 }
 0x42e   :  { %7609 = vmatprep.subr.bf16.mxu0 %v9632_v46  ;;  %v1498_v46 = vld [vmem:[#allocation8 + $0x16e0] sm:$0xff]  ;;  %v1575_v53 = vld [vmem:[#allocation8 + $0x1948] sm:$0xff] }
 0x42f   :  { %v9685_v62 = vcombine.low %v1494_v45, %v1498_v46 }
 0x430   :  { %7282 = vmatpush1.bf16.msra.mxu1 %v9629_v56  ;;  %v9686_v56 = vcombine.high %v1494_v45, %v1498_v46  ;;  %v1542_v45 = vld [vmem:[#allocation8 + $0x1840] sm:$0xff] }
 0x431   :  { %7610 = vmatpush1.bf16.msra.mxu0 %v9631_v40  ;;  %7283 = vmatprep.subr.bf16.mxu1 %v9638_v57  ;;  %v9688_v40 = vcombine.high %v1495_v47, %v1499_v50  ;;  %v1502_v57 = vld [vmem:[#allocation8 + $0x1700] sm:$0xff]  ;;  %v1543_v50 = vld [vmem:[#allocation8 + $0x1848] sm:$0xff] }
 0x432   :  { %7611 = vmatprep.subr.bf16.mxu0 %v9640_v58  ;;  %v1506_v58 = vld [vmem:[#allocation8 + $0x1720] sm:$0xff] }
 0x433   :  { %v9693_v3 = vcombine.low %v1502_v57, %v1506_v58  ;;  %v1546_v46 = vld [vmem:[#allocation8 + $0x1860] sm:$0xff] }
 0x434   :  { %7284 = vmatpush1.bf16.msra.mxu1 %v9637_v0  ;;  %v9694_v0 = vcombine.high %v1502_v57, %v1506_v58  ;;  %v1550_v57 = vld [vmem:[#allocation8 + $0x1880] sm:$0xff] }
 0x435   :  { %7612 = vmatpush1.bf16.msra.mxu0 %v9639_v30  ;;  %7285 = vmatprep.subr.bf16.mxu1 %v9646_v32  ;;  %v9696_v30 = vcombine.high %v1503_v59, %v1507_v61  ;;  %v1510_v32 = vld [vmem:[#allocation8 + $0x1740] sm:$0xff] }
 0x436   :  { %7613 = vmatprep.subr.bf16.mxu0 %v9648_v34  ;;  %v1514_v34 = vld [vmem:[#allocation8 + $0x1760] sm:$0xff] }
 0x437   :  { %v9701_v12 = vcombine.low %v1510_v32, %v1514_v34  ;;  %v1554_v58 = vld [vmem:[#allocation8 + $0x18a0] sm:$0xff] }
 0x438   :  { %7286 = vmatpush1.bf16.msra.mxu1 %v9645_v5  ;;  %v9702_v5 = vcombine.high %v1510_v32, %v1514_v34  ;;  %v9742_v32 = vcombine.high %v1550_v57, %v1554_v58 }
 0x439   :  { %7614 = vmatpush1.bf16.msra.mxu0 %v9647_v6  ;;  %7287 = vmatprep.subr.bf16.mxu1 %v9654_v7  ;;  %v9704_v6 = vcombine.high %v1511_v35, %v1515_v36  ;;  %v1518_v7 = vld [vmem:[#allocation8 + $0x1780] sm:$0xff] }
 0x43a   :  { %7615 = vmatprep.subr.bf16.mxu0 %v9656_v9  ;;  %v1522_v9 = vld [vmem:[#allocation8 + $0x17a0] sm:$0xff] }
 0x43b   :  { %v9709_v1 = vcombine.low %v1518_v7, %v1522_v9  ;;  %v1558_v35 = vld [vmem:[#allocation8 + $0x18c0] sm:$0xff] }
 0x43c   :  { %7288 = vmatpush1.bf16.msra.mxu1 %v9653_v17  ;;  %v9710_v17 = vcombine.high %v1518_v7, %v1522_v9  ;;  %v1562_v36 = vld [vmem:[#allocation8 + $0x18e0] sm:$0xff] }
 0x43d   :  { %7616 = vmatpush1.bf16.msra.mxu0 %v9655_v23  ;;  %7289 = vmatprep.subr.bf16.mxu1 %v9662_v27  ;;  %v9712_v23 = vcombine.high %v1519_v10, %v1523_v11  ;;  %v1526_v27 = vld [vmem:[#allocation8 + $0x17c0] sm:$0xff]  ;;  %v9750_v7 = vcombine.high %v1558_v35, %v1562_v36 }
 0x43e   :  { %7617 = vmatprep.subr.bf16.mxu0 %v9664_v22  ;;  %v1530_v22 = vld [vmem:[#allocation8 + $0x17e0] sm:$0xff] }
 0x440   :  { %7290 = vmatpush1.bf16.msra.mxu1 %v9661_v26  ;;  %v9711_v26 = vcombine.low %v1519_v10, %v1523_v11  ;;  %v1566_v10 = vld [vmem:[#allocation8 + $0x1900] sm:$0xff] }
 0x441   :  { %7618 = vmatpush1.bf16.msra.mxu0 %v9663_v28  ;;  %7291 = vmatprep.subr.bf16.mxu1 %v9670_v29  ;;  %v9718_v28 = vcombine.high %v1526_v27, %v1530_v22  ;;  %v9720_v29 = vcombine.high %v1527_v24, %v1531_v25  ;;  %v1570_v11 = vld [vmem:[#allocation8 + $0x1920] sm:$0xff] }
 0x442   :  { %7619 = vmatprep.subr.bf16.mxu0 %v9672_v33  ;;  %v1534_v33 = vld [vmem:[#allocation8 + $0x1800] sm:$0xff] }
 0x443   :  { %v9725_v47 = vcombine.low %v1534_v33, %v1538_v15  ;;  %v1574_v24 = vld [vmem:[#allocation8 + $0x1940] sm:$0xff] }
 0x444   :  { %7292 = vmatpush1.bf16.msra.mxu1 %v9669_v38  ;;  %v9717_v38 = vcombine.low %v1526_v27, %v1530_v22  ;;  %v9758_v27 = vcombine.high %v1566_v10, %v1570_v11  ;;  %v1578_v25 = vld [vmem:[#allocation8 + $0x1960] sm:$0xff] }
 0x445   :  { %7620 = vmatpush1.bf16.msra.mxu0 %v9671_v39  ;;  %7293 = vmatprep.subr.bf16.mxu1 %v9678_v42  ;;  %v9726_v39 = vcombine.high %v1534_v33, %v1538_v15  ;;  %v9728_v42 = vcombine.high %v1535_v18, %v1539_v21  ;;  %v1582_v15 = vld [vmem:[#allocation8 + $0x1980] sm:$0xff] }
 0x446   :  { %7621 = vmatprep.subr.bf16.mxu0 %v9680_v44  ;;  %v1899_v44 = vcombine.high %v11243_v37, %v11243_v37 }
 0x448   :  { %7294 = vmatpush1.bf16.msra.mxu1 %v9677_v51  ;;  %v1547_v51 = vld [vmem:[#allocation8 + $0x1868] sm:$0xff]  ;;  %v11253_v59 = vrot.slane %v1899_v44, %v11026_v60 }
 0x449   :  { %7622 = vmatpush1.bf16.msra.mxu0 %v9679_v55  ;;  %7295 = vmatprep.subr.bf16.mxu1 %v9686_v56  ;;  %v11249_v55 = vcombine.high %v11230_v8, %v11230_v8  ;;  %v9727_v56 = vcombine.low %v1535_v18, %v1539_v21  ;;  %v9736_v61 = vcombine.high %v1543_v50, %v1547_v51  ;;  %v1586_v18 = vld [vmem:[#allocation8 + $0x19a0] sm:$0xff]  ;;  %v1583_v21 = vld [vmem:[#allocation8 + $0x1988] sm:$0xff] }
 0x44a   :  { %7623 = vmatprep.subr.bf16.mxu0 %v9688_v40  ;;  %v9734_v40 = vcombine.high %v1542_v45, %v1546_v46 }
 0x44c   :  { %7296 = vmatpush1.bf16.msra.mxu1 %v9685_v62  ;;  %v1551_v62 = vld [vmem:[#allocation8 + $0x1888] sm:$0xff] }
 0x44d   :  { %7624 = vmatpush1.bf16.msra.mxu0 %v9687_v63  ;;  %7297 = vmatprep.subr.bf16.mxu1 %v9694_v0  ;;  %v1555_v63 = vld [vmem:[#allocation8 + $0x18a8] sm:$0xff]  ;;  %v9733_v0 = vcombine.low %v1542_v45, %v1546_v46  ;;  %v1590_v45 = vld [vmem:[#allocation8 + $0x19c0] sm:$0xff] }
 0x44e   :  { %7625 = vmatprep.subr.bf16.mxu0 %v9696_v30  ;;  %v9735_v30 = vcombine.low %v1543_v50, %v1547_v51  ;;  %v9744_v34 = vcombine.high %v1551_v62, %v1555_v63  ;;  %v1594_v46 = vld [vmem:[#allocation8 + $0x19e0] sm:$0xff]  ;;  %v1595_v50 = vld [vmem:[#allocation8 + $0x19e8] sm:$0xff]  ;;  %v9773_v51 = vcombine.low %v1582_v15, %v1586_v18 }
 0x450   :  { %7298 = vmatpush1.bf16.msra.mxu1 %v9693_v3  ;;  %v1559_v3 = vld [vmem:[#allocation8 + $0x18c8] sm:$0xff] }
 0x451   :  { %7626 = vmatpush1.bf16.msra.mxu0 %v9695_v4  ;;  %7299 = vmatprep.subr.bf16.mxu1 %v9702_v5  ;;  %v1563_v4 = vld [vmem:[#allocation8 + $0x18e8] sm:$0xff]  ;;  %v9741_v5 = vcombine.low %v1550_v57, %v1554_v58  ;;  %v1598_v58 = vld [vmem:[#allocation8 + $0x1a00] sm:$0xff] }
 0x452   :  { %7627 = vmatprep.subr.bf16.mxu0 %v9704_v6  ;;  %v9743_v6 = vcombine.low %v1551_v62, %v1555_v63  ;;  %v9752_v9 = vcombine.high %v1559_v3, %v1563_v4  ;;  %v1599_v62 = vld [vmem:[#allocation8 + $0x1a08] sm:$0xff] }
 0x453   :  { %v1603_v63 = vld [vmem:[#allocation8 + $0x1a28] sm:$0xff] }
 0x454   :  { %7300 = vmatpush1.bf16.msra.mxu1 %v9701_v12  ;;  %v1567_v12 = vld [vmem:[#allocation8 + $0x1908] sm:$0xff] }
 0x455   :  { %7628 = vmatpush1.bf16.msra.mxu0 %v9703_v16  ;;  %7301 = vmatprep.subr.bf16.mxu1 %v9710_v17  ;;  %v1571_v16 = vld [vmem:[#allocation8 + $0x1928] sm:$0xff]  ;;  %v9749_v17 = vcombine.low %v1558_v35, %v1562_v36  ;;  %v1606_v35 = vld [vmem:[#allocation8 + $0x1a40] sm:$0xff] }
 0x456   :  { %7629 = vmatprep.subr.bf16.mxu0 %v9712_v23  ;;  %v9751_v23 = vcombine.low %v1559_v3, %v1563_v4  ;;  %v9760_v22 = vcombine.high %v1567_v12, %v1571_v16  ;;  %v1610_v36 = vld [vmem:[#allocation8 + $0x1a60] sm:$0xff]  ;;  %v1607_v3 = vld [vmem:[#allocation8 + $0x1a48] sm:$0xff] }
 0x457   :  { %v1611_v4 = vld [vmem:[#allocation8 + $0x1a68] sm:$0xff] }
 0x458   :  { %7302 = vmatpush1.bf16.msra.mxu1 %v9709_v1  ;;  %v1579_v1 = vld [vmem:[#allocation8 + $0x1968] sm:$0xff] }
 0x459   :  { %7630 = vmatpush1.bf16.msra.mxu0 %v9711_v26  ;;  %7303 = vmatprep.subr.bf16.mxu1 %v9718_v28  ;;  %v9757_v26 = vcombine.low %v1566_v10, %v1570_v11  ;;  %v9759_v28 = vcombine.low %v1567_v12, %v1571_v16  ;;  %v9768_v33 = vcombine.high %v1575_v53, %v1579_v1  ;;  %v1614_v10 = vld [vmem:[#allocation8 + $0x1a80] sm:$0xff]  ;;  %v1615_v12 = vld [vmem:[#allocation8 + $0x1a88] sm:$0xff] }
 0x45a   :  { %7631 = vmatprep.subr.bf16.mxu0 %v9720_v29  ;;  %v9766_v29 = vcombine.high %v1574_v24, %v1578_v25  ;;  %v1618_v11 = vld [vmem:[#allocation8 + $0x1aa0] sm:$0xff]  ;;  %v1619_v16 = vld [vmem:[#allocation8 + $0x1aa8] sm:$0xff] }
 0x45c   :  { %7304 = vmatpush1.bf16.msra.mxu1 %v9717_v38  ;;  %v1587_v38 = vld [vmem:[#allocation8 + $0x19a8] sm:$0xff] }
 0x45d   :  { %7632 = vmatpush1.bf16.msra.mxu0 %v9719_v19  ;;  %7314 = vmatprep.subr.bf16.mxu1 %v9726_v39  ;;  %v9765_v19 = vcombine.low %v1574_v24, %v1578_v25  ;;  %v9767_v39 = vcombine.low %v1575_v53, %v1579_v1  ;;  %v9776_v44 = vcombine.high %v1583_v21, %v1587_v38  ;;  %v1622_v24 = vld [vmem:[#allocation8 + $0x1ac0] sm:$0xff]  ;;  %v1623_v53 = vld [vmem:[#allocation8 + $0x1ac8] sm:$0xff] }
 0x45e   :  { %7642 = vmatprep.subr.bf16.mxu0 %v9728_v42  ;;  %v9774_v42 = vcombine.high %v1582_v15, %v1586_v18  ;;  %v1626_v25 = vld [vmem:[#allocation8 + $0x1ae0] sm:$0xff]  ;;  %v1627_v1 = vld [vmem:[#allocation8 + $0x1ae8] sm:$0xff] }
 0x45f   :  { %7306 = vmatmul.mubr.bf16.vlgmr.msra.gmra.mrb[8].mxu1 %v11249_v55  ;;  %v1630_v15 = vld [vmem:[#allocation8 + $0x1b00] sm:$0xff] }
 0x460   :  { %7634 = vmatmul.mubr.bf16.vlgmr.msra.gmra.mrb[8].mxu0 %v11249_v55  ;;  %7315 = vmatpush1.bf16.msra.mxu1 %v9725_v47  ;;  %v1591_v47 = vld [vmem:[#allocation8 + $0x19c8] sm:$0xff]  ;;  %v1634_v18 = vld [vmem:[#allocation8 + $0x1b20] sm:$0xff] }
 0x461   :  { %7346 = vmatprep.mubr.bf16.mxu1 %v11253_v59  ;;  %7643 = vmatpush1.bf16.msra.mxu0 %v9727_v56  ;;  %v9775_v56 = vcombine.low %v1583_v21, %v1587_v38  ;;  %v9784_v57 = vcombine.high %v1591_v47, %v1595_v50  ;;  %v1631_v21 = vld [vmem:[#allocation8 + $0x1b08] sm:$0xff] }
 0x462   :  { %7674 = vmatprep.mubr.bf16.mxu0 %v11253_v59  ;;  %7316 = vmatprep.subr.bf16.mxu1 %v9734_v40  ;;  %v9782_v40 = vcombine.high %v1590_v45, %v1594_v46  ;;  %v1635_v38 = vld [vmem:[#allocation8 + $0x1b28] sm:$0xff] }
 0x463   :  { %7644 = vmatprep.subr.bf16.mxu0 %v9736_v61  ;;  %v1602_v61 = vld [vmem:[#allocation8 + $0x1a20] sm:$0xff] }
 0x464   :  { %7317 = vmatpush1.bf16.msra.mxu1 %v9733_v0  ;;  %v9781_v0 = vcombine.low %v1590_v45, %v1594_v46  ;;  %v1638_v45 = vld [vmem:[#allocation8 + $0x1b40] sm:$0xff] }
 0x465   :  { %7645 = vmatpush1.bf16.msra.mxu0 %v9735_v30  ;;  %7318 = vmatprep.subr.bf16.mxu1 %v9742_v32  ;;  %v9783_v30 = vcombine.low %v1591_v47, %v1595_v50  ;;  %v9790_v32 = vcombine.high %v1598_v58, %v1602_v61  ;;  %v1642_v46 = vld [vmem:[#allocation8 + $0x1b60] sm:$0xff]  ;;  %v1639_v47 = vld [vmem:[#allocation8 + $0x1b48] sm:$0xff] }
 0x466   :  { %7646 = vmatprep.subr.bf16.mxu0 %v9744_v34  ;;  %v9792_v34 = vcombine.high %v1599_v62, %v1603_v63  ;;  %v1643_v50 = vld [vmem:[#allocation8 + $0x1b68] sm:$0xff] }
 0x468   :  { %7319 = vmatpush1.bf16.msra.mxu1 %v9741_v5  ;;  %v9789_v5 = vcombine.low %v1598_v58, %v1602_v61  ;;  %v1646_v58 = vld [vmem:[#allocation8 + $0x1b80] sm:$0xff] }
 0x469   :  { %7647 = vmatpush1.bf16.msra.mxu0 %v9743_v6  ;;  %7320 = vmatprep.subr.bf16.mxu1 %v9750_v7  ;;  %v9791_v6 = vcombine.low %v1599_v62, %v1603_v63  ;;  %v9798_v7 = vcombine.high %v1606_v35, %v1610_v36  ;;  %v1650_v61 = vld [vmem:[#allocation8 + $0x1ba0] sm:$0xff]  ;;  %v1647_v62 = vld [vmem:[#allocation8 + $0x1b88] sm:$0xff] }
 0x46a   :  { %7648 = vmatprep.subr.bf16.mxu0 %v9752_v9  ;;  %v9800_v9 = vcombine.high %v1607_v3, %v1611_v4  ;;  %v1651_v63 = vld [vmem:[#allocation8 + $0x1ba8] sm:$0xff] }
 0x46c   :  { %7321 = vmatpush1.bf16.msra.mxu1 %v9749_v17  ;;  %v9797_v17 = vcombine.low %v1606_v35, %v1610_v36  ;;  %v1654_v35 = vld [vmem:[#allocation8 + $0x1bc0] sm:$0xff] }
 0x46d   :  { %7649 = vmatpush1.bf16.msra.mxu0 %v9751_v23  ;;  %7322 = vmatprep.subr.bf16.mxu1 %v9758_v27  ;;  %v9799_v23 = vcombine.low %v1607_v3, %v1611_v4  ;;  %v9806_v27 = vcombine.high %v1614_v10, %v1618_v11  ;;  %v1658_v36 = vld [vmem:[#allocation8 + $0x1be0] sm:$0xff]  ;;  %v1655_v3 = vld [vmem:[#allocation8 + $0x1bc8] sm:$0xff] }
 0x46e   :  { %7650 = vmatprep.subr.bf16.mxu0 %v9760_v22  ;;  %v9808_v22 = vcombine.high %v1615_v12, %v1619_v16  ;;  %v1659_v4 = vld [vmem:[#allocation8 + $0x1be8] sm:$0xff] }
 0x470   :  { %7323 = vmatpush1.bf16.msra.mxu1 %v9757_v26  ;;  %v9805_v26 = vcombine.low %v1614_v10, %v1618_v11  ;;  %v1662_v10 = vld [vmem:[#allocation8 + $0x1c00] sm:$0xff] }
 0x471   :  { %7651 = vmatpush1.bf16.msra.mxu0 %v9759_v28  ;;  %7324 = vmatprep.subr.bf16.mxu1 %v9766_v29  ;;  %v9807_v28 = vcombine.low %v1615_v12, %v1619_v16  ;;  %v9814_v29 = vcombine.high %v1622_v24, %v1626_v25  ;;  %v1666_v11 = vld [vmem:[#allocation8 + $0x1c20] sm:$0xff]  ;;  %v1663_v12 = vld [vmem:[#allocation8 + $0x1c08] sm:$0xff] }
 0x472   :  { %7652 = vmatprep.subr.bf16.mxu0 %v9768_v33  ;;  %v9816_v33 = vcombine.high %v1623_v53, %v1627_v1  ;;  %v1667_v16 = vld [vmem:[#allocation8 + $0x1c28] sm:$0xff] }
 0x474   :  { %7325 = vmatpush1.bf16.msra.mxu1 %v9765_v19  ;;  %v9813_v19 = vcombine.low %v1622_v24, %v1626_v25  ;;  %v1670_v24 = vld [vmem:[#allocation8 + $0x1c40] sm:$0xff] }
 0x475   :  { %7653 = vmatpush1.bf16.msra.mxu0 %v9767_v39  ;;  %7326 = vmatprep.subr.bf16.mxu1 %v9774_v42  ;;  %v9815_v39 = vcombine.low %v1623_v53, %v1627_v1  ;;  %v9822_v42 = vcombine.high %v1630_v15, %v1634_v18  ;;  %v1674_v25 = vld [vmem:[#allocation8 + $0x1c60] sm:$0xff]  ;;  %v9853_v53 = vcombine.low %v1662_v10, %v1666_v11  ;;  %v1671_v1 = vld [vmem:[#allocation8 + $0x1c48] sm:$0xff] }
 0x476   :  { %7654 = vmatprep.subr.bf16.mxu0 %v9776_v44  ;;  %v9824_v44 = vcombine.high %v1631_v21, %v1635_v38 }
 0x478   :  { %7327 = vmatpush1.bf16.msra.mxu1 %v9773_v51  ;;  %v9821_v51 = vcombine.low %v1630_v15, %v1634_v18  ;;  %v1678_v15 = vld [vmem:[#allocation8 + $0x1c80] sm:$0xff] }
 0x479   :  { %7655 = vmatpush1.bf16.msra.mxu0 %v9775_v56  ;;  %7328 = vmatprep.subr.bf16.mxu1 %v9782_v40  ;;  %v9823_v56 = vcombine.low %v1631_v21, %v1635_v38  ;;  %v9830_v40 = vcombine.high %v1638_v45, %v1642_v46  ;;  %v1682_v18 = vld [vmem:[#allocation8 + $0x1ca0] sm:$0xff]  ;;  %v11265_v21 = vcombine.high %v11253_v59, %v11253_v59 }
 0x47a   :  { %7656 = vmatprep.subr.bf16.mxu0 %v9784_v57  ;;  %v9832_v57 = vcombine.high %v1639_v47, %v1643_v50 }
 0x47c   :  { %7329 = vmatpush1.bf16.msra.mxu1 %v9781_v0  ;;  %v9829_v0 = vcombine.low %v1638_v45, %v1642_v46  ;;  %v1686_v45 = vld [vmem:[#allocation8 + $0x1cc0] sm:$0xff] }
 0x47d   :  { %7657 = vmatpush1.bf16.msra.mxu0 %v9783_v30  ;;  %7330 = vmatprep.subr.bf16.mxu1 %v9790_v32  ;;  %v9831_v30 = vcombine.low %v1639_v47, %v1643_v50  ;;  %v9838_v32 = vcombine.high %v1646_v58, %v1650_v61  ;;  %v1690_v46 = vld [vmem:[#allocation8 + $0x1ce0] sm:$0xff]  ;;  %v1687_v47 = vld [vmem:[#allocation8 + $0x1cc8] sm:$0xff] }
 0x47e   :  { %7658 = vmatprep.subr.bf16.mxu0 %v9792_v34  ;;  %v9840_v34 = vcombine.high %v1647_v62, %v1651_v63  ;;  %v1691_v50 = vld [vmem:[#allocation8 + $0x1ce8] sm:$0xff] }
 0x480   :  { %7331 = vmatpush1.bf16.msra.mxu1 %v9789_v5  ;;  %v9837_v5 = vcombine.low %v1646_v58, %v1650_v61  ;;  %v1694_v58 = vld [vmem:[#allocation8 + $0x1d00] sm:$0xff] }
 0x481   :  { %7659 = vmatpush1.bf16.msra.mxu0 %v9791_v6  ;;  %7332 = vmatprep.subr.bf16.mxu1 %v9798_v7  ;;  %v9839_v6 = vcombine.low %v1647_v62, %v1651_v63  ;;  %v9846_v7 = vcombine.high %v1654_v35, %v1658_v36  ;;  %v1698_v61 = vld [vmem:[#allocation8 + $0x1d20] sm:$0xff]  ;;  %v1695_v62 = vld [vmem:[#allocation8 + $0x1d08] sm:$0xff] }
 0x482   :  { %7660 = vmatprep.subr.bf16.mxu0 %v9800_v9  ;;  %v9848_v9 = vcombine.high %v1655_v3, %v1659_v4  ;;  %v1699_v63 = vld [vmem:[#allocation8 + $0x1d28] sm:$0xff] }
 0x484   :  { %7333 = vmatpush1.bf16.msra.mxu1 %v9797_v17  ;;  %v9845_v17 = vcombine.low %v1654_v35, %v1658_v36  ;;  %v1702_v35 = vld [vmem:[#allocation8 + $0x1d40] sm:$0xff] }
 0x485   :  { %7661 = vmatpush1.bf16.msra.mxu0 %v9799_v23  ;;  %7334 = vmatprep.subr.bf16.mxu1 %v9806_v27  ;;  %v9847_v23 = vcombine.low %v1655_v3, %v1659_v4  ;;  %v9854_v27 = vcombine.high %v1662_v10, %v1666_v11  ;;  %v1706_v36 = vld [vmem:[#allocation8 + $0x1d60] sm:$0xff]  ;;  %v1703_v3 = vld [vmem:[#allocation8 + $0x1d48] sm:$0xff] }
 0x486   :  { %7662 = vmatprep.subr.bf16.mxu0 %v9808_v22  ;;  %v9856_v22 = vcombine.high %v1663_v12, %v1667_v16  ;;  %v1707_v4 = vld [vmem:[#allocation8 + $0x1d68] sm:$0xff]  ;;  %v1710_v10 = vld [vmem:[#allocation8 + $0x1d80] sm:$0xff] }
 0x487   :  { %v1714_v11 = vld [vmem:[#allocation8 + $0x1da0] sm:$0xff] }
 0x488   :  { %7335 = vmatpush1.bf16.msra.mxu1 %v9805_v26  ;;  %v1675_v26 = vld [vmem:[#allocation8 + $0x1c68] sm:$0xff] }
 0x489   :  { %7663 = vmatpush1.bf16.msra.mxu0 %v9807_v28  ;;  %7336 = vmatprep.subr.bf16.mxu1 %v9814_v29  ;;  %v11260_v28 = vrot.slane %v11243_v37, %v11026_v60  ;;  %v9855_v29 = vcombine.low %v1663_v12, %v1667_v16  ;;  %v9864_v38 = vcombine.high %v1671_v1, %v1675_v26  ;;  %v1711_v12 = vld [vmem:[#allocation8 + $0x1d88] sm:$0xff] }
 0x48a   :  { %7664 = vmatprep.subr.bf16.mxu0 %v9816_v33  ;;  %v9862_v33 = vcombine.high %v1670_v24, %v1674_v25  ;;  %v9861_v60 = vcombine.low %v1670_v24, %v1674_v25  ;;  %v9863_v37 = vcombine.low %v1671_v1, %v1675_v26  ;;  %v1715_v16 = vld [vmem:[#allocation8 + $0x1da8] sm:$0xff]  ;;  %v1718_v24 = vld [vmem:[#allocation8 + $0x1dc0] sm:$0xff]  ;;  %v9901_v26 = vcombine.low %v1710_v10, %v1714_v11 }
 0x48b   :  { %v1722_v25 = vld [vmem:[#allocation8 + $0x1de0] sm:$0xff]  ;;  %v1723_v1 = vld [vmem:[#allocation8 + $0x1de8] sm:$0xff] }
 0x48c   :  { %7337 = vmatpush1.bf16.msra.mxu1 %v9813_v19  ;;  %v1679_v19 = vld [vmem:[#allocation8 + $0x1c88] sm:$0xff] }
 0x48d   :  { %7665 = vmatpush1.bf16.msra.mxu0 %v9815_v39  ;;  %7338 = vmatprep.subr.bf16.mxu1 %v9822_v42  ;;  %v1683_v39 = vld [vmem:[#allocation8 + $0x1ca8] sm:$0xff]  ;;  %v9870_v42 = vcombine.high %v1678_v15, %v1682_v18 }
 0x48e   :  { %7666 = vmatprep.subr.bf16.mxu0 %v9824_v44  ;;  %v9872_v44 = vcombine.high %v1679_v19, %v1683_v39 }
 0x490   :  { %7339 = vmatpush1.bf16.msra.mxu1 %v9821_v51  ;;  %v9869_v51 = vcombine.low %v1678_v15, %v1682_v18  ;;  %v1726_v18 = vld [vmem:[#allocation8 + $0x1e00] sm:$0xff] }
 0x491   :  { %7667 = vmatpush1.bf16.msra.mxu0 %v9823_v56  ;;  %7340 = vmatprep.subr.bf16.mxu1 %v9830_v40  ;;  %v9871_v56 = vcombine.low %v1679_v19, %v1683_v39  ;;  %v9878_v40 = vcombine.high %v1686_v45, %v1690_v46  ;;  %v1727_v19 = vld [vmem:[#allocation8 + $0x1e08] sm:$0xff] }
 0x492   :  { %7668 = vmatprep.subr.bf16.mxu0 %v9832_v57  ;;  %v9880_v57 = vcombine.high %v1687_v47, %v1691_v50  ;;  %v1731_v39 = vld [vmem:[#allocation8 + $0x1e28] sm:$0xff] }
 0x494   :  { %7341 = vmatpush1.bf16.msra.mxu1 %v9829_v0  ;;  %v9877_v0 = vcombine.low %v1686_v45, %v1690_v46  ;;  %v1734_v45 = vld [vmem:[#allocation8 + $0x1e40] sm:$0xff] }
 0x495   :  { %7669 = vmatpush1.bf16.msra.mxu0 %v9831_v30  ;;  %7342 = vmatprep.subr.bf16.mxu1 %v9838_v32  ;;  %v9879_v30 = vcombine.low %v1687_v47, %v1691_v50  ;;  %v9886_v32 = vcombine.high %v1694_v58, %v1698_v61  ;;  %v1738_v46 = vld [vmem:[#allocation8 + $0x1e60] sm:$0xff]  ;;  %v1735_v47 = vld [vmem:[#allocation8 + $0x1e48] sm:$0xff] }
 0x496   :  { %7670 = vmatprep.subr.bf16.mxu0 %v9840_v34  ;;  %v9888_v34 = vcombine.high %v1695_v62, %v1699_v63  ;;  %v1739_v50 = vld [vmem:[#allocation8 + $0x1e68] sm:$0xff] }
 0x498   :  { %7343 = vmatpush1.bf16.msra.mxu1 %v9837_v5  ;;  %v9885_v5 = vcombine.low %v1694_v58, %v1698_v61  ;;  %v1742_v58 = vld [vmem:[#allocation8 + $0x1e80] sm:$0xff] }
 0x499   :  { %7671 = vmatpush1.bf16.msra.mxu0 %v9839_v6  ;;  %7344 = vmatprep.subr.bf16.mxu1 %v9846_v7  ;;  %v9887_v6 = vcombine.low %v1695_v62, %v1699_v63  ;;  %v9894_v7 = vcombine.high %v1702_v35, %v1706_v36  ;;  %v1746_v61 = vld [vmem:[#allocation8 + $0x1ea0] sm:$0xff]  ;;  %v1743_v62 = vld [vmem:[#allocation8 + $0x1e88] sm:$0xff] }
 0x49a   :  { %7672 = vmatprep.subr.bf16.mxu0 %v9848_v9  ;;  %v9896_v9 = vcombine.high %v1703_v3, %v1707_v4  ;;  %v1747_v63 = vld [vmem:[#allocation8 + $0x1ea8] sm:$0xff] }
 0x49c   :  { %7345 = vmatpush1.bf16.msra.mxu1 %v9845_v17  ;;  %v9893_v17 = vcombine.low %v1702_v35, %v1706_v36  ;;  %v1750_v35 = vld [vmem:[#allocation8 + $0x1ec0] sm:$0xff] }
 0x49d   :  { %7673 = vmatpush1.bf16.msra.mxu0 %v9847_v23  ;;  %7355 = vmatprep.subr.bf16.mxu1 %v9854_v27  ;;  %v9895_v23 = vcombine.low %v1703_v3, %v1707_v4  ;;  %v9902_v27 = vcombine.high %v1710_v10, %v1714_v11  ;;  %v1754_v36 = vld [vmem:[#allocation8 + $0x1ee0] sm:$0xff]  ;;  %v1751_v3 = vld [vmem:[#allocation8 + $0x1ec8] sm:$0xff] }
 0x49e   :  { %7683 = vmatprep.subr.bf16.mxu0 %v9856_v22  ;;  %v9904_v22 = vcombine.high %v1711_v12, %v1715_v16  ;;  %v1755_v4 = vld [vmem:[#allocation8 + $0x1ee8] sm:$0xff]  ;;  %v1758_v10 = vld [vmem:[#allocation8 + $0x1f00] sm:$0xff] }
 0x49f   :  { %7347 = vmatmul.mubr.bf16.vlgmr.msra.gmra.mrb[8].mxu1 %v11260_v28  ;;  %v1762_v11 = vld [vmem:[#allocation8 + $0x1f20] sm:$0xff] }
 0x4a0   :  { %7675 = vmatmul.mubr.bf16.vlgmr.msra.gmra.mrb[8].mxu0 %v11260_v28  ;;  %7356 = vmatpush1.bf16.msra.mxu1 %v9853_v53  ;;  %v1719_v53 = vld [vmem:[#allocation8 + $0x1dc8] sm:$0xff] }
 0x4a1   :  { %7387 = vmatprep.mubr.bf16.mxu1 %v11265_v21  ;;  %7684 = vmatpush1.bf16.msra.mxu0 %v9855_v29  ;;  %v9903_v29 = vcombine.low %v1711_v12, %v1715_v16  ;;  %v9912_v15 = vcombine.high %v1719_v53, %v1723_v1  ;;  %v1759_v12 = vld [vmem:[#allocation8 + $0x1f08] sm:$0xff] }
 0x4a2   :  { %7715 = vmatprep.mubr.bf16.mxu0 %v11265_v21  ;;  %7357 = vmatprep.subr.bf16.mxu1 %v9862_v33  ;;  %v9910_v33 = vcombine.high %v1718_v24, %v1722_v25  ;;  %v1763_v16 = vld [vmem:[#allocation8 + $0x1f28] sm:$0xff] }
 0x4a3   :  { %7685 = vmatprep.subr.bf16.mxu0 %v9864_v38  ;;  %v1730_v38 = vld [vmem:[#allocation8 + $0x1e20] sm:$0xff] }
 0x4a4   :  { %7358 = vmatpush1.bf16.msra.mxu1 %v9861_v60  ;;  %v9909_v60 = vcombine.low %v1718_v24, %v1722_v25  ;;  %v1766_v24 = vld [vmem:[#allocation8 + $0x1f40] sm:$0xff] }
 0x4a5   :  { %7686 = vmatpush1.bf16.msra.mxu0 %v9863_v37  ;;  %7359 = vmatprep.subr.bf16.mxu1 %v9870_v42  ;;  %v9911_v37 = vcombine.low %v1719_v53, %v1723_v1  ;;  %v9918_v42 = vcombine.high %v1726_v18, %v1730_v38  ;;  %v1770_v25 = vld [vmem:[#allocation8 + $0x1f60] sm:$0xff]  ;;  %v1767_v53 = vld [vmem:[#allocation8 + $0x1f48] sm:$0xff] }
 0x4a6   :  { %7687 = vmatprep.subr.bf16.mxu0 %v9872_v44  ;;  %v9920_v44 = vcombine.high %v1727_v19, %v1731_v39  ;;  %v1771_v1 = vld [vmem:[#allocation8 + $0x1f68] sm:$0xff] }
 0x4a8   :  { %7360 = vmatpush1.bf16.msra.mxu1 %v9869_v51  ;;  %v9917_v51 = vcombine.low %v1726_v18, %v1730_v38  ;;  %v1774_v18 = vld [vmem:[#allocation8 + $0x1f80] sm:$0xff] }
 0x4a9   :  { %7688 = vmatpush1.bf16.msra.mxu0 %v9871_v56  ;;  %7361 = vmatprep.subr.bf16.mxu1 %v9878_v40  ;;  %v9919_v56 = vcombine.low %v1727_v19, %v1731_v39  ;;  %v9926_v40 = vcombine.high %v1734_v45, %v1738_v46  ;;  %v1778_v38 = vld [vmem:[#allocation8 + $0x1fa0] sm:$0xff]  ;;  %v1775_v19 = vld [vmem:[#allocation8 + $0x1f88] sm:$0xff] }
 0x4aa   :  { %7689 = vmatprep.subr.bf16.mxu0 %v9880_v57  ;;  %v9928_v57 = vcombine.high %v1735_v47, %v1739_v50  ;;  %v1779_v39 = vld [vmem:[#allocation8 + $0x1fa8] sm:$0xff] }
 0x4ac   :  { %7362 = vmatpush1.bf16.msra.mxu1 %v9877_v0  ;;  %v9925_v0 = vcombine.low %v1734_v45, %v1738_v46  ;;  %v1782_v45 = vld [vmem:[#allocation8 + $0x1fc0] sm:$0xff] }
 0x4ad   :  { %7690 = vmatpush1.bf16.msra.mxu0 %v9879_v30  ;;  %7363 = vmatprep.subr.bf16.mxu1 %v9886_v32  ;;  %v9927_v30 = vcombine.low %v1735_v47, %v1739_v50  ;;  %v9934_v32 = vcombine.high %v1742_v58, %v1746_v61  ;;  %v1786_v46 = vld [vmem:[#allocation8 + $0x1fe0] sm:$0xff]  ;;  %v1783_v47 = vld [vmem:[#allocation8 + $0x1fc8] sm:$0xff] }
 0x4ae   :  { %7691 = vmatprep.subr.bf16.mxu0 %v9888_v34  ;;  %v9936_v34 = vcombine.high %v1743_v62, %v1747_v63  ;;  %v1787_v50 = vld [vmem:[#allocation8 + $0x1fe8] sm:$0xff] }
 0x4b0   :  { %7364 = vmatpush1.bf16.msra.mxu1 %v9885_v5  ;;  %v9933_v5 = vcombine.low %v1742_v58, %v1746_v61  ;;  %v768_v58 = vld [vmem:[#allocation8 + $0x10] sm:$0xff] }
 0x4b1   :  { %7692 = vmatpush1.bf16.msra.mxu0 %v9887_v6  ;;  %7365 = vmatprep.subr.bf16.mxu1 %v9894_v7  ;;  %v9935_v6 = vcombine.low %v1743_v62, %v1747_v63  ;;  %v9942_v7 = vcombine.high %v1750_v35, %v1754_v36  ;;  %v772_v61 = vld [vmem:[#allocation8 + $0x30] sm:$0xff]  ;;  %v769_v62 = vld [vmem:[#allocation8 + $0x18] sm:$0xff] }
 0x4b2   :  { %7693 = vmatprep.subr.bf16.mxu0 %v9896_v9  ;;  %v9944_v9 = vcombine.high %v1751_v3, %v1755_v4  ;;  %v773_v63 = vld [vmem:[#allocation8 + $0x38] sm:$0xff] }
 0x4b4   :  { %7366 = vmatpush1.bf16.msra.mxu1 %v9893_v17  ;;  %v9941_v17 = vcombine.low %v1750_v35, %v1754_v36  ;;  %v776_v35 = vld [vmem:[#allocation8 + $0x50] sm:$0xff] }
 0x4b5   :  { %7694 = vmatpush1.bf16.msra.mxu0 %v9895_v23  ;;  %7367 = vmatprep.subr.bf16.mxu1 %v9902_v27  ;;  %v9943_v23 = vcombine.low %v1751_v3, %v1755_v4  ;;  %v9950_v27 = vcombine.high %v1758_v10, %v1762_v11  ;;  %v780_v36 = vld [vmem:[#allocation8 + $0x70] sm:$0xff]  ;;  %v8961_v3 = vcombine.low %v768_v58, %v772_v61  ;;  %v777_v4 = vld [vmem:[#allocation8 + $0x58] sm:$0xff] }
 0x4b6   :  { %7695 = vmatprep.subr.bf16.mxu0 %v9904_v22  ;;  %v9952_v22 = vcombine.high %v1759_v12, %v1763_v16 }
 0x4b8   :  { %7368 = vmatpush1.bf16.msra.mxu1 %v9901_v26  ;;  %v9949_v26 = vcombine.low %v1758_v10, %v1762_v11  ;;  %v784_v10 = vld [vmem:[#allocation8 + $0x90] sm:$0xff] }
 0x4b9   :  { %7696 = vmatpush1.bf16.msra.mxu0 %v9903_v29  ;;  %7369 = vmatprep.subr.bf16.mxu1 %v9910_v33  ;;  %v9951_v29 = vcombine.low %v1759_v12, %v1763_v16  ;;  %v9958_v33 = vcombine.high %v1766_v24, %v1770_v25  ;;  %v788_v11 = vld [vmem:[#allocation8 + $0xb0] sm:$0xff]  ;;  %v785_v16 = vld [vmem:[#allocation8 + $0x98] sm:$0xff] }
 0x4ba   :  { %7697 = vmatprep.subr.bf16.mxu0 %v9912_v15  ;;  %v9960_v15 = vcombine.high %v1767_v53, %v1771_v1 }
 0x4bc   :  { %7370 = vmatpush1.bf16.msra.mxu1 %v9909_v60  ;;  %v9957_v60 = vcombine.low %v1766_v24, %v1770_v25  ;;  %v792_v25 = vld [vmem:[#allocation8 + $0xd0] sm:$0xff] }
 0x4bd   :  { %7698 = vmatpush1.bf16.msra.mxu0 %v9911_v37  ;;  %7371 = vmatprep.subr.bf16.mxu1 %v9918_v42  ;;  %v9959_v37 = vcombine.low %v1767_v53, %v1771_v1  ;;  %v9966_v42 = vcombine.high %v1774_v18, %v1778_v38  ;;  %v796_v53 = vld [vmem:[#allocation8 + $0xf0] sm:$0xff]  ;;  %v793_v1 = vld [vmem:[#allocation8 + $0xd8] sm:$0xff] }
 0x4be   :  { %7699 = vmatprep.subr.bf16.mxu0 %v9920_v44  ;;  %v9968_v44 = vcombine.high %v1775_v19, %v1779_v39 }
 0x4c0   :  { %7372 = vmatpush1.bf16.msra.mxu1 %v9917_v51  ;;  %v9965_v51 = vcombine.low %v1774_v18, %v1778_v38  ;;  %v800_v38 = vld [vmem:[#allocation8 + $0x110] sm:$0xff] }
 0x4c1   :  { %7700 = vmatpush1.bf16.msra.mxu0 %v9919_v56  ;;  %7373 = vmatprep.subr.bf16.mxu1 %v9926_v40  ;;  %v9967_v56 = vcombine.low %v1775_v19, %v1779_v39  ;;  %v9974_v40 = vcombine.high %v1782_v45, %v1786_v46  ;;  %v804_v19 = vld [vmem:[#allocation8 + $0x130] sm:$0xff]  ;;  %v801_v39 = vld [vmem:[#allocation8 + $0x118] sm:$0xff] }
 0x4c2   :  { %7701 = vmatprep.subr.bf16.mxu0 %v9928_v57  ;;  %v9976_v57 = vcombine.high %v1783_v47, %v1787_v50 }
 0x4c4   :  { %7374 = vmatpush1.bf16.msra.mxu1 %v9925_v0  ;;  %v9973_v0 = vcombine.low %v1782_v45, %v1786_v46  ;;  %v808_v45 = vld [vmem:[#allocation8 + $0x150] sm:$0xff] }
 0x4c5   :  { %7702 = vmatpush1.bf16.msra.mxu0 %v9927_v30  ;;  %7375 = vmatprep.subr.bf16.mxu1 %v9934_v32  ;;  %v9975_v30 = vcombine.low %v1783_v47, %v1787_v50  ;;  %v8962_v32 = vcombine.high %v768_v58, %v772_v61  ;;  %v812_v46 = vld [vmem:[#allocation8 + $0x170] sm:$0xff]  ;;  %v809_v47 = vld [vmem:[#allocation8 + $0x158] sm:$0xff] }
 0x4c6   :  { %7703 = vmatprep.subr.bf16.mxu0 %v9936_v34  ;;  %v8964_v34 = vcombine.high %v769_v62, %v773_v63  ;;  %v813_v50 = vld [vmem:[#allocation8 + $0x178] sm:$0xff]  ;;  %v816_v58 = vld [vmem:[#allocation8 + $0x190] sm:$0xff] }
 0x4c7   :  { %v820_v61 = vld [vmem:[#allocation8 + $0x1b0] sm:$0xff] }
 0x4c8   :  { %7376 = vmatpush1.bf16.msra.mxu1 %v9933_v5  ;;  %v781_v5 = vld [vmem:[#allocation8 + $0x78] sm:$0xff] }
 0x4c9   :  { %7704 = vmatpush1.bf16.msra.mxu0 %v9935_v6  ;;  %7377 = vmatprep.subr.bf16.mxu1 %v9942_v7  ;;  %v11272_v6 = vcombine.high %v11260_v28, %v11260_v28  ;;  %v8963_v7 = vcombine.low %v769_v62, %v773_v63  ;;  %v8972_v12 = vcombine.high %v777_v4, %v781_v5  ;;  %v817_v62 = vld [vmem:[#allocation8 + $0x198] sm:$0xff] }
 0x4ca   :  { %7705 = vmatprep.subr.bf16.mxu0 %v9944_v9  ;;  %v8970_v9 = vcombine.high %v776_v35, %v780_v36  ;;  %v821_v63 = vld [vmem:[#allocation8 + $0x1b8] sm:$0xff] }
 0x4cc   :  { %7378 = vmatpush1.bf16.msra.mxu1 %v9941_v17  ;;  %v789_v17 = vld [vmem:[#allocation8 + $0xb8] sm:$0xff] }
 0x4cd   :  { %7706 = vmatpush1.bf16.msra.mxu0 %v9943_v23  ;;  %7379 = vmatprep.subr.bf16.mxu1 %v9950_v27  ;;  %v8969_v23 = vcombine.low %v776_v35, %v780_v36  ;;  %v8971_v27 = vcombine.low %v777_v4, %v781_v5  ;;  %v8980_v24 = vcombine.high %v785_v16, %v789_v17  ;;  %v824_v35 = vld [vmem:[#allocation8 + $0x1d0] sm:$0xff]  ;;  %v829_v4 = vld [vmem:[#allocation8 + $0x1f8] sm:$0xff] }
 0x4ce   :  { %7707 = vmatprep.subr.bf16.mxu0 %v9952_v22  ;;  %v8978_v22 = vcombine.high %v784_v10, %v788_v11  ;;  %v828_v36 = vld [vmem:[#allocation8 + $0x1f0] sm:$0xff]  ;;  %v9009_v5 = vcombine.low %v816_v58, %v820_v61 }
 0x4d0   :  { %7380 = vmatpush1.bf16.msra.mxu1 %v9949_v26  ;;  %v797_v26 = vld [vmem:[#allocation8 + $0xf8] sm:$0xff] }
 0x4d1   :  { %7708 = vmatpush1.bf16.msra.mxu0 %v9951_v29  ;;  %7381 = vmatprep.subr.bf16.mxu1 %v9958_v33  ;;  %v8977_v29 = vcombine.low %v784_v10, %v788_v11  ;;  %v8979_v33 = vcombine.low %v785_v16, %v789_v17  ;;  %v8988_v18 = vcombine.high %v793_v1, %v797_v26  ;;  %v832_v11 = vld [vmem:[#allocation8 + $0x210] sm:$0xff]  ;;  %v833_v16 = vld [vmem:[#allocation8 + $0x218] sm:$0xff] }
 0x4d2   :  { %7709 = vmatprep.subr.bf16.mxu0 %v9960_v15  ;;  %v8986_v15 = vcombine.high %v792_v25, %v796_v53  ;;  %v837_v17 = vld [vmem:[#allocation8 + $0x238] sm:$0xff] }
 0x4d4   :  { %7382 = vmatpush1.bf16.msra.mxu1 %v9957_v60  ;;  %v805_v60 = vld [vmem:[#allocation8 + $0x138] sm:$0xff] }
 0x4d5   :  { %7710 = vmatpush1.bf16.msra.mxu0 %v9959_v37  ;;  %7383 = vmatprep.subr.bf16.mxu1 %v9966_v42  ;;  %v8987_v37 = vcombine.low %v793_v1, %v797_v26  ;;  %v8994_v42 = vcombine.high %v800_v38, %v804_v19  ;;  %v841_v1 = vld [vmem:[#allocation8 + $0x258] sm:$0xff] }
 0x4d6   :  { %7711 = vmatprep.subr.bf16.mxu0 %v9968_v44  ;;  %v8996_v44 = vcombine.high %v801_v39, %v805_v60  ;;  %v845_v26 = vld [vmem:[#allocation8 + $0x278] sm:$0xff] }
 0x4d8   :  { %7384 = vmatpush1.bf16.msra.mxu1 %v9965_v51  ;;  %v8993_v51 = vcombine.low %v800_v38, %v804_v19  ;;  %v848_v38 = vld [vmem:[#allocation8 + $0x290] sm:$0xff] }
 0x4d9   :  { %7712 = vmatpush1.bf16.msra.mxu0 %v9967_v56  ;;  %7385 = vmatprep.subr.bf16.mxu1 %v9974_v40  ;;  %v8995_v56 = vcombine.low %v801_v39, %v805_v60  ;;  %v9002_v40 = vcombine.high %v808_v45, %v812_v46  ;;  %v852_v19 = vld [vmem:[#allocation8 + $0x2b0] sm:$0xff]  ;;  %v849_v39 = vld [vmem:[#allocation8 + $0x298] sm:$0xff] }
 0x4da   :  { %7713 = vmatprep.subr.bf16.mxu0 %v9976_v57  ;;  %v9004_v57 = vcombine.high %v809_v47, %v813_v50  ;;  %v853_v60 = vld [vmem:[#allocation8 + $0x2b8] sm:$0xff] }
 0x4dc   :  { %7386 = vmatpush1.bf16.msra.mxu1 %v9973_v0  ;;  %v9001_v0 = vcombine.low %v808_v45, %v812_v46  ;;  %v856_v45 = vld [vmem:[#allocation8 + $0x2d0] sm:$0xff] }
 0x4dd   :  { %7714 = vmatpush1.bf16.msra.mxu0 %v9975_v30  ;;  %7724 = vmatprep.subr.bf16.mxu1 %v8962_v32  ;;  %v9003_v30 = vcombine.low %v809_v47, %v813_v50  ;;  %v9010_v32 = vcombine.high %v816_v58, %v820_v61  ;;  %v860_v46 = vld [vmem:[#allocation8 + $0x2f0] sm:$0xff]  ;;  %v857_v47 = vld [vmem:[#allocation8 + $0x2d8] sm:$0xff] }
 0x4de   :  { %8052 = vmatprep.subr.bf16.mxu0 %v8964_v34  ;;  %v9012_v34 = vcombine.high %v817_v62, %v821_v63  ;;  %v861_v50 = vld [vmem:[#allocation8 + $0x2f8] sm:$0xff]  ;;  %v864_v58 = vld [vmem:[#allocation8 + $0x310] sm:$0xff] }
 0x4df   :  { %7388 = vmatmul.mubr.bf16.vlgmr.msra.gmra.mrb[8].mxu1 %v11272_v6  ;;  %v868_v61 = vld [vmem:[#allocation8 + $0x330] sm:$0xff] }
 0x4e0   :  { %7716 = vmatmul.mubr.bf16.vlgmr.msra.gmra.mrb[8].mxu0 %v11272_v6  ;;  %7725 = vmatpush1.bf16.msra.mxu1 %v8961_v3  ;;  %v825_v3 = vld [vmem:[#allocation8 + $0x1d8] sm:$0xff] }
 0x4e1   :  { %7756 = vmatprep.mubr.bf16.mxu1 %v11158_v48  ;;  %8053 = vmatpush1.bf16.msra.mxu0 %v8963_v7  ;;  %v9011_v7 = vcombine.low %v817_v62, %v821_v63  ;;  %v9020_v10 = vcombine.high %v825_v3, %v829_v4  ;;  %v865_v62 = vld [vmem:[#allocation8 + $0x318] sm:$0xff] }
 0x4e2   :  { %8084 = vmatprep.mubr.bf16.mxu0 %v11158_v48  ;;  %7726 = vmatprep.subr.bf16.mxu1 %v8970_v9  ;;  %v8985_v48 = vcombine.low %v792_v25, %v796_v53  ;;  %v9018_v9 = vcombine.high %v824_v35, %v828_v36  ;;  %v840_v25 = vld [vmem:[#allocation8 + $0x250] sm:$0xff]  ;;  %v869_v63 = vld [vmem:[#allocation8 + $0x338] sm:$0xff] }
 0x4e3   :  { %8054 = vmatprep.subr.bf16.mxu0 %v8972_v12  ;;  %v836_v12 = vld [vmem:[#allocation8 + $0x230] sm:$0xff] }
 0x4e4   :  { %7727 = vmatpush1.bf16.msra.mxu1 %v8969_v23  ;;  %v9017_v23 = vcombine.low %v824_v35, %v828_v36  ;;  %v844_v53 = vld [vmem:[#allocation8 + $0x270] sm:$0xff] }
 0x4e5   :  { %8055 = vmatpush1.bf16.msra.mxu0 %v8971_v27  ;;  %7728 = vmatprep.subr.bf16.mxu1 %v8978_v22  ;;  %v9019_v27 = vcombine.low %v825_v3, %v829_v4  ;;  %v9026_v22 = vcombine.high %v832_v11, %v836_v12  ;;  %v872_v35 = vld [vmem:[#allocation8 + $0x350] sm:$0xff]  ;;  %v873_v3 = vld [vmem:[#allocation8 + $0x358] sm:$0xff] }
 0x4e6   :  { %8056 = vmatprep.subr.bf16.mxu0 %v8980_v24  ;;  %v9028_v24 = vcombine.high %v833_v16, %v837_v17  ;;  %v876_v36 = vld [vmem:[#allocation8 + $0x370] sm:$0xff]  ;;  %v877_v4 = vld [vmem:[#allocation8 + $0x378] sm:$0xff] }
 0x4e8   :  { %7729 = vmatpush1.bf16.msra.mxu1 %v8977_v29  ;;  %v9025_v29 = vcombine.low %v832_v11, %v836_v12  ;;  %v880_v11 = vld [vmem:[#allocation8 + $0x390] sm:$0xff] }
 0x4e9   :  { %8057 = vmatpush1.bf16.msra.mxu0 %v8979_v33  ;;  %7730 = vmatprep.subr.bf16.mxu1 %v8986_v15  ;;  %v9027_v33 = vcombine.low %v833_v16, %v837_v17  ;;  %v9034_v15 = vcombine.high %v840_v25, %v844_v53  ;;  %v884_v12 = vld [vmem:[#allocation8 + $0x3b0] sm:$0xff]  ;;  %v881_v16 = vld [vmem:[#allocation8 + $0x398] sm:$0xff] }
 0x4ea   :  { %8058 = vmatprep.subr.bf16.mxu0 %v8988_v18  ;;  %v9036_v18 = vcombine.high %v841_v1, %v845_v26  ;;  %v885_v17 = vld [vmem:[#allocation8 + $0x3b8] sm:$0xff] }
 0x4ec   :  { %7731 = vmatpush1.bf16.msra.mxu1 %v8985_v48  ;;  %v9033_v48 = vcombine.low %v840_v25, %v844_v53  ;;  %v888_v25 = vld [vmem:[#allocation8 + $0x3d0] sm:$0xff] }
 0x4ed   :  { %8059 = vmatpush1.bf16.msra.mxu0 %v8987_v37  ;;  %7732 = vmatprep.subr.bf16.mxu1 %v8994_v42  ;;  %v9035_v37 = vcombine.low %v841_v1, %v845_v26  ;;  %v9042_v42 = vcombine.high %v848_v38, %v852_v19  ;;  %v892_v53 = vld [vmem:[#allocation8 + $0x3f0] sm:$0xff]  ;;  %v889_v1 = vld [vmem:[#allocation8 + $0x3d8] sm:$0xff] }
 0x4ee   :  { %8060 = vmatprep.subr.bf16.mxu0 %v8996_v44  ;;  %v9044_v44 = vcombine.high %v849_v39, %v853_v60  ;;  %v893_v26 = vld [vmem:[#allocation8 + $0x3f8] sm:$0xff] }
 0x4f0   :  { %7733 = vmatpush1.bf16.msra.mxu1 %v8993_v51  ;;  %v9041_v51 = vcombine.low %v848_v38, %v852_v19  ;;  %v896_v38 = vld [vmem:[#allocation8 + $0x410] sm:$0xff] }
 0x4f1   :  { %8061 = vmatpush1.bf16.msra.mxu0 %v8995_v56  ;;  %7734 = vmatprep.subr.bf16.mxu1 %v9002_v40  ;;  %v9043_v56 = vcombine.low %v849_v39, %v853_v60  ;;  %v9050_v40 = vcombine.high %v856_v45, %v860_v46  ;;  %v900_v19 = vld [vmem:[#allocation8 + $0x430] sm:$0xff]  ;;  %v897_v39 = vld [vmem:[#allocation8 + $0x418] sm:$0xff] }
 0x4f2   :  { %8062 = vmatprep.subr.bf16.mxu0 %v9004_v57  ;;  %v9052_v57 = vcombine.high %v857_v47, %v861_v50  ;;  %v901_v60 = vld [vmem:[#allocation8 + $0x438] sm:$0xff] }
 0x4f4   :  { %7735 = vmatpush1.bf16.msra.mxu1 %v9001_v0  ;;  %v9049_v0 = vcombine.low %v856_v45, %v860_v46  ;;  %v904_v45 = vld [vmem:[#allocation8 + $0x450] sm:$0xff] }
 0x4f5   :  { %8063 = vmatpush1.bf16.msra.mxu0 %v9003_v30  ;;  %7736 = vmatprep.subr.bf16.mxu1 %v9010_v32  ;;  %v9051_v30 = vcombine.low %v857_v47, %v861_v50  ;;  %v9058_v32 = vcombine.high %v864_v58, %v868_v61  ;;  %v908_v46 = vld [vmem:[#allocation8 + $0x470] sm:$0xff]  ;;  %v9089_v47 = vcombine.low %v896_v38, %v900_v19  ;;  %v905_v50 = vld [vmem:[#allocation8 + $0x458] sm:$0xff] }
 0x4f6   :  { %8064 = vmatprep.subr.bf16.mxu0 %v9012_v34  ;;  %v9060_v34 = vcombine.high %v865_v62, %v869_v63 }
 0x4f8   :  { %7737 = vmatpush1.bf16.msra.mxu1 %v9009_v5  ;;  %v9057_v5 = vcombine.low %v864_v58, %v868_v61  ;;  %v916_v58 = vld [vmem:[#allocation8 + $0x4b0] sm:$0xff] }
 0x4f9   :  { %8065 = vmatpush1.bf16.msra.mxu0 %v9011_v7  ;;  %7738 = vmatprep.subr.bf16.mxu1 %v9018_v9  ;;  %v9059_v7 = vcombine.low %v865_v62, %v869_v63  ;;  %v9066_v9 = vcombine.high %v872_v35, %v876_v36  ;;  %v913_v62 = vld [vmem:[#allocation8 + $0x498] sm:$0xff] }
 0x4fa   :  { %8066 = vmatprep.subr.bf16.mxu0 %v9020_v10  ;;  %v9068_v10 = vcombine.high %v873_v3, %v877_v4  ;;  %v917_v63 = vld [vmem:[#allocation8 + $0x4b8] sm:$0xff] }
 0x4fc   :  { %7739 = vmatpush1.bf16.msra.mxu1 %v9017_v23  ;;  %v9065_v23 = vcombine.low %v872_v35, %v876_v36  ;;  %v920_v35 = vld [vmem:[#allocation8 + $0x4d0] sm:$0xff] }
 0x4fd   :  { %8067 = vmatpush1.bf16.msra.mxu0 %v9019_v27  ;;  %7740 = vmatprep.subr.bf16.mxu1 %v9026_v22  ;;  %v9067_v27 = vcombine.low %v873_v3, %v877_v4  ;;  %v9074_v22 = vcombine.high %v880_v11, %v884_v12  ;;  %v924_v36 = vld [vmem:[#allocation8 + $0x4f0] sm:$0xff]  ;;  %v921_v3 = vld [vmem:[#allocation8 + $0x4d8] sm:$0xff] }
 0x4fe   :  { %8068 = vmatprep.subr.bf16.mxu0 %v9028_v24  ;;  %v9076_v24 = vcombine.high %v881_v16, %v885_v17  ;;  %v925_v4 = vld [vmem:[#allocation8 + $0x4f8] sm:$0xff] }
 0x500   :  { %7741 = vmatpush1.bf16.msra.mxu1 %v9025_v29  ;;  %v9073_v29 = vcombine.low %v880_v11, %v884_v12  ;;  %v932_v11 = vld [vmem:[#allocation8 + $0x530] sm:$0xff]  ;;  %v929_v12 = vld [vmem:[#allocation8 + $0x518] sm:$0xff] }
 0x501   :  { %8069 = vmatpush1.bf16.msra.mxu0 %v9027_v33  ;;  %7742 = vmatprep.subr.bf16.mxu1 %v9034_v15  ;;  %v9075_v33 = vcombine.low %v881_v16, %v885_v17  ;;  %v9082_v15 = vcombine.high %v888_v25, %v892_v53  ;;  %v933_v16 = vld [vmem:[#allocation8 + $0x538] sm:$0xff]  ;;  %v9115_v17 = vcombine.low %v921_v3, %v925_v4 }
 0x502   :  { %8070 = vmatprep.subr.bf16.mxu0 %v9036_v18  ;;  %v9084_v18 = vcombine.high %v889_v1, %v893_v26 }
 0x504   :  { %7743 = vmatpush1.bf16.msra.mxu1 %v9033_v48  ;;  %v9081_v48 = vcombine.low %v888_v25, %v892_v53  ;;  %v937_v25 = vld [vmem:[#allocation8 + $0x558] sm:$0xff] }
 0x505   :  { %8071 = vmatpush1.bf16.msra.mxu0 %v9035_v37  ;;  %7744 = vmatprep.subr.bf16.mxu1 %v9042_v42  ;;  %v9083_v37 = vcombine.low %v889_v1, %v893_v26  ;;  %v9090_v42 = vcombine.high %v896_v38, %v900_v19  ;;  %v941_v53 = vld [vmem:[#allocation8 + $0x578] sm:$0xff]  ;;  %v9123_v26 = vcombine.low %v929_v12, %v933_v16 }
 0x506   :  { %8072 = vmatprep.subr.bf16.mxu0 %v9044_v44  ;;  %v9092_v44 = vcombine.high %v897_v39, %v901_v60  ;;  %v945_v38 = vld [vmem:[#allocation8 + $0x598] sm:$0xff] }
 0x507   :  { %v949_v19 = vld [vmem:[#allocation8 + $0x5b8] sm:$0xff] }
 0x508   :  { %7745 = vmatpush1.bf16.msra.mxu1 %v9041_v51  ;;  %v909_v51 = vld [vmem:[#allocation8 + $0x478] sm:$0xff] }
 0x509   :  { %8073 = vmatpush1.bf16.msra.mxu0 %v9043_v56  ;;  %7746 = vmatprep.subr.bf16.mxu1 %v9050_v40  ;;  %v9091_v56 = vcombine.low %v897_v39, %v901_v60  ;;  %v9098_v40 = vcombine.high %v904_v45, %v908_v46  ;;  %v9100_v61 = vcombine.high %v905_v50, %v909_v51 }
 0x50a   :  { %8074 = vmatprep.subr.bf16.mxu0 %v9052_v57  ;;  %v912_v57 = vld [vmem:[#allocation8 + $0x490] sm:$0xff]  ;;  %v9131_v60 = vcombine.low %v937_v25, %v941_v53 }
 0x50c   :  { %7747 = vmatpush1.bf16.msra.mxu1 %v9049_v0  ;;  %v9097_v0 = vcombine.low %v904_v45, %v908_v46  ;;  %v953_v45 = vld [vmem:[#allocation8 + $0x5d8] sm:$0xff] }
 0x50d   :  { %8075 = vmatpush1.bf16.msra.mxu0 %v9051_v30  ;;  %7748 = vmatprep.subr.bf16.mxu1 %v9058_v32  ;;  %v9099_v30 = vcombine.low %v905_v50, %v909_v51  ;;  %v9106_v32 = vcombine.high %v912_v57, %v916_v58  ;;  %v957_v46 = vld [vmem:[#allocation8 + $0x5f8] sm:$0xff]  ;;  %v9139_v50 = vcombine.low %v945_v38, %v949_v19 }
 0x50e   :  { %8076 = vmatprep.subr.bf16.mxu0 %v9060_v34  ;;  %v9108_v34 = vcombine.high %v913_v62, %v917_v63 }
 0x510   :  { %7749 = vmatpush1.bf16.msra.mxu1 %v9057_v5  ;;  %v9105_v5 = vcombine.low %v912_v57, %v916_v58  ;;  %v964_v57 = vld [vmem:[#allocation8 + $0x630] sm:$0xff]  ;;  %v961_v58 = vld [vmem:[#allocation8 + $0x618] sm:$0xff] }
 0x511   :  { %8077 = vmatpush1.bf16.msra.mxu0 %v9059_v7  ;;  %7750 = vmatprep.subr.bf16.mxu1 %v9066_v9  ;;  %v9114_v7 = vcombine.high %v920_v35, %v924_v36  ;;  %v9116_v9 = vcombine.high %v921_v3, %v925_v4 }
 0x512   :  { %8078 = vmatprep.subr.bf16.mxu0 %v9068_v10  ;;  %v928_v10 = vld [vmem:[#allocation8 + $0x510] sm:$0xff] }
 0x513   :  { %v9121_v1 = vcombine.low %v928_v10, %v932_v11 }
 0x514   :  { %7751 = vmatpush1.bf16.msra.mxu1 %v9065_v23  ;;  %v9122_v23 = vcombine.high %v928_v10, %v932_v11  ;;  %v977_v10 = vld [vmem:[#allocation8 + $0x698] sm:$0xff] }
 0x515   :  { %8079 = vmatpush1.bf16.msra.mxu0 %v9067_v27  ;;  %7752 = vmatprep.subr.bf16.mxu1 %v9074_v22  ;;  %v9124_v27 = vcombine.high %v929_v12, %v933_v16  ;;  %v936_v22 = vld [vmem:[#allocation8 + $0x550] sm:$0xff]  ;;  %v981_v11 = vld [vmem:[#allocation8 + $0x6b8] sm:$0xff] }
 0x516   :  { %8080 = vmatprep.subr.bf16.mxu0 %v9076_v24  ;;  %v940_v24 = vld [vmem:[#allocation8 + $0x570] sm:$0xff] }
 0x517   :  { %v9129_v39 = vcombine.low %v936_v22, %v940_v24 }
 0x518   :  { %7753 = vmatpush1.bf16.msra.mxu1 %v9073_v29  ;;  %v9130_v29 = vcombine.high %v936_v22, %v940_v24  ;;  %v985_v22 = vld [vmem:[#allocation8 + $0x6d8] sm:$0xff] }
 0x519   :  { %8081 = vmatpush1.bf16.msra.mxu0 %v9075_v33  ;;  %7754 = vmatprep.subr.bf16.mxu1 %v9082_v15  ;;  %v9132_v33 = vcombine.high %v937_v25, %v941_v53  ;;  %v944_v15 = vld [vmem:[#allocation8 + $0x590] sm:$0xff]  ;;  %v989_v24 = vld [vmem:[#allocation8 + $0x6f8] sm:$0xff]  ;;  %v9171_v53 = vcombine.low %v977_v10, %v981_v11 }
 0x51a   :  { %8082 = vmatprep.subr.bf16.mxu0 %v9084_v18  ;;  %v948_v18 = vld [vmem:[#allocation8 + $0x5b0] sm:$0xff] }
 0x51c   :  { %7755 = vmatpush1.bf16.msra.mxu1 %v9081_v48  ;;  %v9138_v48 = vcombine.high %v944_v15, %v948_v18 }
 0x51d   :  { %8083 = vmatpush1.bf16.msra.mxu0 %v9083_v37  ;;  %7765 = vmatprep.subr.bf16.mxu1 %v9090_v42  ;;  %v9140_v37 = vcombine.high %v945_v38, %v949_v19  ;;  %v952_v42 = vld [vmem:[#allocation8 + $0x5d0] sm:$0xff]  ;;  %v9179_v19 = vcombine.low %v985_v22, %v989_v24 }
 0x51e   :  { %8093 = vmatprep.subr.bf16.mxu0 %v9092_v44  ;;  %v956_v44 = vld [vmem:[#allocation8 + $0x5f0] sm:$0xff] }
 0x51f   :  { %7757 = vmatmul.mubr.bf16.vlgmr.msra.gmra.mrb[12].mxu1 %v11161_v52  ;;  %v9146_v51 = vcombine.high %v952_v42, %v956_v44 }
 0x520   :  { %8085 = vmatmul.mubr.bf16.vlgmr.msra.gmra.mrb[12].mxu0 %v11161_v52  ;;  %7766 = vmatpush1.bf16.msra.mxu1 %v9089_v47  ;;  %v9107_v52 = vcombine.low %v913_v62, %v917_v63  ;;  %v9137_v47 = vcombine.low %v944_v15, %v948_v18  ;;  %v9145_v62 = vcombine.low %v952_v42, %v956_v44  ;;  %v993_v15 = vld [vmem:[#allocation8 + $0x718] sm:$0xff] }
 0x521   :  { %7797 = vmatprep.mubr.bf16.mxu1 %v11167_v41  ;;  %8094 = vmatpush1.bf16.msra.mxu0 %v9091_v56  ;;  %v9148_v56 = vcombine.high %v953_v45, %v957_v46  ;;  %v9147_v63 = vcombine.low %v953_v45, %v957_v46  ;;  %v997_v18 = vld [vmem:[#allocation8 + $0x738] sm:$0xff] }
 0x522   :  { %8125 = vmatprep.mubr.bf16.mxu0 %v11167_v41  ;;  %7767 = vmatprep.subr.bf16.mxu1 %v9098_v40  ;;  %v9113_v41 = vcombine.low %v920_v35, %v924_v36  ;;  %v960_v40 = vld [vmem:[#allocation8 + $0x610] sm:$0xff]  ;;  %v969_v35 = vld [vmem:[#allocation8 + $0x658] sm:$0xff]  ;;  %v9187_v46 = vcombine.low %v993_v15, %v997_v18 }
 0x523   :  { %8095 = vmatprep.subr.bf16.mxu0 %v9100_v61  ;;  %v965_v61 = vld [vmem:[#allocation8 + $0x638] sm:$0xff]  ;;  %v9153_v3 = vcombine.low %v960_v40, %v964_v57 }
 0x524   :  { %7768 = vmatpush1.bf16.msra.mxu1 %v9097_v0  ;;  %v9154_v0 = vcombine.high %v960_v40, %v964_v57  ;;  %v973_v36 = vld [vmem:[#allocation8 + $0x678] sm:$0xff]  ;;  %v9155_v4 = vcombine.low %v961_v58, %v965_v61 }
 0x525   :  { %8096 = vmatpush1.bf16.msra.mxu0 %v9099_v30  ;;  %7769 = vmatprep.subr.bf16.mxu1 %v9106_v32  ;;  %v9156_v30 = vcombine.high %v961_v58, %v965_v61  ;;  %v968_v32 = vld [vmem:[#allocation8 + $0x650] sm:$0xff]  ;;  %v9163_v16 = vcombine.low %v969_v35, %v973_v36  ;;  %v1001_v42 = vld [vmem:[#allocation8 + $0x758] sm:$0xff] }
 0x526   :  { %8097 = vmatprep.subr.bf16.mxu0 %v9108_v34  ;;  %v972_v34 = vld [vmem:[#allocation8 + $0x670] sm:$0xff]  ;;  %v1005_v44 = vld [vmem:[#allocation8 + $0x778] sm:$0xff] }
 0x527   :  { %v9161_v12 = vcombine.low %v968_v32, %v972_v34  ;;  %v1009_v40 = vld [vmem:[#allocation8 + $0x798] sm:$0xff]  ;;  %v9195_v61 = vcombine.low %v1001_v42, %v1005_v44 }
 0x528   :  { %7770 = vmatpush1.bf16.msra.mxu1 %v9105_v5  ;;  %v9162_v5 = vcombine.high %v968_v32, %v972_v34  ;;  %v1013_v57 = vld [vmem:[#allocation8 + $0x7b8] sm:$0xff] }
 0x529   :  { %8098 = vmatpush1.bf16.msra.mxu0 %v9107_v52  ;;  %7771 = vmatprep.subr.bf16.mxu1 %v9114_v7  ;;  %v9164_v52 = vcombine.high %v969_v35, %v973_v36  ;;  %v976_v7 = vld [vmem:[#allocation8 + $0x690] sm:$0xff]  ;;  %v1017_v32 = vld [vmem:[#allocation8 + $0x7d8] sm:$0xff]  ;;  %v9203_v36 = vcombine.low %v1009_v40, %v1013_v57 }
 0x52a   :  { %8099 = vmatprep.subr.bf16.mxu0 %v9116_v9  ;;  %v980_v9 = vld [vmem:[#allocation8 + $0x6b0] sm:$0xff]  ;;  %v1021_v34 = vld [vmem:[#allocation8 + $0x7f8] sm:$0xff] }
 0x52b   :  { %v9169_v25 = vcombine.low %v976_v7, %v980_v9 }
 0x52c   :  { %7772 = vmatpush1.bf16.msra.mxu1 %v9113_v41  ;;  %v9170_v41 = vcombine.high %v976_v7, %v980_v9  ;;  %v1025_v7 = vld [vmem:[#allocation8 + $0x818] sm:$0xff] }
 0x52d   :  { %8100 = vmatpush1.bf16.msra.mxu0 %v9115_v17  ;;  %7773 = vmatprep.subr.bf16.mxu1 %v9122_v23  ;;  %v9172_v17 = vcombine.high %v977_v10, %v981_v11  ;;  %v984_v23 = vld [vmem:[#allocation8 + $0x6d0] sm:$0xff]  ;;  %v1029_v9 = vld [vmem:[#allocation8 + $0x838] sm:$0xff]  ;;  %v9211_v11 = vcombine.low %v1017_v32, %v1021_v34 }
 0x52e   :  { %8101 = vmatprep.subr.bf16.mxu0 %v9124_v27  ;;  %v988_v27 = vld [vmem:[#allocation8 + $0x6f0] sm:$0xff] }
 0x52f   :  { %v9177_v38 = vcombine.low %v984_v23, %v988_v27 }
 0x530   :  { %7774 = vmatpush1.bf16.msra.mxu1 %v9121_v1  ;;  %v9178_v1 = vcombine.high %v984_v23, %v988_v27  ;;  %v1033_v27 = vld [vmem:[#allocation8 + $0x858] sm:$0xff] }
 0x531   :  { %8102 = vmatpush1.bf16.msra.mxu0 %v9123_v26  ;;  %7775 = vmatprep.subr.bf16.mxu1 %v9130_v29  ;;  %v9180_v26 = vcombine.high %v985_v22, %v989_v24  ;;  %v992_v29 = vld [vmem:[#allocation8 + $0x710] sm:$0xff]  ;;  %v1037_v22 = vld [vmem:[#allocation8 + $0x878] sm:$0xff]  ;;  %v9219_v24 = vcombine.low %v1025_v7, %v1029_v9 }
 0x532   :  { %8103 = vmatprep.subr.bf16.mxu0 %v9132_v33  ;;  %v996_v33 = vld [vmem:[#allocation8 + $0x730] sm:$0xff] }
 0x533   :  { %v9185_v45 = vcombine.low %v992_v29, %v996_v33 }
 0x534   :  { %7776 = vmatpush1.bf16.msra.mxu1 %v9129_v39  ;;  %v9186_v39 = vcombine.high %v992_v29, %v996_v33  ;;  %v1041_v29 = vld [vmem:[#allocation8 + $0x898] sm:$0xff] }
 0x535   :  { %8104 = vmatpush1.bf16.msra.mxu0 %v9131_v60  ;;  %7777 = vmatprep.subr.bf16.mxu1 %v9138_v48  ;;  %v9188_v60 = vcombine.high %v993_v15, %v997_v18  ;;  %v1000_v48 = vld [vmem:[#allocation8 + $0x750] sm:$0xff]  ;;  %v1045_v33 = vld [vmem:[#allocation8 + $0x8b8] sm:$0xff]  ;;  %v9227_v18 = vcombine.low %v1033_v27, %v1037_v22 }
 0x536   :  { %8105 = vmatprep.subr.bf16.mxu0 %v9140_v37  ;;  %v1004_v37 = vld [vmem:[#allocation8 + $0x770] sm:$0xff] }
 0x537   :  { %v9193_v58 = vcombine.low %v1000_v48, %v1004_v37 }
 0x538   :  { %7778 = vmatpush1.bf16.msra.mxu1 %v9137_v47  ;;  %v9194_v47 = vcombine.high %v1000_v48, %v1004_v37  ;;  %v1049_v48 = vld [vmem:[#allocation8 + $0x8d8] sm:$0xff] }
 0x539   :  { %8106 = vmatpush1.bf16.msra.mxu0 %v9139_v50  ;;  %7779 = vmatprep.subr.bf16.mxu1 %v9146_v51  ;;  %v9196_v50 = vcombine.high %v1001_v42, %v1005_v44  ;;  %v1008_v51 = vld [vmem:[#allocation8 + $0x790] sm:$0xff]  ;;  %v1053_v37 = vld [vmem:[#allocation8 + $0x8f8] sm:$0xff] }
 0x53a   :  { %8107 = vmatprep.subr.bf16.mxu0 %v9148_v56  ;;  %v1012_v56 = vld [vmem:[#allocation8 + $0x7b0] sm:$0xff] }
 0x53b   :  { %v9201_v35 = vcombine.low %v1008_v51, %v1012_v56 }
 0x53c   :  { %7780 = vmatpush1.bf16.msra.mxu1 %v9145_v62  ;;  %v9202_v62 = vcombine.high %v1008_v51, %v1012_v56  ;;  %v1061_v51 = vld [vmem:[#allocation8 + $0x938] sm:$0xff]  ;;  %v9243_v56 = vcombine.low %v1049_v48, %v1053_v37 }
 0x53d   :  { %8108 = vmatpush1.bf16.msra.mxu0 %v9147_v63  ;;  %7781 = vmatprep.subr.bf16.mxu1 %v9154_v0  ;;  %v9204_v63 = vcombine.high %v1009_v40, %v1013_v57  ;;  %v1016_v0 = vld [vmem:[#allocation8 + $0x7d0] sm:$0xff] }
 0x53e   :  { %8109 = vmatprep.subr.bf16.mxu0 %v9156_v30  ;;  %v1020_v30 = vld [vmem:[#allocation8 + $0x7f0] sm:$0xff] }
 0x53f   :  { %v9209_v10 = vcombine.low %v1016_v0, %v1020_v30 }
 0x540   :  { %7782 = vmatpush1.bf16.msra.mxu1 %v9153_v3  ;;  %v9210_v3 = vcombine.high %v1016_v0, %v1020_v30 }
 0x541   :  { %8110 = vmatpush1.bf16.msra.mxu0 %v9155_v4  ;;  %7783 = vmatprep.subr.bf16.mxu1 %v9162_v5  ;;  %v9212_v4 = vcombine.high %v1017_v32, %v1021_v34  ;;  %v1024_v5 = vld [vmem:[#allocation8 + $0x810] sm:$0xff] }
 0x542   :  { %8111 = vmatprep.subr.bf16.mxu0 %v9164_v52  ;;  %v1028_v52 = vld [vmem:[#allocation8 + $0x830] sm:$0xff] }
 0x543   :  { %v9217_v23 = vcombine.low %v1024_v5, %v1028_v52 }
 0x544   :  { %7784 = vmatpush1.bf16.msra.mxu1 %v9161_v12  ;;  %v9218_v12 = vcombine.high %v1024_v5, %v1028_v52 }
 0x545   :  { %8112 = vmatpush1.bf16.msra.mxu0 %v9163_v16  ;;  %7785 = vmatprep.subr.bf16.mxu1 %v9170_v41  ;;  %v9220_v16 = vcombine.high %v1025_v7, %v1029_v9  ;;  %v1032_v41 = vld [vmem:[#allocation8 + $0x850] sm:$0xff] }
 0x546   :  { %8113 = vmatprep.subr.bf16.mxu0 %v9172_v17  ;;  %v1036_v17 = vld [vmem:[#allocation8 + $0x870] sm:$0xff] }
 0x547   :  { %v9225_v15 = vcombine.low %v1032_v41, %v1036_v17 }
 0x548   :  { %7786 = vmatpush1.bf16.msra.mxu1 %v9169_v25  ;;  %v9226_v25 = vcombine.high %v1032_v41, %v1036_v17 }
 0x549   :  { %8114 = vmatpush1.bf16.msra.mxu0 %v9171_v53  ;;  %7787 = vmatprep.subr.bf16.mxu1 %v9178_v1  ;;  %v1040_v53 = vld [vmem:[#allocation8 + $0x890] sm:$0xff] }
 0x54a   :  { %8115 = vmatprep.subr.bf16.mxu0 %v9180_v26  ;;  %v1044_v1 = vld [vmem:[#allocation8 + $0x8b0] sm:$0xff]  ;;  %v9228_v26 = vcombine.high %v1033_v27, %v1037_v22 }
 0x54b   :  { %v9233_v42 = vcombine.low %v1040_v53, %v1044_v1  ;;  %v1088_v22 = vld [vmem:[#allocation8 + $0xa10] sm:$0xff] }
 0x54c   :  { %7788 = vmatpush1.bf16.msra.mxu1 %v9177_v38  ;;  %v9234_v38 = vcombine.high %v1040_v53, %v1044_v1  ;;  %v1093_v53 = vld [vmem:[#allocation8 + $0xa38] sm:$0xff] }
 0x54d   :  { %8116 = vmatpush1.bf16.msra.mxu0 %v9179_v19  ;;  %7789 = vmatprep.subr.bf16.mxu1 %v9186_v39  ;;  %v9236_v19 = vcombine.high %v1041_v29, %v1045_v33  ;;  %v1048_v39 = vld [vmem:[#allocation8 + $0x8d0] sm:$0xff] }
 0x54e   :  { %8117 = vmatprep.subr.bf16.mxu0 %v9188_v60  ;;  %v1052_v60 = vld [vmem:[#allocation8 + $0x8f0] sm:$0xff] }
 0x54f   :  { %v9242_v44 = vcombine.high %v1048_v39, %v1052_v60 }
 0x550   :  { %7790 = vmatpush1.bf16.msra.mxu1 %v9185_v45  ;;  %v9244_v45 = vcombine.high %v1049_v48, %v1053_v37 }
 0x551   :  { %8118 = vmatpush1.bf16.msra.mxu0 %v9187_v46  ;;  %7791 = vmatprep.subr.bf16.mxu1 %v9194_v47  ;;  %v1056_v46 = vld [vmem:[#allocation8 + $0x910] sm:$0xff] }
 0x552   :  { %8119 = vmatprep.subr.bf16.mxu0 %v9196_v50  ;;  %v1060_v47 = vld [vmem:[#allocation8 + $0x930] sm:$0xff]  ;;  %v1057_v50 = vld [vmem:[#allocation8 + $0x918] sm:$0xff] }
 0x553   :  { %v9250_v40 = vcombine.high %v1056_v46, %v1060_v47  ;;  %v9252_v57 = vcombine.high %v1057_v50, %v1061_v51  ;;  %v9249_v0 = vcombine.low %v1056_v46, %v1060_v47  ;;  %v9251_v30 = vcombine.low %v1057_v50, %v1061_v51 }
 0x554   :  { %7792 = vmatpush1.bf16.msra.mxu1 %v9193_v58  ;;  %v1064_v58 = vld [vmem:[#allocation8 + $0x950] sm:$0xff] }
 0x555   :  { %8120 = vmatpush1.bf16.msra.mxu0 %v9195_v61  ;;  %7793 = vmatprep.subr.bf16.mxu1 %v9202_v62  ;;  %v1068_v61 = vld [vmem:[#allocation8 + $0x970] sm:$0xff]  ;;  %v1065_v62 = vld [vmem:[#allocation8 + $0x958] sm:$0xff] }
 0x556   :  { %8121 = vmatprep.subr.bf16.mxu0 %v9204_v63  ;;  %v1069_v63 = vld [vmem:[#allocation8 + $0x978] sm:$0xff]  ;;  %v9258_v32 = vcombine.high %v1064_v58, %v1068_v61  ;;  %v9257_v5 = vcombine.low %v1064_v58, %v1068_v61 }
 0x557   :  { %v9260_v34 = vcombine.high %v1065_v62, %v1069_v63  ;;  %v9259_v52 = vcombine.low %v1065_v62, %v1069_v63 }
 0x558   :  { %7794 = vmatpush1.bf16.msra.mxu1 %v9201_v35  ;;  %v1072_v35 = vld [vmem:[#allocation8 + $0x990] sm:$0xff] }
 0x559   :  { %8122 = vmatpush1.bf16.msra.mxu0 %v9203_v36  ;;  %7795 = vmatprep.subr.bf16.mxu1 %v9210_v3  ;;  %v1076_v36 = vld [vmem:[#allocation8 + $0x9b0] sm:$0xff]  ;;  %v1073_v3 = vld [vmem:[#allocation8 + $0x998] sm:$0xff] }
 0x55a   :  { %8123 = vmatprep.subr.bf16.mxu0 %v9212_v4  ;;  %v1077_v4 = vld [vmem:[#allocation8 + $0x9b8] sm:$0xff]  ;;  %v9266_v7 = vcombine.high %v1072_v35, %v1076_v36  ;;  %v9265_v41 = vcombine.low %v1072_v35, %v1076_v36 }
 0x55b   :  { %v9268_v9 = vcombine.high %v1073_v3, %v1077_v4  ;;  %v9267_v17 = vcombine.low %v1073_v3, %v1077_v4 }
 0x55c   :  { %7796 = vmatpush1.bf16.msra.mxu1 %v9209_v10  ;;  %v1080_v10 = vld [vmem:[#allocation8 + $0x9d0] sm:$0xff] }
 0x55d   :  { %8124 = vmatpush1.bf16.msra.mxu0 %v9211_v11  ;;  %7806 = vmatprep.subr.bf16.mxu1 %v9218_v12  ;;  %v1084_v11 = vld [vmem:[#allocation8 + $0x9f0] sm:$0xff]  ;;  %v1081_v12 = vld [vmem:[#allocation8 + $0x9d8] sm:$0xff] }
 0x55e   :  { %8134 = vmatprep.subr.bf16.mxu0 %v9220_v16  ;;  %v1085_v16 = vld [vmem:[#allocation8 + $0x9f8] sm:$0xff]  ;;  %v9273_v1 = vcombine.low %v1080_v10, %v1084_v11 }
 0x55f   :  { %7798 = vmatmul.mubr.bf16.vlgmr.msra.gmra.mrb[12].mxu1 %v11188_v2  ;;  %v9276_v27 = vcombine.high %v1081_v12, %v1085_v16 }
 0x560   :  { %8126 = vmatmul.mubr.bf16.vlgmr.msra.gmra.mrb[12].mxu0 %v11188_v2  ;;  %7807 = vmatpush1.bf16.msra.mxu1 %v9217_v23  ;;  %v9235_v2 = vcombine.low %v1041_v29, %v1045_v33  ;;  %v9274_v23 = vcombine.high %v1080_v10, %v1084_v11 }
 0x561   :  { %7838 = vmatprep.mubr.bf16.mxu1 %v11191_v31  ;;  %8135 = vmatpush1.bf16.msra.mxu0 %v9219_v24  ;;  %v1092_v24 = vld [vmem:[#allocation8 + $0xa30] sm:$0xff] }
 0x562   :  { %8166 = vmatprep.mubr.bf16.mxu0 %v11191_v31  ;;  %7808 = vmatprep.subr.bf16.mxu1 %v9226_v25  ;;  %v9241_v31 = vcombine.low %v1048_v39, %v1052_v60  ;;  %v1089_v25 = vld [vmem:[#allocation8 + $0xa18] sm:$0xff]  ;;  %v9282_v29 = vcombine.high %v1088_v22, %v1092_v24  ;;  %v9281_v39 = vcombine.low %v1088_v22, %v1092_v24 }
 0x563   :  { %8136 = vmatprep.subr.bf16.mxu0 %v9228_v26  ;;  %v9275_v26 = vcombine.low %v1081_v12, %v1085_v16  ;;  %v9284_v33 = vcombine.high %v1089_v25, %v1093_v53  ;;  %v9283_v60 = vcombine.low %v1089_v25, %v1093_v53 }
 0x564   :  { %7809 = vmatpush1.bf16.msra.mxu1 %v9225_v15  ;;  %v1096_v15 = vld [vmem:[#allocation8 + $0xa50] sm:$0xff] }
 0x565   :  { %8137 = vmatpush1.bf16.msra.mxu0 %v9227_v18  ;;  %7810 = vmatprep.subr.bf16.mxu1 %v9234_v38  ;;  %v1100_v18 = vld [vmem:[#allocation8 + $0xa70] sm:$0xff]  ;;  %v1097_v38 = vld [vmem:[#allocation8 + $0xa58] sm:$0xff] }
 0x566   :  { %8138 = vmatprep.subr.bf16.mxu0 %v9236_v19  ;;  %v1101_v19 = vld [vmem:[#allocation8 + $0xa78] sm:$0xff]  ;;  %v9290_v48 = vcombine.high %v1096_v15, %v1100_v18  ;;  %v9289_v46 = vcombine.low %v1096_v15, %v1100_v18 }
 0x567   :  { %v9292_v37 = vcombine.high %v1097_v38, %v1101_v19  ;;  %v9291_v47 = vcombine.low %v1097_v38, %v1101_v19 }
 0x568   :  { %7811 = vmatpush1.bf16.msra.mxu1 %v9233_v42  ;;  %v1104_v42 = vld [vmem:[#allocation8 + $0xa90] sm:$0xff] }
 0x569   :  { %8139 = vmatpush1.bf16.msra.mxu0 %v9235_v2  ;;  %7812 = vmatprep.subr.bf16.mxu1 %v9242_v44  ;;  %v1108_v2 = vld [vmem:[#allocation8 + $0xab0] sm:$0xff]  ;;  %v1105_v44 = vld [vmem:[#allocation8 + $0xa98] sm:$0xff] }
 0x56a   :  { %8140 = vmatprep.subr.bf16.mxu0 %v9244_v45  ;;  %v1109_v45 = vld [vmem:[#allocation8 + $0xab8] sm:$0xff]  ;;  %v9298_v50 = vcombine.high %v1104_v42, %v1108_v2  ;;  %v9297_v58 = vcombine.low %v1104_v42, %v1108_v2 }
 0x56b   :  { %v9300_v51 = vcombine.high %v1105_v44, %v1109_v45  ;;  %v9299_v61 = vcombine.low %v1105_v44, %v1109_v45 }
 0x56c   :  { %7813 = vmatpush1.bf16.msra.mxu1 %v9241_v31  ;;  %v1112_v31 = vld [vmem:[#allocation8 + $0xad0] sm:$0xff] }
 0x56d   :  { %8141 = vmatpush1.bf16.msra.mxu0 %v9243_v56  ;;  %7814 = vmatprep.subr.bf16.mxu1 %v9250_v40  ;;  %v1116_v56 = vld [vmem:[#allocation8 + $0xaf0] sm:$0xff]  ;;  %v1113_v40 = vld [vmem:[#allocation8 + $0xad8] sm:$0xff] }
 0x56e   :  { %8142 = vmatprep.subr.bf16.mxu0 %v9252_v57  ;;  %v1117_v57 = vld [vmem:[#allocation8 + $0xaf8] sm:$0xff]  ;;  %v9306_v62 = vcombine.high %v1112_v31, %v1116_v56  ;;  %v9305_v35 = vcombine.low %v1112_v31, %v1116_v56 }
 0x56f   :  { %v9308_v63 = vcombine.high %v1113_v40, %v1117_v57  ;;  %v9307_v36 = vcombine.low %v1113_v40, %v1117_v57  ;;  %v1165_v31 = vld [vmem:[#allocation8 + $0xc78] sm:$0xff]  ;;  %v1168_v57 = vld [vmem:[#allocation8 + $0xc90] sm:$0xff] }
 0x570   :  { %7815 = vmatpush1.bf16.msra.mxu1 %v9249_v0  ;;  %v1120_v0 = vld [vmem:[#allocation8 + $0xb10] sm:$0xff] }
 0x571   :  { %8143 = vmatpush1.bf16.msra.mxu0 %v9251_v30  ;;  %7816 = vmatprep.subr.bf16.mxu1 %v9258_v32  ;;  %v1124_v30 = vld [vmem:[#allocation8 + $0xb30] sm:$0xff]  ;;  %v1121_v32 = vld [vmem:[#allocation8 + $0xb18] sm:$0xff] }
 0x572   :  { %8144 = vmatprep.subr.bf16.mxu0 %v9260_v34  ;;  %v1125_v34 = vld [vmem:[#allocation8 + $0xb38] sm:$0xff]  ;;  %v9314_v3 = vcombine.high %v1120_v0, %v1124_v30  ;;  %v9313_v10 = vcombine.low %v1120_v0, %v1124_v30 }
 0x573   :  { %v9316_v4 = vcombine.high %v1121_v32, %v1125_v34  ;;  %v9315_v11 = vcombine.low %v1121_v32, %v1125_v34 }
 0x574   :  { %7817 = vmatpush1.bf16.msra.mxu1 %v9257_v5  ;;  %v1128_v5 = vld [vmem:[#allocation8 + $0xb50] sm:$0xff] }
 0x575   :  { %8145 = vmatpush1.bf16.msra.mxu0 %v9259_v52  ;;  %7818 = vmatprep.subr.bf16.mxu1 %v9266_v7  ;;  %v1132_v52 = vld [vmem:[#allocation8 + $0xb70] sm:$0xff]  ;;  %v1129_v7 = vld [vmem:[#allocation8 + $0xb58] sm:$0xff] }
 0x576   :  { %8146 = vmatprep.subr.bf16.mxu0 %v9268_v9  ;;  %v1133_v9 = vld [vmem:[#allocation8 + $0xb78] sm:$0xff]  ;;  %v9322_v12 = vcombine.high %v1128_v5, %v1132_v52  ;;  %v9321_v22 = vcombine.low %v1128_v5, %v1132_v52 }
 0x577   :  { %v9324_v16 = vcombine.high %v1129_v7, %v1133_v9  ;;  %v9323_v24 = vcombine.low %v1129_v7, %v1133_v9  ;;  %v1184_v9 = vld [vmem:[#allocation8 + $0xd10] sm:$0xff] }
 0x578   :  { %7819 = vmatpush1.bf16.msra.mxu1 %v9265_v41  ;;  %v1136_v41 = vld [vmem:[#allocation8 + $0xb90] sm:$0xff] }
 0x579   :  { %8147 = vmatpush1.bf16.msra.mxu0 %v9267_v17  ;;  %7820 = vmatprep.subr.bf16.mxu1 %v9274_v23  ;;  %v1140_v17 = vld [vmem:[#allocation8 + $0xbb0] sm:$0xff]  ;;  %v1137_v23 = vld [vmem:[#allocation8 + $0xb98] sm:$0xff] }
 0x57a   :  { %8148 = vmatprep.subr.bf16.mxu0 %v9276_v27  ;;  %v1141_v27 = vld [vmem:[#allocation8 + $0xbb8] sm:$0xff]  ;;  %v9330_v25 = vcombine.high %v1136_v41, %v1140_v17  ;;  %v9329_v15 = vcombine.low %v1136_v41, %v1140_v17 }
 0x57b   :  { %v9332_v53 = vcombine.high %v1137_v23, %v1141_v27  ;;  %v9331_v18 = vcombine.low %v1137_v23, %v1141_v27  ;;  %v1192_v23 = vld [vmem:[#allocation8 + $0xd50] sm:$0xff] }
 0x57c   :  { %7821 = vmatpush1.bf16.msra.mxu1 %v9273_v1  ;;  %v1144_v1 = vld [vmem:[#allocation8 + $0xbd0] sm:$0xff] }
 0x57d   :  { %8149 = vmatpush1.bf16.msra.mxu0 %v9275_v26  ;;  %7822 = vmatprep.subr.bf16.mxu1 %v9282_v29  ;;  %v1148_v26 = vld [vmem:[#allocation8 + $0xbf0] sm:$0xff]  ;;  %v1145_v29 = vld [vmem:[#allocation8 + $0xbd8] sm:$0xff] }
 0x57e   :  { %8150 = vmatprep.subr.bf16.mxu0 %v9284_v33  ;;  %v1149_v33 = vld [vmem:[#allocation8 + $0xbf8] sm:$0xff]  ;;  %v9338_v38 = vcombine.high %v1144_v1, %v1148_v26  ;;  %v9337_v42 = vcombine.low %v1144_v1, %v1148_v26  ;;  %v1196_v27 = vld [vmem:[#allocation8 + $0xd70] sm:$0xff] }
 0x57f   :  { %v9340_v19 = vcombine.high %v1145_v29, %v1149_v33  ;;  %v9339_v2 = vcombine.low %v1145_v29, %v1149_v33  ;;  %v9386_v1 = vcombine.high %v1192_v23, %v1196_v27  ;;  %v1200_v29 = vld [vmem:[#allocation8 + $0xd90] sm:$0xff] }
 0x580   :  { %7823 = vmatpush1.bf16.msra.mxu1 %v9281_v39  ;;  %v1152_v39 = vld [vmem:[#allocation8 + $0xc10] sm:$0xff] }
 0x581   :  { %8151 = vmatpush1.bf16.msra.mxu0 %v9283_v60  ;;  %7824 = vmatprep.subr.bf16.mxu1 %v9290_v48  ;;  %v1156_v60 = vld [vmem:[#allocation8 + $0xc30] sm:$0xff]  ;;  %v1153_v48 = vld [vmem:[#allocation8 + $0xc18] sm:$0xff] }
 0x582   :  { %8152 = vmatprep.subr.bf16.mxu0 %v9292_v37  ;;  %v1157_v37 = vld [vmem:[#allocation8 + $0xc38] sm:$0xff]  ;;  %v9346_v44 = vcombine.high %v1152_v39, %v1156_v60  ;;  %v1204_v33 = vld [vmem:[#allocation8 + $0xdb0] sm:$0xff] }
 0x583   :  { %v9348_v45 = vcombine.high %v1153_v48, %v1157_v37  ;;  %v9347_v56 = vcombine.low %v1153_v48, %v1157_v37  ;;  %v1208_v37 = vld [vmem:[#allocation8 + $0xdd0] sm:$0xff] }
 0x584   :  { %7825 = vmatpush1.bf16.msra.mxu1 %v9289_v46  ;;  %v1160_v46 = vld [vmem:[#allocation8 + $0xc50] sm:$0xff] }
 0x585   :  { %8153 = vmatpush1.bf16.msra.mxu0 %v9291_v47  ;;  %7826 = vmatprep.subr.bf16.mxu1 %v9298_v50  ;;  %v1164_v47 = vld [vmem:[#allocation8 + $0xc70] sm:$0xff]  ;;  %v9345_v50 = vcombine.low %v1152_v39, %v1156_v60  ;;  %v9394_v39 = vcombine.high %v1200_v29, %v1204_v33 }
 0x586   :  { %8154 = vmatprep.subr.bf16.mxu0 %v9300_v51  ;;  %v1161_v51 = vld [vmem:[#allocation8 + $0xc58] sm:$0xff]  ;;  %v9354_v40 = vcombine.high %v1160_v46, %v1164_v47  ;;  %v9353_v0 = vcombine.low %v1160_v46, %v1164_v47 }
 0x587   :  { %v9355_v30 = vcombine.low %v1161_v51, %v1165_v31  ;;  %v1213_v46 = vld [vmem:[#allocation8 + $0xdf8] sm:$0xff] }
 0x588   :  { %7827 = vmatpush1.bf16.msra.mxu1 %v9297_v58  ;;  %v1172_v58 = vld [vmem:[#allocation8 + $0xcb0] sm:$0xff] }
 0x589   :  { %8155 = vmatpush1.bf16.msra.mxu0 %v9299_v61  ;;  %7828 = vmatprep.subr.bf16.mxu1 %v9306_v62  ;;  %v9356_v61 = vcombine.high %v1161_v51, %v1165_v31  ;;  %v1169_v62 = vld [vmem:[#allocation8 + $0xc98] sm:$0xff]  ;;  %v9362_v32 = vcombine.high %v1168_v57, %v1172_v58  ;;  %v9361_v5 = vcombine.low %v1168_v57, %v1172_v58 }
 0x58a   :  { %8156 = vmatprep.subr.bf16.mxu0 %v9308_v63  ;;  %v1173_v63 = vld [vmem:[#allocation8 + $0xcb8] sm:$0xff]  ;;  %v9393_v51 = vcombine.low %v1200_v29, %v1204_v33 }
 0x58b   :  { %v9364_v34 = vcombine.high %v1169_v62, %v1173_v63 }
 0x58c   :  { %7829 = vmatpush1.bf16.msra.mxu1 %v9305_v35  ;;  %v1176_v35 = vld [vmem:[#allocation8 + $0xcd0] sm:$0xff] }
 0x58d   :  { %8157 = vmatpush1.bf16.msra.mxu0 %v9307_v36  ;;  %7830 = vmatprep.subr.bf16.mxu1 %v9314_v3  ;;  %v1180_v36 = vld [vmem:[#allocation8 + $0xcf0] sm:$0xff]  ;;  %v1177_v3 = vld [vmem:[#allocation8 + $0xcd8] sm:$0xff] }
 0x58e   :  { %8158 = vmatprep.subr.bf16.mxu0 %v9316_v4  ;;  %v1181_v4 = vld [vmem:[#allocation8 + $0xcf8] sm:$0xff]  ;;  %v9370_v52 = vcombine.high %v1176_v35, %v1180_v36 }
 0x58f   :  { %v9372_v7 = vcombine.high %v1177_v3, %v1181_v4 }
 0x590   :  { %7831 = vmatpush1.bf16.msra.mxu1 %v9313_v10  ;;  %v1188_v10 = vld [vmem:[#allocation8 + $0xd30] sm:$0xff] }
 0x591   :  { %8159 = vmatpush1.bf16.msra.mxu0 %v9315_v11  ;;  %7832 = vmatprep.subr.bf16.mxu1 %v9322_v12  ;;  %v1185_v11 = vld [vmem:[#allocation8 + $0xd18] sm:$0xff]  ;;  %v9378_v41 = vcombine.high %v1184_v9, %v1188_v10 }
 0x592   :  { %8160 = vmatprep.subr.bf16.mxu0 %v9324_v16  ;;  %v1189_v12 = vld [vmem:[#allocation8 + $0xd38] sm:$0xff]  ;;  %v9371_v16 = vcombine.low %v1177_v3, %v1181_v4  ;;  %v1224_v3 = vld [vmem:[#allocation8 + $0xe50] sm:$0xff] }
 0x593   :  { %v9380_v17 = vcombine.high %v1185_v11, %v1189_v12  ;;  %v1228_v4 = vld [vmem:[#allocation8 + $0xe70] sm:$0xff] }
 0x594   :  { %7833 = vmatpush1.bf16.msra.mxu1 %v9321_v22  ;;  %v1193_v22 = vld [vmem:[#allocation8 + $0xd58] sm:$0xff] }
 0x595   :  { %8161 = vmatpush1.bf16.msra.mxu0 %v9323_v24  ;;  %7834 = vmatprep.subr.bf16.mxu1 %v9330_v25  ;;  %v1197_v24 = vld [vmem:[#allocation8 + $0xd78] sm:$0xff]  ;;  %v9377_v25 = vcombine.low %v1184_v9, %v1188_v10  ;;  %v9418_v9 = vcombine.high %v1224_v3, %v1228_v4 }
 0x596   :  { %8162 = vmatprep.subr.bf16.mxu0 %v9332_v53  ;;  %v9379_v53 = vcombine.low %v1185_v11, %v1189_v12  ;;  %v9388_v26 = vcombine.high %v1193_v22, %v1197_v24  ;;  %v1232_v11 = vld [vmem:[#allocation8 + $0xe90] sm:$0xff] }
 0x597   :  { %v1236_v12 = vld [vmem:[#allocation8 + $0xeb0] sm:$0xff] }
 0x598   :  { %7835 = vmatpush1.bf16.msra.mxu1 %v9329_v15  ;;  %v1201_v15 = vld [vmem:[#allocation8 + $0xd98] sm:$0xff] }
 0x599   :  { %8163 = vmatpush1.bf16.msra.mxu0 %v9331_v18  ;;  %7836 = vmatprep.subr.bf16.mxu1 %v9338_v38  ;;  %v1205_v18 = vld [vmem:[#allocation8 + $0xdb8] sm:$0xff]  ;;  %v9385_v38 = vcombine.low %v1192_v23, %v1196_v27  ;;  %v9426_v23 = vcombine.high %v1232_v11, %v1236_v12 }
 0x59a   :  { %8164 = vmatprep.subr.bf16.mxu0 %v9340_v19  ;;  %v9387_v19 = vcombine.low %v1193_v22, %v1197_v24  ;;  %v9396_v48 = vcombine.high %v1201_v15, %v1205_v18  ;;  %v1240_v22 = vld [vmem:[#allocation8 + $0xed0] sm:$0xff] }
 0x59b   :  { %v1244_v24 = vld [vmem:[#allocation8 + $0xef0] sm:$0xff] }
 0x59c   :  { %7837 = vmatpush1.bf16.msra.mxu1 %v9337_v42  ;;  %v1212_v42 = vld [vmem:[#allocation8 + $0xdf0] sm:$0xff]  ;;  %v9434_v29 = vcombine.high %v1240_v22, %v1244_v24 }
 0x59d   :  { %8165 = vmatpush1.bf16.msra.mxu0 %v9339_v2  ;;  %7847 = vmatprep.subr.bf16.mxu1 %v9346_v44  ;;  %v9402_v57 = vcombine.high %v1208_v37, %v1212_v42 }
 0x59e   :  { %8175 = vmatprep.subr.bf16.mxu0 %v9348_v45  ;;  %v1209_v45 = vld [vmem:[#allocation8 + $0xdd8] sm:$0xff] }
 0x59f   :  { %7839 = vmatmul.mubr.bf16.vlgmr.msra.gmra.mrb[12].mxu1 %v11199_v14 }
 0x5a0   :  { %8167 = vmatmul.mubr.bf16.vlgmr.msra.gmra.mrb[12].mxu0 %v11199_v14  ;;  %7848 = vmatpush1.bf16.msra.mxu1 %v9345_v50  ;;  %v9363_v14 = vcombine.low %v1169_v62, %v1173_v63  ;;  %v1216_v62 = vld [vmem:[#allocation8 + $0xe10] sm:$0xff] }
 0x5a1   :  { %7879 = vmatprep.mubr.bf16.mxu1 %v11204_v20  ;;  %8176 = vmatpush1.bf16.msra.mxu0 %v9347_v56  ;;  %v1220_v63 = vld [vmem:[#allocation8 + $0xe30] sm:$0xff] }
 0x5a2   :  { %8207 = vmatprep.mubr.bf16.mxu0 %v11204_v20  ;;  %7849 = vmatprep.subr.bf16.mxu1 %v9354_v40  ;;  %v9369_v20 = vcombine.low %v1176_v35, %v1180_v36  ;;  %v9395_v40 = vcombine.low %v1201_v15, %v1205_v18  ;;  %v9410_v35 = vcombine.high %v1216_v62, %v1220_v63  ;;  %v1248_v15 = vld [vmem:[#allocation8 + $0xf10] sm:$0xff] }
 0x5a3   :  { %8177 = vmatprep.subr.bf16.mxu0 %v9356_v61  ;;  %v9404_v61 = vcombine.high %v1209_v45, %v1213_v46  ;;  %v1252_v18 = vld [vmem:[#allocation8 + $0xf30] sm:$0xff] }
 0x5a4   :  { %7850 = vmatpush1.bf16.msra.mxu1 %v9353_v0  ;;  %v1217_v0 = vld [vmem:[#allocation8 + $0xe18] sm:$0xff] }
 0x5a5   :  { %8178 = vmatpush1.bf16.msra.mxu0 %v9355_v30  ;;  %7851 = vmatprep.subr.bf16.mxu1 %v9362_v32  ;;  %v1221_v30 = vld [vmem:[#allocation8 + $0xe38] sm:$0xff]  ;;  %v9401_v32 = vcombine.low %v1208_v37, %v1212_v42  ;;  %v9442_v37 = vcombine.high %v1248_v15, %v1252_v18 }
 0x5a6   :  { %8179 = vmatprep.subr.bf16.mxu0 %v9364_v34  ;;  %v9403_v34 = vcombine.low %v1209_v45, %v1213_v46  ;;  %v9412_v36 = vcombine.high %v1217_v0, %v1221_v30  ;;  %v1256_v45 = vld [vmem:[#allocation8 + $0xf50] sm:$0xff] }
 0x5a7   :  { %v1260_v46 = vld [vmem:[#allocation8 + $0xf70] sm:$0xff] }
 0x5a8   :  { %7852 = vmatpush1.bf16.msra.mxu1 %v9361_v5  ;;  %v1225_v5 = vld [vmem:[#allocation8 + $0xe58] sm:$0xff] }
 0x5a9   :  { %8180 = vmatpush1.bf16.msra.mxu0 %v9363_v14  ;;  %7853 = vmatprep.subr.bf16.mxu1 %v9370_v52  ;;  %v1229_v14 = vld [vmem:[#allocation8 + $0xe78] sm:$0xff]  ;;  %v9409_v52 = vcombine.low %v1216_v62, %v1220_v63 }
 0x5aa   :  { %8181 = vmatprep.subr.bf16.mxu0 %v9372_v7  ;;  %v9411_v7 = vcombine.low %v1217_v0, %v1221_v30  ;;  %v9420_v10 = vcombine.high %v1225_v5, %v1229_v14  ;;  %v1265_v62 = vld [vmem:[#allocation8 + $0xf98] sm:$0xff]  ;;  %v9449_v0 = vcombine.low %v1256_v45, %v1260_v46 }
 0x5ab   :  { %v1269_v63 = vld [vmem:[#allocation8 + $0xfb8] sm:$0xff] }
 0x5ac   :  { %7854 = vmatpush1.bf16.msra.mxu1 %v9369_v20  ;;  %v1233_v20 = vld [vmem:[#allocation8 + $0xe98] sm:$0xff] }
 0x5ad   :  { %8182 = vmatpush1.bf16.msra.mxu0 %v9371_v16  ;;  %7855 = vmatprep.subr.bf16.mxu1 %v9378_v41  ;;  %v1237_v16 = vld [vmem:[#allocation8 + $0xeb8] sm:$0xff]  ;;  %v9417_v41 = vcombine.low %v1224_v3, %v1228_v4 }
 0x5ae   :  { %8183 = vmatprep.subr.bf16.mxu0 %v9380_v17  ;;  %v9419_v17 = vcombine.low %v1225_v5, %v1229_v14  ;;  %v9428_v27 = vcombine.high %v1233_v20, %v1237_v16  ;;  %v1273_v3 = vld [vmem:[#allocation8 + $0xfd8] sm:$0xff]  ;;  %v9459_v14 = vcombine.low %v1265_v62, %v1269_v63 }
 0x5af   :  { %v1277_v4 = vld [vmem:[#allocation8 + $0xff8] sm:$0xff] }
 0x5b0   :  { %7856 = vmatpush1.bf16.msra.mxu1 %v9377_v25  ;;  %v1241_v25 = vld [vmem:[#allocation8 + $0xed8] sm:$0xff] }
 0x5b1   :  { %8184 = vmatpush1.bf16.msra.mxu0 %v9379_v53  ;;  %7857 = vmatprep.subr.bf16.mxu1 %v9386_v1  ;;  %v1245_v53 = vld [vmem:[#allocation8 + $0xef8] sm:$0xff]  ;;  %v9425_v1 = vcombine.low %v1232_v11, %v1236_v12 }
 0x5b2   :  { %v11290_v60 = vpop.f32.mrb[8].mxu1  ;;  %8185 = vmatprep.subr.bf16.mxu0 %v9388_v26  ;;  %v9427_v26 = vcombine.low %v1233_v20, %v1237_v16  ;;  %v9436_v33 = vcombine.high %v1241_v25, %v1245_v53  ;;  %v1281_v11 = vld [vmem:[#allocation8 + $0x1018] sm:$0xff]  ;;  %v9467_v16 = vcombine.low %v1273_v3, %v1277_v4 }
 0x5b3   :  { %v11292_v2 = vpop.f32.mrb[8].mxu0  ;;  %v11294_v44 = vpop.f32.mrb[9].mxu1  ;;  %v1285_v12 = vld [vmem:[#allocation8 + $0x1038] sm:$0xff] }
 0x5b4   :  { %v11296_v47 = vpop.f32.mrb[9].mxu0  ;;  %v7393_v50 = vpop.f32.mrb[10].mxu1  ;;  %7858 = vmatpush1.bf16.msra.mxu1 %v9385_v38  ;;  %v1249_v38 = vld [vmem:[#allocation8 + $0xf18] sm:$0xff] }
 0x5b5   :  { %v7721_v31 = vpop.f32.mrb[10].mxu0  ;;  %8186 = vmatpush1.bf16.msra.mxu0 %v9387_v19  ;;  %v7394_v56 = vpop.f32.mrb[11].mxu1  ;;  %7859 = vmatprep.subr.bf16.mxu1 %v9394_v39  ;;  %v1253_v19 = vld [vmem:[#allocation8 + $0xf38] sm:$0xff]  ;;  %v9433_v39 = vcombine.low %v1240_v22, %v1244_v24 }
 0x5b6   :  { %v7722_v58 = vpop.f32.mrb[11].mxu0  ;;  %8187 = vmatprep.subr.bf16.mxu0 %v9396_v48  ;;  %v9435_v48 = vcombine.low %v1241_v25, %v1245_v53  ;;  %v9444_v42 = vcombine.high %v1249_v38, %v1253_v19  ;;  %v1257_v50 = vld [vmem:[#allocation8 + $0xf58] sm:$0xff]  ;;  %v9441_v31 = vcombine.low %v1248_v15, %v1252_v18  ;;  %v9443_v56 = vcombine.low %v1249_v38, %v1253_v19 }
 0x5b7   :  { %v1264_v58 = vld [vmem:[#allocation8 + $0xf90] sm:$0xff]  ;;  %v1289_v24 = vld [vmem:[#allocation8 + $0x1058] sm:$0xff]  ;;  %v9475_v53 = vcombine.low %v1281_v11, %v1285_v12 }
 0x5b8   :  { %7860 = vmatpush1.bf16.msra.mxu1 %v9393_v51  ;;  %v1261_v51 = vld [vmem:[#allocation8 + $0xf78] sm:$0xff] }
 0x5b9   :  { %8188 = vmatpush1.bf16.msra.mxu0 %v9395_v40  ;;  %7861 = vmatprep.subr.bf16.mxu1 %v9402_v57  ;;  %v9450_v40 = vcombine.high %v1256_v45, %v1260_v46  ;;  %v9452_v57 = vcombine.high %v1257_v50, %v1261_v51  ;;  %v9451_v30 = vcombine.low %v1257_v50, %v1261_v51  ;;  %v1293_v25 = vld [vmem:[#allocation8 + $0x1078] sm:$0xff] }
 0x5ba   :  { %8189 = vmatprep.subr.bf16.mxu0 %v9404_v61  ;;  %v1268_v61 = vld [vmem:[#allocation8 + $0xfb0] sm:$0xff]  ;;  %v1297_v15 = vld [vmem:[#allocation8 + $0x1098] sm:$0xff]  ;;  %v9483_v19 = vcombine.low %v1289_v24, %v1293_v25 }
 0x5bb   :  { %v9457_v5 = vcombine.low %v1264_v58, %v1268_v61  ;;  %v1301_v18 = vld [vmem:[#allocation8 + $0x10b8] sm:$0xff] }
 0x5bc   :  { %7862 = vmatpush1.bf16.msra.mxu1 %v9401_v32  ;;  %v9458_v32 = vcombine.high %v1264_v58, %v1268_v61  ;;  %v1305_v45 = vld [vmem:[#allocation8 + $0x10d8] sm:$0xff] }
 0x5bd   :  { %8190 = vmatpush1.bf16.msra.mxu0 %v9403_v34  ;;  %7863 = vmatprep.subr.bf16.mxu1 %v9410_v35  ;;  %v9460_v34 = vcombine.high %v1265_v62, %v1269_v63  ;;  %v1272_v35 = vld [vmem:[#allocation8 + $0xfd0] sm:$0xff]  ;;  %v1309_v46 = vld [vmem:[#allocation8 + $0x10f8] sm:$0xff] }
 0x5be   :  { %8191 = vmatprep.subr.bf16.mxu0 %v9412_v36  ;;  %v1276_v36 = vld [vmem:[#allocation8 + $0xff0] sm:$0xff]  ;;  %v1317_v58 = vld [vmem:[#allocation8 + $0x1138] sm:$0xff]  ;;  %v9499_v61 = vcombine.low %v1305_v45, %v1309_v46 }
 0x5bf   :  { %v9465_v20 = vcombine.low %v1272_v35, %v1276_v36 }
 0x5c0   :  { %7864 = vmatpush1.bf16.msra.mxu1 %v9409_v52  ;;  %v9466_v52 = vcombine.high %v1272_v35, %v1276_v36 }
 0x5c1   :  { %8192 = vmatpush1.bf16.msra.mxu0 %v9411_v7  ;;  %7865 = vmatprep.subr.bf16.mxu1 %v9418_v9  ;;  %v9468_v7 = vcombine.high %v1273_v3, %v1277_v4  ;;  %v1280_v9 = vld [vmem:[#allocation8 + $0x1010] sm:$0xff] }
 0x5c2   :  { %8193 = vmatprep.subr.bf16.mxu0 %v9420_v10  ;;  %v1284_v10 = vld [vmem:[#allocation8 + $0x1030] sm:$0xff] }
 0x5c3   :  { %v9473_v22 = vcombine.low %v1280_v9, %v1284_v10 }
 0x5c4   :  { %7866 = vmatpush1.bf16.msra.mxu1 %v9417_v41  ;;  %v9474_v41 = vcombine.high %v1280_v9, %v1284_v10 }
 0x5c5   :  { %8194 = vmatpush1.bf16.msra.mxu0 %v9419_v17  ;;  %7867 = vmatprep.subr.bf16.mxu1 %v9426_v23  ;;  %v9476_v17 = vcombine.high %v1281_v11, %v1285_v12  ;;  %v1288_v23 = vld [vmem:[#allocation8 + $0x1050] sm:$0xff] }
 0x5c6   :  { %8195 = vmatprep.subr.bf16.mxu0 %v9428_v27  ;;  %v1292_v27 = vld [vmem:[#allocation8 + $0x1070] sm:$0xff] }
 0x5c7   :  { %v9481_v38 = vcombine.low %v1288_v23, %v1292_v27 }
 0x5c8   :  { %7868 = vmatpush1.bf16.msra.mxu1 %v9425_v1  ;;  %v9482_v1 = vcombine.high %v1288_v23, %v1292_v27 }
 0x5c9   :  { %8196 = vmatpush1.bf16.msra.mxu0 %v9427_v26  ;;  %7869 = vmatprep.subr.bf16.mxu1 %v9434_v29  ;;  %v1296_v26 = vld [vmem:[#allocation8 + $0x1090] sm:$0xff] }
 0x5ca   :  { %8197 = vmatprep.subr.bf16.mxu0 %v9436_v33  ;;  %v1300_v29 = vld [vmem:[#allocation8 + $0x10b0] sm:$0xff]  ;;  %v9484_v33 = vcombine.high %v1289_v24, %v1293_v25 }
 0x5cb   :  { %v9489_v50 = vcombine.low %v1296_v26, %v1300_v29  ;;  %v1344_v25 = vld [vmem:[#allocation8 + $0x1210] sm:$0xff] }
 0x5cc   :  { %7870 = vmatpush1.bf16.msra.mxu1 %v9433_v39  ;;  %v9490_v39 = vcombine.high %v1296_v26, %v1300_v29  ;;  %v1349_v26 = vld [vmem:[#allocation8 + $0x1238] sm:$0xff] }
 0x5cd   :  { %8198 = vmatpush1.bf16.msra.mxu0 %v9435_v48  ;;  %7871 = vmatprep.subr.bf16.mxu1 %v9442_v37  ;;  %v9492_v48 = vcombine.high %v1297_v15, %v1301_v18  ;;  %v1304_v37 = vld [vmem:[#allocation8 + $0x10d0] sm:$0xff] }
 0x5ce   :  { %8199 = vmatprep.subr.bf16.mxu0 %v9444_v42  ;;  %v1308_v42 = vld [vmem:[#allocation8 + $0x10f0] sm:$0xff] }
 0x5cf   :  { %v9498_v51 = vcombine.high %v1304_v37, %v1308_v42 }
 0x5d0   :  { %7872 = vmatpush1.bf16.msra.mxu1 %v9441_v31  ;;  %v9500_v31 = vcombine.high %v1305_v45, %v1309_v46 }
 0x5d1   :  { %8200 = vmatpush1.bf16.msra.mxu0 %v9443_v56  ;;  %7873 = vmatprep.subr.bf16.mxu1 %v9450_v40  ;;  %v1312_v56 = vld [vmem:[#allocation8 + $0x1110] sm:$0xff] }
 0x5d2   :  { %8201 = vmatprep.subr.bf16.mxu0 %v9452_v57  ;;  %v1316_v40 = vld [vmem:[#allocation8 + $0x1130] sm:$0xff]  ;;  %v1313_v57 = vld [vmem:[#allocation8 + $0x1118] sm:$0xff] }
 0x5d3   :  { %v9506_v62 = vcombine.high %v1312_v56, %v1316_v40  ;;  %v9508_v63 = vcombine.high %v1313_v57, %v1317_v58  ;;  %v9505_v35 = vcombine.low %v1312_v56, %v1316_v40  ;;  %v9507_v36 = vcombine.low %v1313_v57, %v1317_v58 }
 0x5d4   :  { %7874 = vmatpush1.bf16.msra.mxu1 %v9449_v0  ;;  %v1320_v0 = vld [vmem:[#allocation8 + $0x1150] sm:$0xff] }
 0x5d5   :  { %8202 = vmatpush1.bf16.msra.mxu0 %v9451_v30  ;;  %7875 = vmatprep.subr.bf16.mxu1 %v9458_v32  ;;  %v1324_v30 = vld [vmem:[#allocation8 + $0x1170] sm:$0xff]  ;;  %v1321_v32 = vld [vmem:[#allocation8 + $0x1158] sm:$0xff] }
 0x5d6   :  { %8203 = vmatprep.subr.bf16.mxu0 %v9460_v34  ;;  %v1325_v34 = vld [vmem:[#allocation8 + $0x1178] sm:$0xff]  ;;  %v9514_v3 = vcombine.high %v1320_v0, %v1324_v30  ;;  %v9513_v9 = vcombine.low %v1320_v0, %v1324_v30 }
 0x5d7   :  { %v9516_v4 = vcombine.high %v1321_v32, %v1325_v34  ;;  %v9515_v10 = vcombine.low %v1321_v32, %v1325_v34 }
 0x5d8   :  { %7876 = vmatpush1.bf16.msra.mxu1 %v9457_v5  ;;  %v1328_v5 = vld [vmem:[#allocation8 + $0x1190] sm:$0xff] }
 0x5d9   :  { %8204 = vmatpush1.bf16.msra.mxu0 %v9459_v14  ;;  %7877 = vmatprep.subr.bf16.mxu1 %v9466_v52  ;;  %v1332_v14 = vld [vmem:[#allocation8 + $0x11b0] sm:$0xff]  ;;  %v1329_v52 = vld [vmem:[#allocation8 + $0x1198] sm:$0xff] }
 0x5da   :  { %8205 = vmatprep.subr.bf16.mxu0 %v9468_v7  ;;  %v1333_v7 = vld [vmem:[#allocation8 + $0x11b8] sm:$0xff]  ;;  %v9522_v11 = vcombine.high %v1328_v5, %v1332_v14  ;;  %v9521_v23 = vcombine.low %v1328_v5, %v1332_v14 }
 0x5db   :  { %v9524_v12 = vcombine.high %v1329_v52, %v1333_v7  ;;  %v9523_v27 = vcombine.low %v1329_v52, %v1333_v7 }
 0x5dc   :  { %7878 = vmatpush1.bf16.msra.mxu1 %v9465_v20  ;;  %v1336_v20 = vld [vmem:[#allocation8 + $0x11d0] sm:$0xff] }
 0x5dd   :  { %8206 = vmatpush1.bf16.msra.mxu0 %v9467_v16  ;;  %7888 = vmatprep.subr.bf16.mxu1 %v9474_v41  ;;  %v1340_v16 = vld [vmem:[#allocation8 + $0x11f0] sm:$0xff]  ;;  %v1337_v41 = vld [vmem:[#allocation8 + $0x11d8] sm:$0xff] }
 0x5de   :  { %8216 = vmatprep.subr.bf16.mxu0 %v9476_v17  ;;  %v1341_v17 = vld [vmem:[#allocation8 + $0x11f8] sm:$0xff]  ;;  %v9529_v29 = vcombine.low %v1336_v20, %v1340_v16 }
 0x5df   :  { %7880 = vmatmul.mubr.bf16.vlgmr.msra.gmra.mrb[12].mxu1 %v11219_v43  ;;  %v9532_v24 = vcombine.high %v1337_v41, %v1341_v17 }
 0x5e0   :  { %8208 = vmatmul.mubr.bf16.vlgmr.msra.gmra.mrb[12].mxu0 %v11219_v43  ;;  %7889 = vmatpush1.bf16.msra.mxu1 %v9473_v22  ;;  %v9491_v43 = vcombine.low %v1297_v15, %v1301_v18  ;;  %v9530_v22 = vcombine.high %v1336_v20, %v1340_v16 }
 0x5e1   :  { %7920 = vmatprep.mubr.bf16.mxu1 %v11223_v49  ;;  %8217 = vmatpush1.bf16.msra.mxu0 %v9475_v53  ;;  %v1348_v53 = vld [vmem:[#allocation8 + $0x1230] sm:$0xff] }
 0x5e2   :  { %8248 = vmatprep.mubr.bf16.mxu0 %v11223_v49  ;;  %7890 = vmatprep.subr.bf16.mxu1 %v9482_v1  ;;  %v9497_v49 = vcombine.low %v1304_v37, %v1308_v42  ;;  %v1345_v1 = vld [vmem:[#allocation8 + $0x1218] sm:$0xff]  ;;  %v9538_v15 = vcombine.high %v1344_v25, %v1348_v53  ;;  %v9537_v37 = vcombine.low %v1344_v25, %v1348_v53 }
 0x5e3   :  { %8218 = vmatprep.subr.bf16.mxu0 %v9484_v33  ;;  %v9531_v33 = vcombine.low %v1337_v41, %v1341_v17  ;;  %v9540_v18 = vcombine.high %v1345_v1, %v1349_v26  ;;  %v9539_v42 = vcombine.low %v1345_v1, %v1349_v26 }
 0x5e4   :  { %7891 = vmatpush1.bf16.msra.mxu1 %v9481_v38  ;;  %v1352_v38 = vld [vmem:[#allocation8 + $0x1250] sm:$0xff] }
 0x5e5   :  { %8219 = vmatpush1.bf16.msra.mxu0 %v9483_v19  ;;  %7892 = vmatprep.subr.bf16.mxu1 %v9490_v39  ;;  %v1356_v19 = vld [vmem:[#allocation8 + $0x1270] sm:$0xff]  ;;  %v1353_v39 = vld [vmem:[#allocation8 + $0x1258] sm:$0xff] }
 0x5e6   :  { %8220 = vmatprep.subr.bf16.mxu0 %v9492_v48  ;;  %v1357_v48 = vld [vmem:[#allocation8 + $0x1278] sm:$0xff]  ;;  %v9546_v45 = vcombine.high %v1352_v38, %v1356_v19  ;;  %v9545_v56 = vcombine.low %v1352_v38, %v1356_v19 }
 0x5e7   :  { %v9548_v46 = vcombine.high %v1353_v39, %v1357_v48  ;;  %v9547_v40 = vcombine.low %v1353_v39, %v1357_v48 }
 0x5e8   :  { %7893 = vmatpush1.bf16.msra.mxu1 %v9489_v50  ;;  %v1360_v50 = vld [vmem:[#allocation8 + $0x1290] sm:$0xff] }
 0x5e9   :  { %8221 = vmatpush1.bf16.msra.mxu0 %v9491_v43  ;;  %7894 = vmatprep.subr.bf16.mxu1 %v9498_v51  ;;  %v1364_v43 = vld [vmem:[#allocation8 + $0x12b0] sm:$0xff]  ;;  %v1361_v51 = vld [vmem:[#allocation8 + $0x1298] sm:$0xff] }
 0x5ea   :  { %8222 = vmatprep.subr.bf16.mxu0 %v9500_v31  ;;  %v1365_v31 = vld [vmem:[#allocation8 + $0x12b8] sm:$0xff]  ;;  %v9554_v57 = vcombine.high %v1360_v50, %v1364_v43  ;;  %v9553_v0 = vcombine.low %v1360_v50, %v1364_v43 }
 0x5eb   :  { %v9556_v58 = vcombine.high %v1361_v51, %v1365_v31  ;;  %v9555_v30 = vcombine.low %v1361_v51, %v1365_v31 }
 0x5ec   :  { %7895 = vmatpush1.bf16.msra.mxu1 %v9497_v49  ;;  %v1368_v49 = vld [vmem:[#allocation8 + $0x12d0] sm:$0xff] }
 0x5ed   :  { %8223 = vmatpush1.bf16.msra.mxu0 %v9499_v61  ;;  %7896 = vmatprep.subr.bf16.mxu1 %v9506_v62  ;;  %v1372_v61 = vld [vmem:[#allocation8 + $0x12f0] sm:$0xff]  ;;  %v1369_v62 = vld [vmem:[#allocation8 + $0x12d8] sm:$0xff] }
 0x5ee   :  { %8224 = vmatprep.subr.bf16.mxu0 %v9508_v63  ;;  %v1373_v63 = vld [vmem:[#allocation8 + $0x12f8] sm:$0xff]  ;;  %v9562_v32 = vcombine.high %v1368_v49, %v1372_v61  ;;  %v9561_v5 = vcombine.low %v1368_v49, %v1372_v61 }
 0x5ef   :  { %v9564_v34 = vcombine.high %v1369_v62, %v1373_v63  ;;  %v9563_v14 = vcombine.low %v1369_v62, %v1373_v63  ;;  %v1421_v49 = vld [vmem:[#allocation8 + $0x1478] sm:$0xff]  ;;  %v1424_v63 = vld [vmem:[#allocation8 + $0x1490] sm:$0xff] }
 0x5f0   :  { %7897 = vmatpush1.bf16.msra.mxu1 %v9505_v35  ;;  %v1376_v35 = vld [vmem:[#allocation8 + $0x1310] sm:$0xff] }
 0x5f1   :  { %8225 = vmatpush1.bf16.msra.mxu0 %v9507_v36  ;;  %7898 = vmatprep.subr.bf16.mxu1 %v9514_v3  ;;  %v1380_v36 = vld [vmem:[#allocation8 + $0x1330] sm:$0xff]  ;;  %v1377_v3 = vld [vmem:[#allocation8 + $0x1318] sm:$0xff] }
 0x5f2   :  { %8226 = vmatprep.subr.bf16.mxu0 %v9516_v4  ;;  %v1381_v4 = vld [vmem:[#allocation8 + $0x1338] sm:$0xff]  ;;  %v9570_v52 = vcombine.high %v1376_v35, %v1380_v36  ;;  %v9569_v20 = vcombine.low %v1376_v35, %v1380_v36 }
 0x5f3   :  { %v9572_v7 = vcombine.high %v1377_v3, %v1381_v4  ;;  %v9571_v16 = vcombine.low %v1377_v3, %v1381_v4 }
 0x5f4   :  { %7899 = vmatpush1.bf16.msra.mxu1 %v9513_v9  ;;  %v1384_v9 = vld [vmem:[#allocation8 + $0x1350] sm:$0xff] }
 0x5f5   :  { %8227 = vmatpush1.bf16.msra.mxu0 %v9515_v10  ;;  %7900 = vmatprep.subr.bf16.mxu1 %v9522_v11  ;;  %v1388_v10 = vld [vmem:[#allocation8 + $0x1370] sm:$0xff]  ;;  %v1385_v11 = vld [vmem:[#allocation8 + $0x1358] sm:$0xff] }
 0x5f6   :  { %8228 = vmatprep.subr.bf16.mxu0 %v9524_v12  ;;  %v1389_v12 = vld [vmem:[#allocation8 + $0x1378] sm:$0xff]  ;;  %v9578_v41 = vcombine.high %v1384_v9, %v1388_v10  ;;  %v9577_v25 = vcombine.low %v1384_v9, %v1388_v10 }
 0x5f7   :  { %v9580_v17 = vcombine.high %v1385_v11, %v1389_v12  ;;  %v9579_v53 = vcombine.low %v1385_v11, %v1389_v12  ;;  %v1440_v12 = vld [vmem:[#allocation8 + $0x1510] sm:$0xff] }
 0x5f8   :  { %7901 = vmatpush1.bf16.msra.mxu1 %v9521_v23  ;;  %v1392_v23 = vld [vmem:[#allocation8 + $0x1390] sm:$0xff] }
 0x5f9   :  { %8229 = vmatpush1.bf16.msra.mxu0 %v9523_v27  ;;  %7902 = vmatprep.subr.bf16.mxu1 %v9530_v22  ;;  %v1396_v27 = vld [vmem:[#allocation8 + $0x13b0] sm:$0xff]  ;;  %v1393_v22 = vld [vmem:[#allocation8 + $0x1398] sm:$0xff] }
 0x5fa   :  { %8230 = vmatprep.subr.bf16.mxu0 %v9532_v24  ;;  %v1397_v24 = vld [vmem:[#allocation8 + $0x13b8] sm:$0xff]  ;;  %v9586_v1 = vcombine.high %v1392_v23, %v1396_v27  ;;  %v9585_v38 = vcombine.low %v1392_v23, %v1396_v27 }
 0x5fb   :  { %v9588_v26 = vcombine.high %v1393_v22, %v1397_v24  ;;  %v9587_v19 = vcombine.low %v1393_v22, %v1397_v24  ;;  %v1448_v22 = vld [vmem:[#allocation8 + $0x1550] sm:$0xff] }
 0x5fc   :  { %7903 = vmatpush1.bf16.msra.mxu1 %v9529_v29  ;;  %v1400_v29 = vld [vmem:[#allocation8 + $0x13d0] sm:$0xff] }
 0x5fd   :  { %8231 = vmatpush1.bf16.msra.mxu0 %v9531_v33  ;;  %7904 = vmatprep.subr.bf16.mxu1 %v9538_v15  ;;  %v1404_v33 = vld [vmem:[#allocation8 + $0x13f0] sm:$0xff]  ;;  %v1401_v15 = vld [vmem:[#allocation8 + $0x13d8] sm:$0xff] }
 0x5fe   :  { %8232 = vmatprep.subr.bf16.mxu0 %v9540_v18  ;;  %v1405_v18 = vld [vmem:[#allocation8 + $0x13f8] sm:$0xff]  ;;  %v9594_v39 = vcombine.high %v1400_v29, %v1404_v33  ;;  %v9593_v50 = vcombine.low %v1400_v29, %v1404_v33  ;;  %v1452_v24 = vld [vmem:[#allocation8 + $0x1570] sm:$0xff] }
 0x5ff   :  { %v9596_v48 = vcombine.high %v1401_v15, %v1405_v18  ;;  %v9595_v43 = vcombine.low %v1401_v15, %v1405_v18  ;;  %v9642_v29 = vcombine.high %v1448_v22, %v1452_v24  ;;  %v1456_v15 = vld [vmem:[#allocation8 + $0x1590] sm:$0xff] }
 0x600   :  { %7905 = vmatpush1.bf16.msra.mxu1 %v9537_v37  ;;  %v1408_v37 = vld [vmem:[#allocation8 + $0x1410] sm:$0xff] }
 0x601   :  { %8233 = vmatpush1.bf16.msra.mxu0 %v9539_v42  ;;  %7906 = vmatprep.subr.bf16.mxu1 %v9546_v45  ;;  %v1412_v42 = vld [vmem:[#allocation8 + $0x1430] sm:$0xff]  ;;  %v1409_v45 = vld [vmem:[#allocation8 + $0x1418] sm:$0xff] }
 0x602   :  { %8234 = vmatprep.subr.bf16.mxu0 %v9548_v46  ;;  %v1413_v46 = vld [vmem:[#allocation8 + $0x1438] sm:$0xff]  ;;  %v9602_v51 = vcombine.high %v1408_v37, %v1412_v42  ;;  %v1460_v18 = vld [vmem:[#allocation8 + $0x15b0] sm:$0xff] }
 0x603   :  { %v9604_v31 = vcombine.high %v1409_v45, %v1413_v46  ;;  %v9603_v61 = vcombine.low %v1409_v45, %v1413_v46  ;;  %v1464_v45 = vld [vmem:[#allocation8 + $0x15d0] sm:$0xff] }
 0x604   :  { %7907 = vmatpush1.bf16.msra.mxu1 %v9545_v56  ;;  %v1416_v56 = vld [vmem:[#allocation8 + $0x1450] sm:$0xff] }
 0x605   :  { %8235 = vmatpush1.bf16.msra.mxu0 %v9547_v40  ;;  %7908 = vmatprep.subr.bf16.mxu1 %v9554_v57  ;;  %v1420_v40 = vld [vmem:[#allocation8 + $0x1470] sm:$0xff]  ;;  %v9601_v57 = vcombine.low %v1408_v37, %v1412_v42  ;;  %v9650_v37 = vcombine.high %v1456_v15, %v1460_v18 }
 0x606   :  { %8236 = vmatprep.subr.bf16.mxu0 %v9556_v58  ;;  %v1417_v58 = vld [vmem:[#allocation8 + $0x1458] sm:$0xff]  ;;  %v9610_v62 = vcombine.high %v1416_v56, %v1420_v40  ;;  %v9609_v35 = vcombine.low %v1416_v56, %v1420_v40  ;;  %v1468_v46 = vld [vmem:[#allocation8 + $0x15f0] sm:$0xff] }
 0x607   :  { %v9611_v36 = vcombine.low %v1417_v58, %v1421_v49  ;;  %v9658_v56 = vcombine.high %v1464_v45, %v1468_v46 }
 0x608   :  { %7909 = vmatpush1.bf16.msra.mxu1 %v9553_v0  ;;  %v1428_v0 = vld [vmem:[#allocation8 + $0x14b0] sm:$0xff] }
 0x609   :  { %8237 = vmatpush1.bf16.msra.mxu0 %v9555_v30  ;;  %7910 = vmatprep.subr.bf16.mxu1 %v9562_v32  ;;  %v9612_v30 = vcombine.high %v1417_v58, %v1421_v49  ;;  %v1425_v32 = vld [vmem:[#allocation8 + $0x1498] sm:$0xff]  ;;  %v9618_v3 = vcombine.high %v1424_v63, %v1428_v0  ;;  %v9617_v9 = vcombine.low %v1424_v63, %v1428_v0  ;;  %v1476_v58 = vld [vmem:[#allocation8 + $0x1630] sm:$0xff] }
 0x60a   :  { %8238 = vmatprep.subr.bf16.mxu0 %v9564_v34  ;;  %v1429_v34 = vld [vmem:[#allocation8 + $0x14b8] sm:$0xff] }
 0x60b   :  { %v9620_v4 = vcombine.high %v1425_v32, %v1429_v34  ;;  %v1473_v49 = vld [vmem:[#allocation8 + $0x1618] sm:$0xff] }
 0x60c   :  { %7911 = vmatpush1.bf16.msra.mxu1 %v9561_v5  ;;  %v1432_v5 = vld [vmem:[#allocation8 + $0x14d0] sm:$0xff] }
 0x60d   :  { %8239 = vmatpush1.bf16.msra.mxu0 %v9563_v14  ;;  %7912 = vmatprep.subr.bf16.mxu1 %v9570_v52  ;;  %v1436_v14 = vld [vmem:[#allocation8 + $0x14f0] sm:$0xff]  ;;  %v1433_v52 = vld [vmem:[#allocation8 + $0x14d8] sm:$0xff] }
 0x60e   :  { %8240 = vmatprep.subr.bf16.mxu0 %v9572_v7  ;;  %v1437_v7 = vld [vmem:[#allocation8 + $0x14f8] sm:$0xff]  ;;  %v9626_v10 = vcombine.high %v1432_v5, %v1436_v14 }
 0x60f   :  { %v9628_v11 = vcombine.high %v1433_v52, %v1437_v7 }
 0x610   :  { %7913 = vmatpush1.bf16.msra.mxu1 %v9569_v20  ;;  %v1444_v20 = vld [vmem:[#allocation8 + $0x1530] sm:$0xff] }
 0x611   :  { %8241 = vmatpush1.bf16.msra.mxu0 %v9571_v16  ;;  %7914 = vmatprep.subr.bf16.mxu1 %v9578_v41  ;;  %v1441_v16 = vld [vmem:[#allocation8 + $0x1518] sm:$0xff]  ;;  %v9634_v23 = vcombine.high %v1440_v12, %v1444_v20 }
 0x612   :  { %8242 = vmatprep.subr.bf16.mxu0 %v9580_v17  ;;  %v1445_v41 = vld [vmem:[#allocation8 + $0x1538] sm:$0xff]  ;;  %v9627_v17 = vcombine.low %v1433_v52, %v1437_v7  ;;  %v1488_v52 = vld [vmem:[#allocation8 + $0x1690] sm:$0xff] }
 0x613   :  { %v9636_v27 = vcombine.high %v1441_v16, %v1445_v41  ;;  %v1492_v7 = vld [vmem:[#allocation8 + $0x16b0] sm:$0xff] }
 0x614   :  { %7915 = vmatpush1.bf16.msra.mxu1 %v9577_v25  ;;  %v1449_v25 = vld [vmem:[#allocation8 + $0x1558] sm:$0xff] }
 0x615   :  { %8243 = vmatpush1.bf16.msra.mxu0 %v9579_v53  ;;  %7916 = vmatprep.subr.bf16.mxu1 %v9586_v1  ;;  %v1453_v53 = vld [vmem:[#allocation8 + $0x1578] sm:$0xff]  ;;  %v9633_v1 = vcombine.low %v1440_v12, %v1444_v20  ;;  %v9682_v12 = vcombine.high %v1488_v52, %v1492_v7 }
 0x616   :  { %8244 = vmatprep.subr.bf16.mxu0 %v9588_v26  ;;  %v9635_v26 = vcombine.low %v1441_v16, %v1445_v41  ;;  %v9644_v33 = vcombine.high %v1449_v25, %v1453_v53  ;;  %v1496_v16 = vld [vmem:[#allocation8 + $0x16d0] sm:$0xff] }
 0x617   :  { %v1500_v41 = vld [vmem:[#allocation8 + $0x16f0] sm:$0xff] }
 0x618   :  { %7917 = vmatpush1.bf16.msra.mxu1 %v9585_v38  ;;  %v1457_v38 = vld [vmem:[#allocation8 + $0x1598] sm:$0xff] }
 0x619   :  { %8245 = vmatpush1.bf16.msra.mxu0 %v9587_v19  ;;  %7918 = vmatprep.subr.bf16.mxu1 %v9594_v39  ;;  %v1461_v19 = vld [vmem:[#allocation8 + $0x15b8] sm:$0xff]  ;;  %v9641_v39 = vcombine.low %v1448_v22, %v1452_v24  ;;  %v9690_v22 = vcombine.high %v1496_v16, %v1500_v41 }
 0x61a   :  { %8246 = vmatprep.subr.bf16.mxu0 %v9596_v48  ;;  %v9643_v48 = vcombine.low %v1449_v25, %v1453_v53  ;;  %v9652_v42 = vcombine.high %v1457_v38, %v1461_v19  ;;  %v1504_v25 = vld [vmem:[#allocation8 + $0x1710] sm:$0xff] }
 0x61b   :  { %v1508_v53 = vld [vmem:[#allocation8 + $0x1730] sm:$0xff] }
 0x61c   :  { %7919 = vmatpush1.bf16.msra.mxu1 %v9593_v50  ;;  %v1465_v50 = vld [vmem:[#allocation8 + $0x15d8] sm:$0xff] }
 0x61d   :  { %8247 = vmatpush1.bf16.msra.mxu0 %v9595_v43  ;;  %7929 = vmatprep.subr.bf16.mxu1 %v9602_v51  ;;  %v1469_v43 = vld [vmem:[#allocation8 + $0x15f8] sm:$0xff]  ;;  %v9649_v51 = vcombine.low %v1456_v15, %v1460_v18  ;;  %v9698_v15 = vcombine.high %v1504_v25, %v1508_v53 }
 0x61e   :  { %8257 = vmatprep.subr.bf16.mxu0 %v9604_v31  ;;  %v9651_v31 = vcombine.low %v1457_v38, %v1461_v19  ;;  %v9660_v40 = vcombine.high %v1465_v50, %v1469_v43  ;;  %v9659_v63 = vcombine.low %v1465_v50, %v1469_v43  ;;  %v1512_v38 = vld [vmem:[#allocation8 + $0x1750] sm:$0xff] }
 0x61f   :  { %7921 = vmatmul.mubr.bf16.vlgmr.msra.gmra.mrb[12].mxu1 %v11230_v8  ;;  %v1516_v19 = vld [vmem:[#allocation8 + $0x1770] sm:$0xff] }
 0x620   :  { %8249 = vmatmul.mubr.bf16.vlgmr.msra.gmra.mrb[12].mxu0 %v11230_v8  ;;  %7930 = vmatpush1.bf16.msra.mxu1 %v9601_v57  ;;  %v9619_v8 = vcombine.low %v1425_v32, %v1429_v34  ;;  %v1472_v57 = vld [vmem:[#allocation8 + $0x1610] sm:$0xff] }
 0x621   :  { %7961 = vmatprep.mubr.bf16.mxu1 %v11235_v13  ;;  %8258 = vmatpush1.bf16.msra.mxu0 %v9603_v61  ;;  %v1477_v61 = vld [vmem:[#allocation8 + $0x1638] sm:$0xff]  ;;  %v9666_v0 = vcombine.high %v1472_v57, %v1476_v58  ;;  %v1480_v32 = vld [vmem:[#allocation8 + $0x1650] sm:$0xff] }
 0x622   :  { %8289 = vmatprep.mubr.bf16.mxu0 %v11235_v13  ;;  %7931 = vmatprep.subr.bf16.mxu1 %v9610_v62  ;;  %v9625_v13 = vcombine.low %v1432_v5, %v1436_v14  ;;  %v9657_v62 = vcombine.low %v1464_v45, %v1468_v46  ;;  %v1484_v34 = vld [vmem:[#allocation8 + $0x1670] sm:$0xff]  ;;  %v9706_v45 = vcombine.high %v1512_v38, %v1516_v19 }
 0x623   :  { %8259 = vmatprep.subr.bf16.mxu0 %v9612_v30  ;;  %v9668_v30 = vcombine.high %v1473_v49, %v1477_v61  ;;  %v9674_v5 = vcombine.high %v1480_v32, %v1484_v34  ;;  %v1520_v50 = vld [vmem:[#allocation8 + $0x1790] sm:$0xff] }
 0x624   :  { %7932 = vmatpush1.bf16.msra.mxu1 %v9609_v35  ;;  %v1481_v35 = vld [vmem:[#allocation8 + $0x1658] sm:$0xff]  ;;  %v1524_v43 = vld [vmem:[#allocation8 + $0x17b0] sm:$0xff] }
 0x625   :  { %8260 = vmatpush1.bf16.msra.mxu0 %v9611_v36  ;;  %7933 = vmatprep.subr.bf16.mxu1 %v9618_v3  ;;  %v1485_v36 = vld [vmem:[#allocation8 + $0x1678] sm:$0xff]  ;;  %v9665_v3 = vcombine.low %v1472_v57, %v1476_v58  ;;  %v9714_v57 = vcombine.high %v1520_v50, %v1524_v43 }
 0x626   :  { %8261 = vmatprep.subr.bf16.mxu0 %v9620_v4  ;;  %v9667_v4 = vcombine.low %v1473_v49, %v1477_v61  ;;  %v9676_v14 = vcombine.high %v1481_v35, %v1485_v36  ;;  %v1528_v49 = vld [vmem:[#allocation8 + $0x17d0] sm:$0xff] }
 0x627   :  { %v1532_v61 = vld [vmem:[#allocation8 + $0x17f0] sm:$0xff] }
 0x628   :  { %7934 = vmatpush1.bf16.msra.mxu1 %v9617_v9  ;;  %v1489_v9 = vld [vmem:[#allocation8 + $0x1698] sm:$0xff] }
 0x629   :  { %8262 = vmatpush1.bf16.msra.mxu0 %v9619_v8  ;;  %7935 = vmatprep.subr.bf16.mxu1 %v9626_v10  ;;  %v1493_v8 = vld [vmem:[#allocation8 + $0x16b8] sm:$0xff]  ;;  %v9673_v10 = vcombine.low %v1480_v32, %v1484_v34  ;;  %v9722_v32 = vcombine.high %v1528_v49, %v1532_v61 }
 0x62a   :  { %8263 = vmatprep.subr.bf16.mxu0 %v9628_v11  ;;  %v9675_v11 = vcombine.low %v1481_v35, %v1485_v36  ;;  %v9684_v20 = vcombine.high %v1489_v9, %v1493_v8  ;;  %v1536_v35 = vld [vmem:[#allocation8 + $0x1810] sm:$0xff] }
 0x62b   :  { %v1540_v36 = vld [vmem:[#allocation8 + $0x1830] sm:$0xff] }
 0x62c   :  { %7936 = vmatpush1.bf16.msra.mxu1 %v9625_v13  ;;  %v1497_v13 = vld [vmem:[#allocation8 + $0x16d8] sm:$0xff] }
 0x62d   :  { %8264 = vmatpush1.bf16.msra.mxu0 %v9627_v17  ;;  %7937 = vmatprep.subr.bf16.mxu1 %v9634_v23  ;;  %v1501_v17 = vld [vmem:[#allocation8 + $0x16f8] sm:$0xff]  ;;  %v9681_v23 = vcombine.low %v1488_v52, %v1492_v7  ;;  %v9730_v52 = vcombine.high %v1536_v35, %v1540_v36 }
 0x62e   :  { %8265 = vmatprep.subr.bf16.mxu0 %v9636_v27  ;;  %v9683_v27 = vcombine.low %v1489_v9, %v1493_v8  ;;  %v9692_v24 = vcombine.high %v1497_v13, %v1501_v17  ;;  %v1544_v9 = vld [vmem:[#allocation8 + $0x1850] sm:$0xff] }
 0x62f   :  { %v1548_v8 = vld [vmem:[#allocation8 + $0x1870] sm:$0xff] }
 0x630   :  { %7938 = vmatpush1.bf16.msra.mxu1 %v9633_v1  ;;  %v1505_v1 = vld [vmem:[#allocation8 + $0x1718] sm:$0xff] }
 0x631   :  { %8266 = vmatpush1.bf16.msra.mxu0 %v9635_v26  ;;  %7939 = vmatprep.subr.bf16.mxu1 %v9642_v29  ;;  %v1509_v26 = vld [vmem:[#allocation8 + $0x1738] sm:$0xff]  ;;  %v9689_v29 = vcombine.low %v1496_v16, %v1500_v41  ;;  %v9738_v16 = vcombine.high %v1544_v9, %v1548_v8  ;;  %v1552_v41 = vld [vmem:[#allocation8 + $0x1890] sm:$0xff] }
 0x632   :  { %8267 = vmatprep.subr.bf16.mxu0 %v9644_v33  ;;  %v9691_v33 = vcombine.low %v1497_v13, %v1501_v17  ;;  %v9700_v18 = vcombine.high %v1505_v1, %v1509_v26  ;;  %v1556_v13 = vld [vmem:[#allocation8 + $0x18b0] sm:$0xff] }
 0x634   :  { %7940 = vmatpush1.bf16.msra.mxu1 %v9641_v39  ;;  %v1513_v39 = vld [vmem:[#allocation8 + $0x1758] sm:$0xff] }
 0x635   :  { %8268 = vmatpush1.bf16.msra.mxu0 %v9643_v48  ;;  %7941 = vmatprep.subr.bf16.mxu1 %v9650_v37  ;;  %v1517_v48 = vld [vmem:[#allocation8 + $0x1778] sm:$0xff]  ;;  %v9697_v37 = vcombine.low %v1504_v25, %v1508_v53  ;;  %v9746_v25 = vcombine.high %v1552_v41, %v1556_v13 }
 0x636   :  { %8269 = vmatprep.subr.bf16.mxu0 %v9652_v42  ;;  %v9699_v42 = vcombine.low %v1505_v1, %v1509_v26  ;;  %v9708_v46 = vcombine.high %v1513_v39, %v1517_v48  ;;  %v1560_v1 = vld [vmem:[#allocation8 + $0x18d0] sm:$0xff] }
 0x637   :  { %v1564_v26 = vld [vmem:[#allocation8 + $0x18f0] sm:$0xff] }
 0x638   :  { %7942 = vmatpush1.bf16.msra.mxu1 %v9649_v51  ;;  %v1521_v51 = vld [vmem:[#allocation8 + $0x1798] sm:$0xff] }
 0x639   :  { %8270 = vmatpush1.bf16.msra.mxu0 %v9651_v31  ;;  %7943 = vmatprep.subr.bf16.mxu1 %v9658_v56  ;;  %v1525_v31 = vld [vmem:[#allocation8 + $0x17b8] sm:$0xff]  ;;  %v9705_v56 = vcombine.low %v1512_v38, %v1516_v19  ;;  %v1568_v19 = vld [vmem:[#allocation8 + $0x1910] sm:$0xff] }
 0x63a   :  { %8271 = vmatprep.subr.bf16.mxu0 %v9660_v40  ;;  %v9707_v40 = vcombine.low %v1513_v39, %v1517_v48  ;;  %v9716_v58 = vcombine.high %v1521_v51, %v1525_v31  ;;  %v1572_v39 = vld [vmem:[#allocation8 + $0x1930] sm:$0xff]  ;;  %v1569_v48 = vld [vmem:[#allocation8 + $0x1918] sm:$0xff] }
 0x63c   :  { %7944 = vmatpush1.bf16.msra.mxu1 %v9657_v62  ;;  %v1529_v62 = vld [vmem:[#allocation8 + $0x17d8] sm:$0xff] }
 0x63d   :  { %8272 = vmatpush1.bf16.msra.mxu0 %v9659_v63  ;;  %7945 = vmatprep.subr.bf16.mxu1 %v9666_v0  ;;  %v1533_v63 = vld [vmem:[#allocation8 + $0x17f8] sm:$0xff]  ;;  %v9713_v0 = vcombine.low %v1520_v50, %v1524_v43  ;;  %v1576_v50 = vld [vmem:[#allocation8 + $0x1950] sm:$0xff] }
 0x63e   :  { %8273 = vmatprep.subr.bf16.mxu0 %v9668_v30  ;;  %v9715_v30 = vcombine.low %v1521_v51, %v1525_v31  ;;  %v9724_v34 = vcombine.high %v1529_v62, %v1533_v63  ;;  %v1580_v43 = vld [vmem:[#allocation8 + $0x1970] sm:$0xff]  ;;  %v1577_v51 = vld [vmem:[#allocation8 + $0x1958] sm:$0xff] }
 0x63f   :  { %v1581_v31 = vld [vmem:[#allocation8 + $0x1978] sm:$0xff] }
 0x640   :  { %7946 = vmatpush1.bf16.msra.mxu1 %v9665_v3  ;;  %v1537_v3 = vld [vmem:[#allocation8 + $0x1818] sm:$0xff] }
 0x641   :  { %8274 = vmatpush1.bf16.msra.mxu0 %v9667_v4  ;;  %7947 = vmatprep.subr.bf16.mxu1 %v9674_v5  ;;  %v1541_v4 = vld [vmem:[#allocation8 + $0x1838] sm:$0xff]  ;;  %v9721_v5 = vcombine.low %v1528_v49, %v1532_v61  ;;  %v1584_v49 = vld [vmem:[#allocation8 + $0x1990] sm:$0xff] }
 0x642   :  { %8275 = vmatprep.subr.bf16.mxu0 %v9676_v14  ;;  %v9723_v14 = vcombine.low %v1529_v62, %v1533_v63  ;;  %v9732_v7 = vcombine.high %v1537_v3, %v1541_v4  ;;  %v1588_v61 = vld [vmem:[#allocation8 + $0x19b0] sm:$0xff]  ;;  %v1585_v62 = vld [vmem:[#allocation8 + $0x1998] sm:$0xff] }
 0x643   :  { %v1589_v63 = vld [vmem:[#allocation8 + $0x19b8] sm:$0xff] }
 0x644   :  { %7948 = vmatpush1.bf16.msra.mxu1 %v9673_v10  ;;  %v9729_v10 = vcombine.low %v1536_v35, %v1540_v36  ;;  %v1592_v35 = vld [vmem:[#allocation8 + $0x19d0] sm:$0xff] }
 0x645   :  { %8276 = vmatpush1.bf16.msra.mxu0 %v9675_v11  ;;  %7949 = vmatprep.subr.bf16.mxu1 %v9682_v12  ;;  %v1545_v11 = vld [vmem:[#allocation8 + $0x1858] sm:$0xff]  ;;  %v1596_v36 = vld [vmem:[#allocation8 + $0x19f0] sm:$0xff] }
 0x646   :  { %8277 = vmatprep.subr.bf16.mxu0 %v9684_v20  ;;  %v1549_v12 = vld [vmem:[#allocation8 + $0x1878] sm:$0xff]  ;;  %v9731_v20 = vcombine.low %v1537_v3, %v1541_v4 }
 0x647   :  { %v9740_v17 = vcombine.high %v1545_v11, %v1549_v12  ;;  %v1593_v3 = vld [vmem:[#allocation8 + $0x19d8] sm:$0xff] }
 0x648   :  { %7950 = vmatpush1.bf16.msra.mxu1 %v9681_v23  ;;  %v1553_v23 = vld [vmem:[#allocation8 + $0x1898] sm:$0xff] }
 0x649   :  { %8278 = vmatpush1.bf16.msra.mxu0 %v9683_v27  ;;  %7951 = vmatprep.subr.bf16.mxu1 %v9690_v22  ;;  %v1557_v27 = vld [vmem:[#allocation8 + $0x18b8] sm:$0xff]  ;;  %v9737_v22 = vcombine.low %v1544_v9, %v1548_v8  ;;  %v1600_v9 = vld [vmem:[#allocation8 + $0x1a10] sm:$0xff] }
 0x64a   :  { %8279 = vmatprep.subr.bf16.mxu0 %v9692_v24  ;;  %v9739_v24 = vcombine.low %v1545_v11, %v1549_v12  ;;  %v9748_v53 = vcombine.high %v1553_v23, %v1557_v27  ;;  %v1597_v4 = vld [vmem:[#allocation8 + $0x19f8] sm:$0xff]  ;;  %v1604_v8 = vld [vmem:[#allocation8 + $0x1a30] sm:$0xff]  ;;  %v9785_v12 = vcombine.low %v1592_v35, %v1596_v36 }
 0x64b   :  { %v1605_v11 = vld [vmem:[#allocation8 + $0x1a38] sm:$0xff] }
 0x64c   :  { %7952 = vmatpush1.bf16.msra.mxu1 %v9689_v29  ;;  %v1561_v29 = vld [vmem:[#allocation8 + $0x18d8] sm:$0xff] }
 0x64d   :  { %8280 = vmatpush1.bf16.msra.mxu0 %v9691_v33  ;;  %7953 = vmatprep.subr.bf16.mxu1 %v9698_v15  ;;  %v1565_v33 = vld [vmem:[#allocation8 + $0x18f8] sm:$0xff]  ;;  %v9745_v15 = vcombine.low %v1552_v41, %v1556_v13  ;;  %v1608_v13 = vld [vmem:[#allocation8 + $0x1a50] sm:$0xff] }
 0x64e   :  { %8281 = vmatprep.subr.bf16.mxu0 %v9700_v18  ;;  %v9754_v18 = vcombine.high %v1560_v1, %v1564_v26  ;;  %v9756_v38 = vcombine.high %v1561_v29, %v1565_v33 }
 0x650   :  { %7954 = vmatpush1.bf16.msra.mxu1 %v9697_v37  ;;  %v1573_v37 = vld [vmem:[#allocation8 + $0x1938] sm:$0xff] }
 0x651   :  { %8282 = vmatpush1.bf16.msra.mxu0 %v9699_v42  ;;  %7955 = vmatprep.subr.bf16.mxu1 %v9706_v45  ;;  %v9755_v42 = vcombine.low %v1561_v29, %v1565_v33  ;;  %v9762_v45 = vcombine.high %v1568_v19, %v1572_v39  ;;  %v1617_v29 = vld [vmem:[#allocation8 + $0x1a98] sm:$0xff] }
 0x652   :  { %8283 = vmatprep.subr.bf16.mxu0 %v9708_v46  ;;  %v9764_v46 = vcombine.high %v1569_v48, %v1573_v37  ;;  %v1621_v33 = vld [vmem:[#allocation8 + $0x1ab8] sm:$0xff] }
 0x654   :  { %7956 = vmatpush1.bf16.msra.mxu1 %v9705_v56  ;;  %v9761_v56 = vcombine.low %v1568_v19, %v1572_v39  ;;  %v1624_v19 = vld [vmem:[#allocation8 + $0x1ad0] sm:$0xff] }
 0x655   :  { %8284 = vmatpush1.bf16.msra.mxu0 %v9707_v40  ;;  %7957 = vmatprep.subr.bf16.mxu1 %v9714_v57  ;;  %v9763_v40 = vcombine.low %v1569_v48, %v1573_v37  ;;  %v9770_v57 = vcombine.high %v1576_v50, %v1580_v43  ;;  %v1628_v39 = vld [vmem:[#allocation8 + $0x1af0] sm:$0xff]  ;;  %v1625_v48 = vld [vmem:[#allocation8 + $0x1ad8] sm:$0xff] }
 0x656   :  { %8285 = vmatprep.subr.bf16.mxu0 %v9716_v58  ;;  %v9772_v58 = vcombine.high %v1577_v51, %v1581_v31  ;;  %v1629_v37 = vld [vmem:[#allocation8 + $0x1af8] sm:$0xff] }
 0x658   :  { %7958 = vmatpush1.bf16.msra.mxu1 %v9713_v0  ;;  %v9769_v0 = vcombine.low %v1576_v50, %v1580_v43  ;;  %v1632_v50 = vld [vmem:[#allocation8 + $0x1b10] sm:$0xff] }
 0x659   :  { %8286 = vmatpush1.bf16.msra.mxu0 %v9715_v30  ;;  %7959 = vmatprep.subr.bf16.mxu1 %v9722_v32  ;;  %v9771_v30 = vcombine.low %v1577_v51, %v1581_v31  ;;  %v9778_v32 = vcombine.high %v1584_v49, %v1588_v61  ;;  %v1636_v43 = vld [vmem:[#allocation8 + $0x1b30] sm:$0xff]  ;;  %v1633_v51 = vld [vmem:[#allocation8 + $0x1b18] sm:$0xff] }
 0x65a   :  { %8287 = vmatprep.subr.bf16.mxu0 %v9724_v34  ;;  %v9780_v34 = vcombine.high %v1585_v62, %v1589_v63  ;;  %v1637_v31 = vld [vmem:[#allocation8 + $0x1b38] sm:$0xff] }
 0x65c   :  { %7960 = vmatpush1.bf16.msra.mxu1 %v9721_v5  ;;  %v9777_v5 = vcombine.low %v1584_v49, %v1588_v61  ;;  %v1640_v49 = vld [vmem:[#allocation8 + $0x1b50] sm:$0xff] }
 0x65d   :  { %8288 = vmatpush1.bf16.msra.mxu0 %v9723_v14  ;;  %7970 = vmatprep.subr.bf16.mxu1 %v9730_v52  ;;  %v9779_v14 = vcombine.low %v1585_v62, %v1589_v63  ;;  %v9786_v52 = vcombine.high %v1592_v35, %v1596_v36  ;;  %v1644_v61 = vld [vmem:[#allocation8 + $0x1b70] sm:$0xff]  ;;  %v1641_v62 = vld [vmem:[#allocation8 + $0x1b58] sm:$0xff] }
 0x65e   :  { %8298 = vmatprep.subr.bf16.mxu0 %v9732_v7  ;;  %v9788_v7 = vcombine.high %v1593_v3, %v1597_v4  ;;  %v1645_v63 = vld [vmem:[#allocation8 + $0x1b78] sm:$0xff]  ;;  %v1648_v35 = vld [vmem:[#allocation8 + $0x1b90] sm:$0xff] }
 0x65f   :  { %7962 = vmatmul.mubr.bf16.vlgmr.msra.gmra.mrb[12].mxu1 %v11249_v55  ;;  %v1652_v36 = vld [vmem:[#allocation8 + $0x1bb0] sm:$0xff] }
 0x660   :  { %8290 = vmatmul.mubr.bf16.vlgmr.msra.gmra.mrb[12].mxu0 %v11249_v55  ;;  %7971 = vmatpush1.bf16.msra.mxu1 %v9729_v10  ;;  %v9747_v55 = vcombine.low %v1553_v23, %v1557_v27  ;;  %v1601_v10 = vld [vmem:[#allocation8 + $0x1a18] sm:$0xff] }
 0x661   :  { %8002 = vmatprep.mubr.bf16.mxu1 %v11253_v59  ;;  %8299 = vmatpush1.bf16.msra.mxu0 %v9731_v20  ;;  %v9787_v20 = vcombine.low %v1593_v3, %v1597_v4  ;;  %v9796_v41 = vcombine.high %v1601_v10, %v1605_v11  ;;  %v1609_v23 = vld [vmem:[#allocation8 + $0x1a58] sm:$0xff] }
 0x662   :  { %8330 = vmatprep.mubr.bf16.mxu0 %v11253_v59  ;;  %7972 = vmatprep.subr.bf16.mxu1 %v9738_v16  ;;  %v9753_v59 = vcombine.low %v1560_v1, %v1564_v26  ;;  %v9794_v16 = vcombine.high %v1600_v9, %v1604_v8  ;;  %v1613_v27 = vld [vmem:[#allocation8 + $0x1a78] sm:$0xff]  ;;  %v1616_v1 = vld [vmem:[#allocation8 + $0x1a90] sm:$0xff] }
 0x663   :  { %8300 = vmatprep.subr.bf16.mxu0 %v9740_v17  ;;  %v1612_v17 = vld [vmem:[#allocation8 + $0x1a70] sm:$0xff]  ;;  %v1649_v3 = vld [vmem:[#allocation8 + $0x1b98] sm:$0xff] }
 0x664   :  { %7973 = vmatpush1.bf16.msra.mxu1 %v9737_v22  ;;  %v9793_v22 = vcombine.low %v1600_v9, %v1604_v8  ;;  %v1620_v26 = vld [vmem:[#allocation8 + $0x1ab0] sm:$0xff]  ;;  %v1653_v4 = vld [vmem:[#allocation8 + $0x1bb8] sm:$0xff] }
 0x665   :  { %8301 = vmatpush1.bf16.msra.mxu0 %v9739_v24  ;;  %7974 = vmatprep.subr.bf16.mxu1 %v9746_v25  ;;  %v9795_v24 = vcombine.low %v1601_v10, %v1605_v11  ;;  %v9802_v25 = vcombine.high %v1608_v13, %v1612_v17  ;;  %v1656_v9 = vld [vmem:[#allocation8 + $0x1bd0] sm:$0xff]  ;;  %v1657_v10 = vld [vmem:[#allocation8 + $0x1bd8] sm:$0xff] }
 0x666   :  { %8302 = vmatprep.subr.bf16.mxu0 %v9748_v53  ;;  %v9804_v53 = vcombine.high %v1609_v23, %v1613_v27  ;;  %v1660_v8 = vld [vmem:[#allocation8 + $0x1bf0] sm:$0xff]  ;;  %v1661_v11 = vld [vmem:[#allocation8 + $0x1bf8] sm:$0xff] }
 0x668   :  { %7975 = vmatpush1.bf16.msra.mxu1 %v9745_v15  ;;  %v9801_v15 = vcombine.low %v1608_v13, %v1612_v17  ;;  %v1664_v13 = vld [vmem:[#allocation8 + $0x1c10] sm:$0xff] }
 0x669   :  { %8303 = vmatpush1.bf16.msra.mxu0 %v9747_v55  ;;  %7976 = vmatprep.subr.bf16.mxu1 %v9754_v18  ;;  %v9803_v55 = vcombine.low %v1609_v23, %v1613_v27  ;;  %v9810_v18 = vcombine.high %v1616_v1, %v1620_v26  ;;  %v1668_v17 = vld [vmem:[#allocation8 + $0x1c30] sm:$0xff]  ;;  %v1665_v23 = vld [vmem:[#allocation8 + $0x1c18] sm:$0xff] }
 0x66a   :  { %8304 = vmatprep.subr.bf16.mxu0 %v9756_v38  ;;  %v9812_v38 = vcombine.high %v1617_v29, %v1621_v33  ;;  %v1669_v27 = vld [vmem:[#allocation8 + $0x1c38] sm:$0xff] }
 0x66c   :  { %7977 = vmatpush1.bf16.msra.mxu1 %v9753_v59  ;;  %v9809_v59 = vcombine.low %v1616_v1, %v1620_v26  ;;  %v1672_v1 = vld [vmem:[#allocation8 + $0x1c50] sm:$0xff] }
 0x66d   :  { %8305 = vmatpush1.bf16.msra.mxu0 %v9755_v42  ;;  %7978 = vmatprep.subr.bf16.mxu1 %v9762_v45  ;;  %v9811_v42 = vcombine.low %v1617_v29, %v1621_v33  ;;  %v9818_v45 = vcombine.high %v1624_v19, %v1628_v39  ;;  %v1676_v26 = vld [vmem:[#allocation8 + $0x1c70] sm:$0xff]  ;;  %v9857_v29 = vcombine.low %v1664_v13, %v1668_v17  ;;  %v1673_v33 = vld [vmem:[#allocation8 + $0x1c58] sm:$0xff] }
 0x66e   :  { %8306 = vmatprep.subr.bf16.mxu0 %v9764_v46  ;;  %v9820_v46 = vcombine.high %v1625_v48, %v1629_v37 }
 0x670   :  { %7979 = vmatpush1.bf16.msra.mxu1 %v9761_v56  ;;  %v9817_v56 = vcombine.low %v1624_v19, %v1628_v39  ;;  %v1684_v19 = vld [vmem:[#allocation8 + $0x1cb0] sm:$0xff] }
 0x671   :  { %8307 = vmatpush1.bf16.msra.mxu0 %v9763_v40  ;;  %7980 = vmatprep.subr.bf16.mxu1 %v9770_v57  ;;  %v9819_v40 = vcombine.low %v1625_v48, %v1629_v37  ;;  %v9826_v57 = vcombine.high %v1632_v50, %v1636_v43  ;;  %v1681_v48 = vld [vmem:[#allocation8 + $0x1c98] sm:$0xff] }
 0x672   :  { %8308 = vmatprep.subr.bf16.mxu0 %v9772_v58  ;;  %v9828_v58 = vcombine.high %v1633_v51, %v1637_v31  ;;  %v1685_v37 = vld [vmem:[#allocation8 + $0x1cb8] sm:$0xff] }
 0x674   :  { %7981 = vmatpush1.bf16.msra.mxu1 %v9769_v0  ;;  %v9825_v0 = vcombine.low %v1632_v50, %v1636_v43  ;;  %v1688_v50 = vld [vmem:[#allocation8 + $0x1cd0] sm:$0xff] }
 0x675   :  { %8309 = vmatpush1.bf16.msra.mxu0 %v9771_v30  ;;  %7982 = vmatprep.subr.bf16.mxu1 %v9778_v32  ;;  %v9827_v30 = vcombine.low %v1633_v51, %v1637_v31  ;;  %v9834_v32 = vcombine.high %v1640_v49, %v1644_v61  ;;  %v1692_v43 = vld [vmem:[#allocation8 + $0x1cf0] sm:$0xff]  ;;  %v1689_v51 = vld [vmem:[#allocation8 + $0x1cd8] sm:$0xff] }
 0x676   :  { %8310 = vmatprep.subr.bf16.mxu0 %v9780_v34  ;;  %v9836_v34 = vcombine.high %v1641_v62, %v1645_v63  ;;  %v1693_v31 = vld [vmem:[#allocation8 + $0x1cf8] sm:$0xff] }
 0x678   :  { %7983 = vmatpush1.bf16.msra.mxu1 %v9777_v5  ;;  %v9833_v5 = vcombine.low %v1640_v49, %v1644_v61  ;;  %v1700_v49 = vld [vmem:[#allocation8 + $0x1d30] sm:$0xff]  ;;  %v1697_v61 = vld [vmem:[#allocation8 + $0x1d18] sm:$0xff] }
 0x679   :  { %8311 = vmatpush1.bf16.msra.mxu0 %v9779_v14  ;;  %7984 = vmatprep.subr.bf16.mxu1 %v9786_v52  ;;  %v9835_v14 = vcombine.low %v1641_v62, %v1645_v63  ;;  %v9842_v52 = vcombine.high %v1648_v35, %v1652_v36  ;;  %v1701_v62 = vld [vmem:[#allocation8 + $0x1d38] sm:$0xff]  ;;  %v9883_v63 = vcombine.low %v1689_v51, %v1693_v31 }
 0x67a   :  { %8312 = vmatprep.subr.bf16.mxu0 %v9788_v7  ;;  %v9844_v7 = vcombine.high %v1649_v3, %v1653_v4 }
 0x67c   :  { %7985 = vmatpush1.bf16.msra.mxu1 %v9785_v12  ;;  %v9841_v12 = vcombine.low %v1648_v35, %v1652_v36  ;;  %v1705_v35 = vld [vmem:[#allocation8 + $0x1d58] sm:$0xff] }
 0x67d   :  { %8313 = vmatpush1.bf16.msra.mxu0 %v9787_v20  ;;  %7986 = vmatprep.subr.bf16.mxu1 %v9794_v16  ;;  %v9843_v20 = vcombine.low %v1649_v3, %v1653_v4  ;;  %v9850_v16 = vcombine.high %v1656_v9, %v1660_v8  ;;  %v1709_v36 = vld [vmem:[#allocation8 + $0x1d78] sm:$0xff]  ;;  %v9891_v4 = vcombine.low %v1697_v61, %v1701_v62 }
 0x67e   :  { %8314 = vmatprep.subr.bf16.mxu0 %v9796_v41  ;;  %v9852_v41 = vcombine.high %v1657_v10, %v1661_v11 }
 0x680   :  { %7987 = vmatpush1.bf16.msra.mxu1 %v9793_v22  ;;  %v9849_v22 = vcombine.low %v1656_v9, %v1660_v8  ;;  %v1713_v9 = vld [vmem:[#allocation8 + $0x1d98] sm:$0xff] }
 0x681   :  { %8315 = vmatpush1.bf16.msra.mxu0 %v9795_v24  ;;  %7988 = vmatprep.subr.bf16.mxu1 %v9802_v25  ;;  %v9851_v24 = vcombine.low %v1657_v10, %v1661_v11  ;;  %v9858_v25 = vcombine.high %v1664_v13, %v1668_v17  ;;  %v1717_v8 = vld [vmem:[#allocation8 + $0x1db8] sm:$0xff]  ;;  %v9899_v11 = vcombine.low %v1705_v35, %v1709_v36 }
 0x682   :  { %8316 = vmatprep.subr.bf16.mxu0 %v9804_v53  ;;  %v9860_v53 = vcombine.high %v1665_v23, %v1669_v27  ;;  %v1721_v13 = vld [vmem:[#allocation8 + $0x1dd8] sm:$0xff] }
 0x683   :  { %v1725_v17 = vld [vmem:[#allocation8 + $0x1df8] sm:$0xff] }
 0x684   :  { %7989 = vmatpush1.bf16.msra.mxu1 %v9801_v15  ;;  %v1677_v15 = vld [vmem:[#allocation8 + $0x1c78] sm:$0xff] }
 0x685   :  { %8317 = vmatpush1.bf16.msra.mxu0 %v9803_v55  ;;  %7990 = vmatprep.subr.bf16.mxu1 %v9810_v18  ;;  %v9859_v55 = vcombine.low %v1665_v23, %v1669_v27  ;;  %v9866_v18 = vcombine.high %v1672_v1, %v1676_v26  ;;  %v9868_v39 = vcombine.high %v1673_v33, %v1677_v15 }
 0x686   :  { %8318 = vmatprep.subr.bf16.mxu0 %v9812_v38  ;;  %v1680_v38 = vld [vmem:[#allocation8 + $0x1c90] sm:$0xff]  ;;  %v9907_v27 = vcombine.low %v1713_v9, %v1717_v8 }
 0x688   :  { %7991 = vmatpush1.bf16.msra.mxu1 %v9809_v59  ;;  %v9865_v59 = vcombine.low %v1672_v1, %v1676_v26  ;;  %v1729_v1 = vld [vmem:[#allocation8 + $0x1e18] sm:$0xff] }
 0x689   :  { %8319 = vmatpush1.bf16.msra.mxu0 %v9811_v42  ;;  %7992 = vmatprep.subr.bf16.mxu1 %v9818_v45  ;;  %v9867_v42 = vcombine.low %v1673_v33, %v1677_v15  ;;  %v9874_v45 = vcombine.high %v1680_v38, %v1684_v19  ;;  %v1733_v26 = vld [vmem:[#allocation8 + $0x1e38] sm:$0xff]  ;;  %v9915_v33 = vcombine.low %v1721_v13, %v1725_v17 }
 0x68a   :  { %8320 = vmatprep.subr.bf16.mxu0 %v9820_v46  ;;  %v9876_v46 = vcombine.high %v1681_v48, %v1685_v37 }
 0x68c   :  { %7993 = vmatpush1.bf16.msra.mxu1 %v9817_v56  ;;  %v9873_v56 = vcombine.low %v1680_v38, %v1684_v19  ;;  %v1740_v38 = vld [vmem:[#allocation8 + $0x1e70] sm:$0xff]  ;;  %v1737_v19 = vld [vmem:[#allocation8 + $0x1e58] sm:$0xff] }
 0x68d   :  { %8321 = vmatpush1.bf16.msra.mxu0 %v9819_v40  ;;  %7994 = vmatprep.subr.bf16.mxu1 %v9826_v57  ;;  %v9882_v40 = vcombine.high %v1688_v50, %v1692_v43  ;;  %v9884_v57 = vcombine.high %v1689_v51, %v1693_v31 }
 0x68e   :  { %8322 = vmatprep.subr.bf16.mxu0 %v9828_v58  ;;  %v1696_v58 = vld [vmem:[#allocation8 + $0x1d10] sm:$0xff] }
 0x68f   :  { %v9889_v3 = vcombine.low %v1696_v58, %v1700_v49 }
 0x690   :  { %7995 = vmatpush1.bf16.msra.mxu1 %v9825_v0  ;;  %v9890_v0 = vcombine.high %v1696_v58, %v1700_v49  ;;  %v1753_v58 = vld [vmem:[#allocation8 + $0x1ed8] sm:$0xff] }
 0x691   :  { %8323 = vmatpush1.bf16.msra.mxu0 %v9827_v30  ;;  %7996 = vmatprep.subr.bf16.mxu1 %v9834_v32  ;;  %v9892_v30 = vcombine.high %v1697_v61, %v1701_v62  ;;  %v1704_v32 = vld [vmem:[#allocation8 + $0x1d50] sm:$0xff]  ;;  %v1757_v49 = vld [vmem:[#allocation8 + $0x1ef8] sm:$0xff] }
 0x692   :  { %8324 = vmatprep.subr.bf16.mxu0 %v9836_v34  ;;  %v1708_v34 = vld [vmem:[#allocation8 + $0x1d70] sm:$0xff] }
 0x693   :  { %v9897_v10 = vcombine.low %v1704_v32, %v1708_v34 }
 0x694   :  { %7997 = vmatpush1.bf16.msra.mxu1 %v9833_v5  ;;  %v9898_v5 = vcombine.high %v1704_v32, %v1708_v34  ;;  %v1761_v32 = vld [vmem:[#allocation8 + $0x1f18] sm:$0xff] }
 0x695   :  { %8325 = vmatpush1.bf16.msra.mxu0 %v9835_v14  ;;  %7998 = vmatprep.subr.bf16.mxu1 %v9842_v52  ;;  %v9900_v14 = vcombine.high %v1705_v35, %v1709_v36  ;;  %v1712_v52 = vld [vmem:[#allocation8 + $0x1d90] sm:$0xff]  ;;  %v1765_v34 = vld [vmem:[#allocation8 + $0x1f38] sm:$0xff]  ;;  %v9947_v36 = vcombine.low %v1753_v58, %v1757_v49 }
 0x696   :  { %8326 = vmatprep.subr.bf16.mxu0 %v9844_v7  ;;  %v1716_v7 = vld [vmem:[#allocation8 + $0x1db0] sm:$0xff] }
 0x697   :  { %v9905_v23 = vcombine.low %v1712_v52, %v1716_v7 }
 0x698   :  { %7999 = vmatpush1.bf16.msra.mxu1 %v9841_v12  ;;  %v9906_v12 = vcombine.high %v1712_v52, %v1716_v7  ;;  %v1769_v52 = vld [vmem:[#allocation8 + $0x1f58] sm:$0xff] }
 0x699   :  { %8327 = vmatpush1.bf16.msra.mxu0 %v9843_v20  ;;  %8000 = vmatprep.subr.bf16.mxu1 %v9850_v16  ;;  %v9908_v20 = vcombine.high %v1713_v9, %v1717_v8  ;;  %v1720_v16 = vld [vmem:[#allocation8 + $0x1dd0] sm:$0xff]  ;;  %v1773_v7 = vld [vmem:[#allocation8 + $0x1f78] sm:$0xff]  ;;  %v9955_v8 = vcombine.low %v1761_v32, %v1765_v34 }
 0x69a   :  { %8328 = vmatprep.subr.bf16.mxu0 %v9852_v41  ;;  %v1724_v41 = vld [vmem:[#allocation8 + $0x1df0] sm:$0xff] }
 0x69c   :  { %8001 = vmatpush1.bf16.msra.mxu1 %v9849_v22  ;;  %v9914_v22 = vcombine.high %v1720_v16, %v1724_v41 }
 0x69d   :  { %8329 = vmatpush1.bf16.msra.mxu0 %v9851_v24  ;;  %8011 = vmatprep.subr.bf16.mxu1 %v9858_v25  ;;  %v9916_v24 = vcombine.high %v1721_v13, %v1725_v17  ;;  %v1728_v25 = vld [vmem:[#allocation8 + $0x1e10] sm:$0xff]  ;;  %v9963_v17 = vcombine.low %v1769_v52, %v1773_v7 }
 0x69e   :  { %8339 = vmatprep.subr.bf16.mxu0 %v9860_v53  ;;  %v1732_v53 = vld [vmem:[#allocation8 + $0x1e30] sm:$0xff] }
 0x69f   :  { %8003 = vmatmul.mubr.bf16.vlgmr.msra.gmra.mrb[12].mxu1 %v11260_v28  ;;  %v9922_v15 = vcombine.high %v1728_v25, %v1732_v53 }
 0x6a0   :  { %8331 = vmatmul.mubr.bf16.vlgmr.msra.gmra.mrb[12].mxu0 %v11260_v28  ;;  %8012 = vmatpush1.bf16.msra.mxu1 %v9857_v29  ;;  %v9875_v28 = vcombine.low %v1681_v48, %v1685_v37  ;;  %v9913_v29 = vcombine.low %v1720_v16, %v1724_v41  ;;  %v9921_v48 = vcombine.low %v1728_v25, %v1732_v53  ;;  %v1777_v16 = vld [vmem:[#allocation8 + $0x1f98] sm:$0xff]  ;;  %v1798_v25 = vsub.s32 1, %v11021_v54 }
 0x6a1   :  { %8043 = vmatprep.mubr.bf16.mxu1 %v11265_v21  ;;  %8340 = vmatpush1.bf16.msra.mxu0 %v9859_v55  ;;  %v9924_v55 = vcombine.high %v1729_v1, %v1733_v26  ;;  %v9923_v37 = vcombine.low %v1729_v1, %v1733_v26  ;;  %v1781_v41 = vld [vmem:[#allocation8 + $0x1fb8] sm:$0xff]  ;;  %v11315_v26 = vld [vmem:[#allocation10] sm:$0xff] }
 0x6a2   :  { %8371 = vmatprep.mubr.bf16.mxu0 %v11265_v21  ;;  %8013 = vmatprep.subr.bf16.mxu1 %v9866_v18  ;;  %v9881_v21 = vcombine.low %v1688_v50, %v1692_v43  ;;  %v1736_v18 = vld [vmem:[#allocation8 + $0x1e50] sm:$0xff]  ;;  %v1745_v50 = vld [vmem:[#allocation8 + $0x1e98] sm:$0xff] }
 0x6a3   :  { %8341 = vmatprep.subr.bf16.mxu0 %v9868_v39  ;;  %v1741_v39 = vld [vmem:[#allocation8 + $0x1e78] sm:$0xff]  ;;  %v9929_v51 = vcombine.low %v1736_v18, %v1740_v38 }
 0x6a4   :  { %8014 = vmatpush1.bf16.msra.mxu1 %v9865_v59  ;;  %v9930_v59 = vcombine.high %v1736_v18, %v1740_v38  ;;  %v1749_v43 = vld [vmem:[#allocation8 + $0x1eb8] sm:$0xff]  ;;  %v9931_v31 = vcombine.low %v1737_v19, %v1741_v39  ;;  %v1799_v38 = vrot.slane %v11315_v26, %v1798_v25  ;;  %v10277_v25 = vld [vmem:[#allocation11 + $0x148] sm:$0xff]  }
 0x6a5   :  { %8342 = vmatpush1.bf16.msra.mxu0 %v9867_v42  ;;  %8015 = vmatprep.subr.bf16.mxu1 %v9874_v45  ;;  %v9932_v42 = vcombine.high %v1737_v19, %v1741_v39  ;;  %v1744_v45 = vld [vmem:[#allocation8 + $0x1e90] sm:$0xff]  ;;  %v9939_v62 = vcombine.low %v1745_v50, %v1749_v43  ;;  %v1785_v53 = vld [vmem:[#allocation8 + $0x1fd8] sm:$0xff] }
 0x6a6   :  { %8343 = vmatprep.subr.bf16.mxu0 %v9876_v46  ;;  %v1748_v46 = vld [vmem:[#allocation8 + $0x1eb0] sm:$0xff]  ;;  %v1789_v1 = vld [vmem:[#allocation8 + $0x1ff8] sm:$0xff] }
 0x6a7   :  { %v9937_v61 = vcombine.low %v1744_v45, %v1748_v46  ;;  %v9980_v18 = vcombine.high %v1785_v53, %v1789_v1 }
 0x6a8   :  { %8016 = vmatpush1.bf16.msra.mxu1 %v9873_v56  ;;  %v9938_v56 = vcombine.high %v1744_v45, %v1748_v46  ;;  %v9982_v46 = vld [vmem:[#allocation11] sm:$0xff]  }
 0x6a9   :  { %8344 = vmatpush1.bf16.msra.mxu0 %v9875_v28  ;;  %8017 = vmatprep.subr.bf16.mxu1 %v9882_v40  ;;  %v9940_v28 = vcombine.high %v1745_v50, %v1749_v43  ;;  %v1752_v40 = vld [vmem:[#allocation8 + $0x1ed0] sm:$0xff]  ;;  %v10252_v50 = vld [vmem:[#allocation11 + $0x80] sm:$0xff]  }
 0x6aa   :  { %8345 = vmatprep.subr.bf16.mxu0 %v9884_v57  ;;  %v1756_v57 = vld [vmem:[#allocation8 + $0x1ef0] sm:$0xff] }
 0x6ab   :  { %v9945_v35 = vcombine.low %v1752_v40, %v1756_v57 }
 0x6ac   :  { %8018 = vmatpush1.bf16.msra.mxu1 %v9881_v21  ;;  %v9946_v21 = vcombine.high %v1752_v40, %v1756_v57  ;;  %v10262_v40 = vld [vmem:[#allocation11 + $0xd0] sm:$0xff]  }
 0x6ad   :  { %8346 = vmatpush1.bf16.msra.mxu0 %v9883_v63  ;;  %8019 = vmatprep.subr.bf16.mxu1 %v9890_v0  ;;  %v9948_v63 = vcombine.high %v1753_v58, %v1757_v49  ;;  %v1760_v0 = vld [vmem:[#allocation8 + $0x1f10] sm:$0xff]  ;;  %v10238_v57 = vld [vmem:[#allocation11 + $0x10] sm:$0xff]   ;;  %v10247_v49 = vld [vmem:[#allocation11 + $0x58] sm:$0xff]  }
 0x6ae   :  { %8347 = vmatprep.subr.bf16.mxu0 %v9892_v30  ;;  %v1764_v30 = vld [vmem:[#allocation8 + $0x1f30] sm:$0xff]  ;;  %v10254_v58 = vld [vmem:[#allocation11 + $0x90] sm:$0xff]  }
 0x6af   :  { %v9953_v9 = vcombine.low %v1760_v0, %v1764_v30 }
 0x6b0   :  { %8020 = vmatpush1.bf16.msra.mxu1 %v9889_v3  ;;  %v9954_v3 = vcombine.high %v1760_v0, %v1764_v30  ;;  %v10240_v0 = vld [vmem:[#allocation11 + $0x20] sm:$0xff]  }
 0x6b1   :  { %8348 = vmatpush1.bf16.msra.mxu0 %v9891_v4  ;;  %8021 = vmatprep.subr.bf16.mxu1 %v9898_v5  ;;  %v9956_v4 = vcombine.high %v1761_v32, %v1765_v34  ;;  %v1768_v5 = vld [vmem:[#allocation8 + $0x1f50] sm:$0xff]  ;;  %v10256_v30 = vld [vmem:[#allocation11 + $0xa0] sm:$0xff]  }
 0x6b2   :  { %8349 = vmatprep.subr.bf16.mxu0 %v9900_v14  ;;  %v1772_v14 = vld [vmem:[#allocation8 + $0x1f70] sm:$0xff] }
 0x6b3   :  { %v9961_v13 = vcombine.low %v1768_v5, %v1772_v14  ;;  %v10249_v32 = vld [vmem:[#allocation11 + $0x68] sm:$0xff]  }
 0x6b4   :  { %8022 = vmatpush1.bf16.msra.mxu1 %v9897_v10  ;;  %v9962_v10 = vcombine.high %v1768_v5, %v1772_v14  ;;  %v10265_v34 = vld [vmem:[#allocation11 + $0xe8] sm:$0xff]   ;;  %v10250_v5 = vld [vmem:[#allocation11 + $0x70] sm:$0xff]  }
 0x6b5   :  { %8350 = vmatpush1.bf16.msra.mxu0 %v9899_v11  ;;  %8023 = vmatprep.subr.bf16.mxu1 %v9906_v12  ;;  %v9964_v11 = vcombine.high %v1769_v52, %v1773_v7  ;;  %v1776_v12 = vld [vmem:[#allocation8 + $0x1f90] sm:$0xff]  ;;  %v10266_v14 = vld [vmem:[#allocation11 + $0xf0] sm:$0xff]  }
 0x6b6   :  { %8351 = vmatprep.subr.bf16.mxu0 %v9908_v20  ;;  %v1780_v20 = vld [vmem:[#allocation8 + $0x1fb0] sm:$0xff]  ;;  %v10242_v7 = vld [vmem:[#allocation11 + $0x30] sm:$0xff]  }
 0x6b8   :  { %8024 = vmatpush1.bf16.msra.mxu1 %v9905_v23  ;;  %v9970_v23 = vcombine.high %v1776_v12, %v1780_v20 }
 0x6b9   :  { %8352 = vmatpush1.bf16.msra.mxu0 %v9907_v27  ;;  %8025 = vmatprep.subr.bf16.mxu1 %v9914_v22  ;;  %v9972_v27 = vcombine.high %v1777_v16, %v1781_v41  ;;  %v1784_v22 = vld [vmem:[#allocation8 + $0x1fd0] sm:$0xff] }
 0x6ba   :  { %8353 = vmatprep.subr.bf16.mxu0 %v9916_v24  ;;  %v1788_v24 = vld [vmem:[#allocation8 + $0x1ff0] sm:$0xff] }
 0x6bb   :  { %v9977_v39 = vcombine.low %v1784_v22, %v1788_v24 }
 0x6bc   :  { %8026 = vmatpush1.bf16.msra.mxu1 %v9913_v29  ;;  %v1806_v29 = vsub.s32 3, %v11021_v54 }
 0x6bd   :  { %8354 = vmatpush1.bf16.msra.mxu0 %v9915_v33  ;;  %8027 = vmatprep.subr.bf16.mxu1 %v9922_v15  ;;  %v9969_v33 = vcombine.low %v1776_v12, %v1780_v20  ;;  %v9971_v15 = vcombine.low %v1777_v16, %v1781_v41  ;;  %v10243_v20 = vld [vmem:[#allocation11 + $0x38] sm:$0xff]  }
 0x6be   :  { %8355 = vmatprep.subr.bf16.mxu0 %v9924_v55  ;;  %v9978_v55 = vcombine.high %v1784_v22, %v1788_v24  ;;  %v1807_v19 = vrot.slane %v11315_v26, %v1806_v29  ;;  %v10259_v41 = vld [vmem:[#allocation11 + $0xb8] sm:$0xff]   ;;  %v10284_v24 = vld [vmem:[#allocation11 + $0x180] sm:$0xff]   ;;  %v10294_v29 = vld [vmem:[#allocation11 + $0x1d0] sm:$0xff]  }
 0x6c0   :  { %8028 = vmatpush1.bf16.msra.mxu1 %v9921_v48  ;;  %v9979_v48 = vcombine.low %v1785_v53, %v1789_v1  ;;  %v10587_v45 = vadd.f32 %v11296_v47, %v1807_v19  ;;  %v10253_v47 = vld [vmem:[#allocation11 + $0x88] sm:$0xff]   ;;  %v10278_v1 = vld [vmem:[#allocation11 + $0x150] sm:$0xff]   ;;  %v10287_v19 = vld [vmem:[#allocation11 + $0x198] sm:$0xff]  }
 0x6c1   :  { %8356 = vmatpush1.bf16.msra.mxu0 %v9923_v37  ;;  %8029 = vmatprep.subr.bf16.mxu1 %v9930_v59  ;;  %v10244_v37 = vld [vmem:[#allocation11 + $0x40] sm:$0xff]   ;;  %v10585_v59 = vadd.f32 %v11294_v44, %v1799_v38  ;;  %v10237_v44 = vld [vmem:[#allocation11 + $0x8] sm:$0xff]   ;;  %v10271_v38 = vld [vmem:[#allocation11 + $0x118] sm:$0xff]  }
 0x6c2   :  { %8357 = vmatprep.subr.bf16.mxu0 %v9932_v42  ;;  %v10260_v42 = vld [vmem:[#allocation11 + $0xc0] sm:$0xff]   ;;  %v10285_v53 = vld [vmem:[#allocation11 + $0x188] sm:$0xff]  }
 0x6c3   :  { %v8381_v43 = vmax.f32 %v10585_v59, 0.0  ;;  %v10288_v59 = vld [vmem:[#allocation11 + $0x1a0] sm:$0xff]  }
 0x6c4   :  { %8030 = vmatpush1.bf16.msra.mxu1 %v9929_v51  ;;  %v10245_v51 = vld [vmem:[#allocation11 + $0x48] sm:$0xff]  }
 0x6c5   :  { %8358 = vmatpush1.bf16.msra.mxu0 %v9931_v31  ;;  %8031 = vmatprep.subr.bf16.mxu1 %v9938_v56  ;;  %v8383_v31 = vmax.f32 %v10587_v45, 0.0  ;;  %v10261_v56 = vld [vmem:[#allocation11 + $0xc8] sm:$0xff]  }
 0x6c6   :  { %8359 = vmatprep.subr.bf16.mxu0 %v9940_v28  ;;  %v10246_v28 = vld [vmem:[#allocation11 + $0x50] sm:$0xff]   ;;  %v10297_v45 = vld [vmem:[#allocation11 + $0x1e8] sm:$0xff]  }
 0x6c8   :  { %8032 = vmatpush1.bf16.msra.mxu1 %v9937_v61  ;;  %v10263_v61 = vld [vmem:[#allocation11 + $0xd8] sm:$0xff]  }
 0x6c9   :  { %8360 = vmatpush1.bf16.msra.mxu0 %v9939_v62  ;;  %8033 = vmatprep.subr.bf16.mxu1 %v9946_v21  ;;  %v10255_v62 = vld [vmem:[#allocation11 + $0x98] sm:$0xff]   ;;  %v10248_v21 = vld [vmem:[#allocation11 + $0x60] sm:$0xff]  }
 0x6ca   :  { %8361 = vmatprep.subr.bf16.mxu0 %v9948_v63  ;;  %v10264_v63 = vld [vmem:[#allocation11 + $0xe0] sm:$0xff]  }
 0x6cc   :  { %8034 = vmatpush1.bf16.msra.mxu1 %v9945_v35  ;;  %v1794_v35 = vsub.s32 0, %v11021_v54 }
 0x6cd   :  { %8362 = vmatpush1.bf16.msra.mxu0 %v9947_v36  ;;  %8035 = vmatprep.subr.bf16.mxu1 %v9954_v3  ;;  %v10241_v36 = vld [vmem:[#allocation11 + $0x28] sm:$0xff]   ;;  %v1802_v3 = vsub.s32 2, %v11021_v54 }
 0x6ce   :  { %8363 = vmatprep.subr.bf16.mxu0 %v9956_v4  ;;  %v10257_v4 = vld [vmem:[#allocation11 + $0xa8] sm:$0xff]   ;;  %v1795_v52 = vrot.slane %v11315_v26, %v1794_v35 }
 0x6d0   :  { %8036 = vmatpush1.bf16.msra.mxu1 %v9953_v9  ;;  %v1803_v9 = vrot.slane %v11315_v26, %v1802_v3  ;;  %v10584_v12 = vadd.f32 %v11290_v60, %v1795_v52  ;;  %v10293_v60 = vld [vmem:[#allocation11 + $0x1c8] sm:$0xff]  }
 0x6d1   :  { %8364 = vmatpush1.bf16.msra.mxu0 %v9955_v8  ;;  %8037 = vmatprep.subr.bf16.mxu1 %v9962_v10  ;;  %v10258_v8 = vld [vmem:[#allocation11 + $0xb0] sm:$0xff]   ;;  %v10251_v10 = vld [vmem:[#allocation11 + $0x78] sm:$0xff]  }
 0x6d2   :  { %8365 = vmatprep.subr.bf16.mxu0 %v9964_v11  ;;  %v10267_v11 = vld [vmem:[#allocation11 + $0xf8] sm:$0xff]   ;;  %v10586_v16 = vadd.f32 %v11292_v2, %v1803_v9  ;;  %v10269_v2 = vld [vmem:[#allocation11 + $0x108] sm:$0xff]  }
 0x6d4   :  { %8038 = vmatpush1.bf16.msra.mxu1 %v9961_v13  ;;  %v10276_v13 = vld [vmem:[#allocation11 + $0x140] sm:$0xff]   ;;  %v8382_v22 = vmax.f32 %v10586_v16, 0.0 }
 0x6d5   :  { %8366 = vmatpush1.bf16.msra.mxu0 %v9963_v17  ;;  %8039 = vmatprep.subr.bf16.mxu1 %v9970_v23  ;;  %v10292_v17 = vld [vmem:[#allocation11 + $0x1c0] sm:$0xff]   ;;  %v8380_v23 = vmax.f32 %v10584_v12, 0.0 }
 0x6d6   :  { %8367 = vmatprep.subr.bf16.mxu0 %v9972_v27  ;;  %v10268_v27 = vld [vmem:[#allocation11 + $0x100] sm:$0xff]  }
 0x6d8   :  { %8040 = vmatpush1.bf16.msra.mxu1 %v9969_v33  ;;  %v10270_v33 = vld [vmem:[#allocation11 + $0x110] sm:$0xff]  }
 0x6d9   :  { %8368 = vmatpush1.bf16.msra.mxu0 %v9971_v15  ;;  %8041 = vmatprep.subr.bf16.mxu1 %v9978_v55  ;;  %v10286_v15 = vld [vmem:[#allocation11 + $0x190] sm:$0xff]   ;;  %v10279_v55 = vld [vmem:[#allocation11 + $0x158] sm:$0xff]  }
 0x6da   :  { %8369 = vmatprep.subr.bf16.mxu0 %v9980_v18  ;;  %v10295_v18 = vld [vmem:[#allocation11 + $0x1d8] sm:$0xff]  }
 0x6dc   :  { %8042 = vmatpush1.bf16.msra.mxu1 %v9977_v39  ;;  %v10280_v39 = vld [vmem:[#allocation11 + $0x160] sm:$0xff]  }
 0x6dd   :  { %8370 = vmatpush1.bf16.msra.mxu0 %v9979_v48  ;;  %10457 = vmatprep.subr.bf16.mxu1 %v10244_v37  ;;  %v10296_v48 = vld [vmem:[#allocation11 + $0x1e0] sm:$0xff]  }
 0x6de   :  { %10489 = vmatprep.subr.bf16.mxu0 %v10260_v42  ;;  %v10272_v37 = vld [vmem:[#allocation11 + $0x120] sm:$0xff]   ;;  %v10281_v42 = vld [vmem:[#allocation11 + $0x168] sm:$0xff]  }
 0x6df   :  { %8044 = vmatmul.mubr.bf16.vlgmr.msra.gmra.mrb[12].mxu1 %v11272_v6 }
 0x6e0   :  { %8372 = vmatmul.mubr.bf16.vlgmr.msra.gmra.mrb[12].mxu0 %v11272_v6  ;;  %10459 = vmatpush3.bf16.msra.mxu1 %v9982_v46  ;;  %v10239_v6 = vld [vmem:[#allocation11 + $0x18] sm:$0xff]   ;;  %v10273_v46 = vld [vmem:[#allocation11 + $0x128] sm:$0xff]  }
 0x6e1   :  { %8708 = vmatprep.mubr.f32.mxu1 %v8381_v43  ;;  %10491 = vmatpush3.bf16.msra.mxu0 %v10252_v50  ;;  %v10289_v50 = vld [vmem:[#allocation11 + $0x1a8] sm:$0xff]   ;;  %v10282_v43 = vld [vmem:[#allocation11 + $0x170] sm:$0xff]  }
 0x6e2   :  { %8778 = vmatprep.mubr.f32.mxu0 %v8383_v31  ;;  %10461 = vmatprep.subr.bf16.mxu1 %v10245_v51  ;;  %v10298_v51 = vld [vmem:[#allocation11 + $0x1f0] sm:$0xff]  }
 0x6e3   :  { %10493 = vmatprep.subr.bf16.mxu0 %v10261_v56  ;;  %v10274_v31 = vld [vmem:[#allocation11 + $0x130] sm:$0xff]  }
 0x6e4   :  { %10463 = vmatpush3.bf16.msra.mxu1 %v10237_v44  ;;  %v10290_v56 = vld [vmem:[#allocation11 + $0x1b0] sm:$0xff]   ;;  %v10283_v44 = vld [vmem:[#allocation11 + $0x178] sm:$0xff]  }
 0x6e5   :  { %10495 = vmatpush3.bf16.msra.mxu0 %v10253_v47  ;;  %10465 = vmatprep.subr.bf16.mxu1 %v10246_v28  ;;  %v10299_v47 = vld [vmem:[#allocation11 + $0x1f8] sm:$0xff]  }
 0x6e6   :  { %10497 = vmatprep.subr.bf16.mxu0 %v10262_v40  ;;  %v10275_v28 = vld [vmem:[#allocation11 + $0x138] sm:$0xff]  }
 0x6e7   :  { %v10291_v40 = vld [vmem:[#allocation11 + $0x1b8] sm:$0xff]  }
 0x6e8   :  { %10467 = vmatpush3.bf16.msra.mxu1 %v10238_v57  ;;  %v1810_v57 = vsub.s32 4, %v11021_v54 }
 0x6e9   :  { %10499 = vmatpush3.bf16.msra.mxu0 %v10254_v58  ;;  %10469 = vmatprep.subr.bf16.mxu1 %v10247_v49  ;;  %v1818_v58 = vsub.s32 6, %v11021_v54  ;;  %v1814_v49 = vsub.s32 5, %v11021_v54 }
 0x6ea   :  { %10501 = vmatprep.subr.bf16.mxu0 %v10263_v61  ;;  %v1822_v61 = vsub.s32 7, %v11021_v54 }
 0x6ec   :  { %10471 = vmatpush3.bf16.msra.mxu1 %v10239_v6  ;;  %v1811_v6 = vrot.slane %v11315_v26, %v1810_v57 }
 0x6ed   :  { %10503 = vmatpush3.bf16.msra.mxu0 %v10255_v62  ;;  %10473 = vmatprep.subr.bf16.mxu1 %v10248_v21  ;;  %v1819_v62 = vrot.slane %v11315_v26, %v1818_v58  ;;  %v1815_v21 = vrot.slane %v11315_v26, %v1814_v49 }
 0x6ee   :  { %10505 = vmatprep.subr.bf16.mxu0 %v10264_v63  ;;  %v1823_v63 = vrot.slane %v11315_v26, %v1822_v61 }
 0x6f0   :  { %10475 = vmatpush3.bf16.msra.mxu1 %v10240_v0 }
 0x6f1   :  { %10507 = vmatpush3.bf16.msra.mxu0 %v10256_v30  ;;  %10477 = vmatprep.subr.bf16.mxu1 %v10249_v32 }
 0x6f2   :  { %10509 = vmatprep.subr.bf16.mxu0 %v10265_v34 }
 0x6f4   :  { %10479 = vmatpush3.bf16.msra.mxu1 %v10241_v36 }
 0x6f5   :  { %10511 = vmatpush3.bf16.msra.mxu0 %v10257_v4  ;;  %10481 = vmatprep.subr.bf16.mxu1 %v10250_v5 }
 0x6f6   :  { %10513 = vmatprep.subr.bf16.mxu0 %v10266_v14 }
 0x6f8   :  { %10483 = vmatpush3.bf16.msra.mxu1 %v10242_v7 }
 0x6f9   :  { %10515 = vmatpush3.bf16.msra.mxu0 %v10258_v8  ;;  %10485 = vmatprep.subr.bf16.mxu1 %v10251_v10 }
 0x6fa   :  { %10517 = vmatprep.subr.bf16.mxu0 %v10267_v11 }
 0x6fc   :  { %10487 = vmatpush3.bf16.msra.mxu1 %v10243_v20 }
 0x6fd   :  { %10519 = vmatpush3.bf16.msra.mxu0 %v10259_v41  ;;  %10521 = vmatprep.subr.bf16.mxu1 %v10276_v13 }
 0x6fe   :  { %10553 = vmatprep.subr.bf16.mxu0 %v10292_v17 }
 0x6ff   :  { %8709 = vmatmul.mubr.f32.vlgmr.msra.gmra.mrb[6].mxu1 %v8380_v23 }
 0x700   :  { %8779 = vmatmul.mubr.f32.vlgmr.msra.gmra.mrb[6].mxu0 %v8382_v22  ;;  %10523 = vmatpush3.bf16.msra.mxu1 %v10268_v27 }
 0x701   :  { %10555 = vmatpush3.bf16.msra.mxu0 %v10284_v24  ;;  %10525 = vmatprep.subr.bf16.mxu1 %v10277_v25 }
 0x702   :  { %10557 = vmatprep.subr.bf16.mxu0 %v10293_v60 }
 0x704   :  { %10527 = vmatpush3.bf16.msra.mxu1 %v10269_v2 }
 0x705   :  { %10559 = vmatpush3.bf16.msra.mxu0 %v10285_v53  ;;  %10529 = vmatprep.subr.bf16.mxu1 %v10278_v1 }
 0x706   :  { %10561 = vmatprep.subr.bf16.mxu0 %v10294_v29 }
 0x708   :  { %10531 = vmatpush3.bf16.msra.mxu1 %v10270_v33 }
 0x709   :  { %10563 = vmatpush3.bf16.msra.mxu0 %v10286_v15  ;;  %10533 = vmatprep.subr.bf16.mxu1 %v10279_v55 }
 0x70a   :  { %10565 = vmatprep.subr.bf16.mxu0 %v10295_v18 }
 0x70c   :  { %10535 = vmatpush3.bf16.msra.mxu1 %v10271_v38 }
 0x70d   :  { %10567 = vmatpush3.bf16.msra.mxu0 %v10287_v19  ;;  %10537 = vmatprep.subr.bf16.mxu1 %v10280_v39 }
 0x70e   :  { %10569 = vmatprep.subr.bf16.mxu0 %v10296_v48 }
 0x710   :  { %10539 = vmatpush3.bf16.msra.mxu1 %v10272_v37 }
 0x711   :  { %10571 = vmatpush3.bf16.msra.mxu0 %v10288_v59  ;;  %10541 = vmatprep.subr.bf16.mxu1 %v10281_v42 }
 0x712   :  { %10573 = vmatprep.subr.bf16.mxu0 %v10297_v45 }
 0x714   :  { %10543 = vmatpush3.bf16.msra.mxu1 %v10273_v46 }
 0x715   :  { %10575 = vmatpush3.bf16.msra.mxu0 %v10289_v50  ;;  %10545 = vmatprep.subr.bf16.mxu1 %v10282_v43 }
 0x716   :  { %10577 = vmatprep.subr.bf16.mxu0 %v10298_v51 }
 0x718   :  { %10547 = vmatpush3.bf16.msra.mxu1 %v10274_v31 }
 0x719   :  { %10579 = vmatpush3.bf16.msra.mxu0 %v10290_v56  ;;  %10549 = vmatprep.subr.bf16.mxu1 %v10283_v44 }
 0x71a   :  { %10581 = vmatprep.subr.bf16.mxu0 %v10299_v47 }
 0x71c   :  { %10551 = vmatpush3.bf16.msra.mxu1 %v10275_v28 }
 0x71d   :  { %10583 = vmatpush3.bf16.msra.mxu0 %v10291_v40 }
 0x7b2   :  { %v8045_v0 = vpop.f32.mrb[12].mxu1 }
 0x7b3   :  { %v10588_v30 = vadd.f32 %v8045_v0, %v1811_v6  ;;  %v8373_v32 = vpop.f32.mrb[12].mxu0  ;;  %v8047_v34 = vpop.f32.mrb[13].mxu1 }
 0x7b4   :  { %v10590_v35 = vadd.f32 %v8373_v32, %v1819_v62  ;;  %v10589_v36 = vadd.f32 %v8047_v34, %v1815_v21  ;;  %v8375_v3 = vpop.f32.mrb[13].mxu0  ;;  %v8049_v4 = vpop.f32.mrb[14].mxu1 }
 0x7b5   :  { %v10591_v5 = vadd.f32 %v8375_v3, %v1823_v63  ;;  %v8377_v14 = vpop.f32.mrb[14].mxu0  ;;  %v8050_v52 = vpop.f32.mrb[15].mxu1  ;;  %v8384_v9 = vmax.f32 %v10588_v30, 0.0 }
 0x7b6   :  { %v8385_v54 = vmax.f32 %v10589_v36, 0.0  ;;  %v8378_v7 = vpop.f32.mrb[15].mxu0  ;;  %v8386_v10 = vmax.f32 %v10590_v35, 0.0 }
 0x7b7   :  { %v8387_v8 = vmax.f32 %v10591_v5, 0.0 }
 0x7b8   :  { %8848 = vmatprep.mubr.f32.mxu1 %v8385_v54 }
 0x7b9   :  { %8918 = vmatprep.mubr.f32.mxu0 %v8387_v8  ;;  %8849 = vmatmul.mubr.f32.vlgmr.msra.gmra.mrb[16].mxu1 %v8384_v9 }
 0x7ba   :  { %8919 = vmatmul.mubr.f32.vlgmr.msra.gmra.mrb[16].mxu0 %v8386_v10 }
 0x7d2   :  { %v10338_v26 = vpop.f32.mrb[6].mxu1 }
 0x7d3   :  { %v10373_v11 = vpop.f32.mrb[6].mxu0  ;;  %v10339_v12 = vpop.f32.mrb[7].mxu1 }
 0x7d4   :  { %v10340_v20 = vadd.f32 %v10339_v12, %v10338_v26  ;;  %v10374_v16 = vpop.f32.mrb[7].mxu0 }
 0x7d5   :  { %v10375_v41 = vadd.f32 %v10374_v16, %v10373_v11 }
 0x7d7   :  { %v8781_v13 = vadd.f32 %v10375_v41, %v10340_v20 }
 0x88c   :  { %v10408_v17 = vpop.f32.mrb[16].mxu1 }
 0x88d   :  { %v10443_v23 = vpop.f32.mrb[16].mxu0  ;;  %v10409_v27 = vpop.f32.mrb[17].mxu1 }
 0x88e   :  { %v10410_v22 = vadd.f32 %v10409_v27, %v10408_v17  ;;  %v10444_v24 = vpop.f32.mrb[17].mxu0 }
 0x88f   :  { %v10445_v25 = vadd.f32 %v10444_v24, %v10443_v23 }
 0x890   :  { %v8851_v60 = vadd.f32 %v10410_v22, %v8781_v13 }
 0x892   :  { %v8921_v2 = vadd.f32 %v10445_v25, %v8851_v60 }
 0x894   :  { %8924 = vst [vmem:[%s11348_s7] sm:$0x3] %v8921_v2 }
 0x895   :  { %8929 = vsyncpa [#allocation4], 1 }
 0x896   :  { %8930 = vsyncpa [#allocation6], 1 }
 0x897   :  { %8931 = vsyncpa [#allocation9], 1 }
 0x898   :  { %8932 = vsyncpa [#allocation12], 1 }

</bundles_post_ra>
